<compile_context>
chip_gen: v7x
topology: tpu7x:2x2x1
jax: 0.10.0
libtpu: 0.0.40
codegen_flags: <defaults>
</compile_context>

<pallas_src>
import functools

import numpy as np
import jax
import jax.numpy as jnp
from jax.experimental import pallas as pl
from jax.experimental.pallas import tpu as pltpu


# ----------------------------------------------------------------------------
# In-kernel helpers
# ----------------------------------------------------------------------------
def _mm(x_bf16, w_ref):
    # bf16 MXU matmul with f32 accumulation.
    return jnp.dot(x_bf16, w_ref[...], preferred_element_type=jnp.float32)


def _relu_mm_bf16(x_bf16, w_ref, b_ref):
    # bias + ReLU in f32 on the VPU, single downcast to bf16 for the next matmul.
    return jnp.maximum(_mm(x_bf16, w_ref) + b_ref[...], 0.0).astype(jnp.bfloat16)


def _relu_mm_f32(x_bf16, w_ref, b_ref):
    # keep f32 output (feeds the f32 max-pool; v5e-safe).
    return jnp.maximum(_mm(x_bf16, w_ref) + b_ref[...], 0.0)


def _pool_pad_bf16(h, B, M, BP):
    """[B*M, F] f32 -> per-batch max-pool -> zero-pad to [BP, F] -> bf16."""
    pooled = jnp.max(h.reshape(B, M, h.shape[-1]), axis=1)          # [B, F] f32
    if BP > B:
        pooled = jnp.concatenate(
            [pooled, jnp.zeros((BP - B, pooled.shape[-1]), pooled.dtype)], axis=0)
    return pooled.astype(jnp.bfloat16)                               # [BP, F]


# ----------------------------------------------------------------------------
# Fused Pallas kernel: center T-Net + re-centering + 3D-box regression net
# ----------------------------------------------------------------------------
def _fused_box3d_kernel(
    pc_ref, oh_c_ref, oh_b_ref,
    cw1, cb1, cw2, cb2, cw3, cb3,
    cf1w, cf1b, cf2w, cf2b, cf3w, cf3b,
    bw1, bb1, bw2, bb2, bw3, bb3, bw4, bb4,
    bf1w, bf1b, bf2w, bf2b, bf3w, bf3b,
    out_ref,
    *, B,
):
    BM, C = pc_ref.shape          # C = padded channel count
    M = BM // B
    BP = oh_c_ref.shape[0]        # sublane-padded batch (>= 8)
    OUTW = out_ref.shape[1] // 2  # 128 lanes for center, 128 for box

    # Object point cloud, already mean-centered & channel-padded, batch collapsed.
    x1 = pc_ref[...]                                              # [B*M, C] f32
    x1b = x1.astype(jnp.bfloat16)

    # ---- Center regression T-Net: shared per-point MLP (batch-collapsed MXU rows) ----
    h = _relu_mm_bf16(x1b, cw1, cb1)
    h = _relu_mm_bf16(h, cw2, cb2)
    h = _relu_mm_f32(h, cw3, cb3)                                 # [B*M, 256] f32

    # ---- Batched FC head (one matmul per layer; one-hot term precomputed outside) ----
    feat = _pool_pad_bf16(h, B, M, BP)                            # [BP, 256] bf16
    g = jnp.maximum(_mm(feat, cf1w) + oh_c_ref[...] + cf1b[...], 0.0).astype(jnp.bfloat16)
    g = _relu_mm_bf16(g, cf2w, cf2b)
    center_rows = _mm(g, cf3w) + cf3b[...]                        # [BP, 128] f32

    # ---- Re-center xyz (cols 0:3 only, explicit lane mask) in VMEM ----
    lane = jax.lax.broadcasted_iota(jnp.int32, (B, C), 1)
    delta = jnp.where(lane < 3, center_rows[0:B, 0:C], 0.0)       # [B, C] f32
    x2 = (x1.reshape(B, M, C) - delta[:, None, :]).reshape(BM, C)
    x2b = x2.astype(jnp.bfloat16)

    # ---- 3D box regression net: shared per-point MLP ----
    h = _relu_mm_bf16(x2b, bw1, bb1)
    h = _relu_mm_bf16(h, bw2, bb2)
    h = _relu_mm_bf16(h, bw3, bb3)
    h = _relu_mm_f32(h, bw4, bb4)                                 # [B*M, 512] f32

    feat = _pool_pad_bf16(h, B, M, BP)                            # [BP, 512] bf16
    g = jnp.maximum(_mm(feat, bf1w) + oh_b_ref[...] + bf1b[...], 0.0).astype(jnp.bfloat16)
    g = _relu_mm_bf16(g, bf2w, bf2b)
    box_rows = _mm(g, bf3w) + bf3b[...]                           # [BP, 128] f32

    # ---- Single lane-dense, sublane-full store of both heads ----
    out_ref[...] = jnp.concatenate([center_rows, box_rows], axis=1)   # [BP, 2*OUTW]
    del OUTW


# ----------------------------------------------------------------------------
# Wrapper around the fused pallas_call
# ----------------------------------------------------------------------------
def fused_box3d_stages(obj_pc, mask_mean_xyz, one_hot, kparams):
    """obj_pc: [B, M, C] resampled object points; returns a [B, 2*out_pad] slab."""
    B, M, C = obj_pc.shape
    cpad = kparams["cpad"]
    out_pad = kparams["out_pad"]
    args = kparams["args"]
    BP = max(8, -(-B // 8) * 8)   # sublane-padded batch for the FC heads / output slab

    # Mean-subtract xyz (pad keeps extra channels untouched), zero-pad channels,
    # flatten batch onto the point axis (fuses with the preceding XLA gather).
    mean_pad = jnp.pad(mask_mean_xyz, ((0, 0), (0, cpad - mask_mean_xyz.shape[1])))
    pc = jnp.pad(obj_pc, ((0, 0), (0, 0), (0, cpad - C)))
    pc = (pc - mean_pad[:, None, :]).reshape(B * M, cpad)

    # Precompute the one-hot contribution to each FC head (trivial [B, n_classes] matmul
    # in XLA); padded to the sublane-padded batch.
    oh_c = jnp.pad(one_hot @ kparams["cf1_oh_w"], ((0, BP - B), (0, 0)))   # [BP, 256] f32
    oh_b = jnp.pad(one_hot @ kparams["bf1_oh_w"], ((0, BP - B), (0, 0)))   # [BP, 512] f32

    # Advisory cost estimate so XLA can schedule around this small custom call.
    point_w_idx = (0, 2, 4, 12, 14, 16, 18)
    fc_w_idx = (6, 8, 10, 20, 22, 24)
    flops = (sum(2 * B * M * args[i].shape[0] * args[i].shape[1] for i in point_w_idx)
             + sum(2 * BP * args[i].shape[0] * args[i].shape[1] for i in fc_w_idx))
    bytes_accessed = (int(pc.size) * 4 + int(oh_c.size) * 4 + int(oh_b.size) * 4
                      + sum(int(np.prod(a.shape)) * a.dtype.itemsize for a in args)
                      + BP * 2 * out_pad * 4)

    out_slab = pl.pallas_call(
        functools.partial(_fused_box3d_kernel, B=B),
        out_shape=jax.ShapeDtypeStruct((BP, 2 * out_pad), jnp.float32),
        cost_estimate=pl.CostEstimate(flops=flops, transcendentals=0,
                                      bytes_accessed=bytes_accessed),
        compiler_params=pltpu.CompilerParams(vmem_limit_bytes=32 * 1024 * 1024),
    )(pc, oh_c, oh_b, *args)
    return out_slab[:B]


# ----------------------------------------------------------------------------
# Masking + deterministic resampling (pure XLA: argsort has no Pallas equivalent)
# ----------------------------------------------------------------------------
def point_cloud_masking(pc, seg_onehot, m_points):
    """Mask by segmentation, compute masked-xyz mean, resample m_points masked points."""
    mask = (seg_onehot[:, :, 1] > seg_onehot[:, :, 0]).astype(jnp.float32)     # [B, N]
    count = jnp.sum(mask, axis=1)                                              # [B]
    mean = (jnp.sum(mask[:, :, None] * pc[:, :, 0:3], axis=1)
            / jnp.maximum(count, 1.0)[:, None])                                # [B, 3]

    # TODO(synk): deterministic masked-first resample with wrap-around instead of random.
    order = jnp.argsort(1.0 - mask, axis=1, stable=True)                       # masked points first
    j = jnp.arange(m_points, dtype=jnp.int32)[None, :]
    cnt_i = jnp.maximum(count.astype(jnp.int32), 1)[:, None]
    idx = jnp.take_along_axis(order, j % cnt_i, axis=1)                        # [B, M]
    obj_pc = jnp.take_along_axis(pc, idx[:, :, None], axis=1)                  # [B, M, C]
    obj_pc = obj_pc * (count > 0).astype(jnp.float32)[:, None, None]
    return obj_pc, mean, mask


# ----------------------------------------------------------------------------
# Deterministic parameter initialization (eval-mode BN folded into weights)
# ----------------------------------------------------------------------------
def _bn_fold(key, w, b):
    k1, k2 = jax.random.split(key)
    cout = w.shape[1]
    gamma = 1.0 + 0.1 * jax.random.normal(k1, (cout,), jnp.float32)
    beta = 0.1 * jax.random.normal(k2, (cout,), jnp.float32)
    eps = 1e-5
    scale = gamma / jnp.sqrt(1.0 + eps)      # running_mean=0, running_var=1 at init
    return w * scale[None, :], b * scale + beta


def _layer(key, cin, cout, bn=True):
    kw, kb, kbn = jax.random.split(key, 3)
    w = jax.random.normal(kw, (cin, cout), jnp.float32) / np.sqrt(cin)
    b = 0.01 * jax.random.normal(kb, (cout,), jnp.float32)
    if bn:
        w, b = _bn_fold(kbn, w, b)
    return w, b


def init_params(key, n_channels, n_classes, num_heading_bin, num_size_cluster):
    keys = jax.random.split(key, 16)
    out_dim = 3 + num_heading_bin * 2 + num_size_cluster * 4

    center_conv_dims = [(n_channels, 128), (128, 128), (128, 256)]
    center_fc_dims = [(256 + n_classes, 256), (256, 128), (128, 3)]
    box_conv_dims = [(n_channels, 128), (128, 128), (128, 256), (256, 512)]
    box_fc_dims = [(512 + n_classes, 512), (512, 256), (256, out_dim)]

    idx = [0]

    def make(dims, all_bn):
        ws, bs = [], []
        for i, (cin, cout) in enumerate(dims):
            bn = all_bn or (i < len(dims) - 1)
            w, b = _layer(keys[idx[0]], cin, cout, bn=bn)
            idx[0] += 1
            ws.append(w)
            bs.append(b)
        return ws, bs

    params = {}
    params["center_conv_w"], params["center_conv_b"] = make(center_conv_dims, True)
    params["center_fc_w"], params["center_fc_b"] = make(center_fc_dims, False)
    params["box_conv_w"], params["box_conv_b"] = make(box_conv_dims, True)
    params["box_fc_w"], params["box_fc_b"] = make(box_fc_dims, False)
    params["mean_size_arr"] = (
        1.0 + 0.1 * jnp.arange(num_size_cluster * 3, dtype=jnp.float32)
    ).reshape(num_size_cluster, 3)
    return params


def prepare_kernel_params(params):
    """Pad / split / bf16-cast the weights once into the flat kernel argument tuple."""
    def w16(w):
        return w.astype(jnp.bfloat16)

    def b_row(b):
        return b.reshape(1, -1).astype(jnp.float32)

    def pad_rows(w, rows):
        return jnp.pad(w, ((0, rows - w.shape[0]), (0, 0)))

    def pad_cols(w, cols):
        return jnp.pad(w, ((0, 0), (0, cols - w.shape[1])))

    cw, cb = params["center_conv_w"], params["center_conv_b"]
    cfw, cfb = params["center_fc_w"], params["center_fc_b"]
    bw, bb = params["box_conv_w"], params["box_conv_b"]
    bfw, bfb = params["box_fc_w"], params["box_fc_b"]

    n_channels = cw[0].shape[0]
    cpad = max(16, ((n_channels + 15) // 16) * 16)         # bf16 weight min tile is (16,128)
    out_dim = bfw[2].shape[1]
    out_pad = 128 * max(1, -(-out_dim // 128))              # lane-dense outputs

    c_feat = cw[-1].shape[1]                                # 256
    b_feat = bw[-1].shape[1]                                # 512

    args = (
        # center T-Net shared MLP (Cin zero-padded to cpad)               idx 0-5
        w16(pad_rows(cw[0], cpad)), b_row(cb[0]),
        w16(cw[1]), b_row(cb[1]),
        w16(cw[2]), b_row(cb[2]),
        # center FC head (one-hot part handled outside the kernel)        idx 6-11
        w16(cfw[0][:c_feat]), b_row(cfb[0]),
        w16(cfw[1]), b_row(cfb[1]),
        w16(pad_cols(cfw[2], out_pad)),
        b_row(jnp.pad(cfb[2], (0, out_pad - cfb[2].shape[0]))),
        # box shared MLP                                                   idx 12-19
        w16(pad_rows(bw[0], cpad)), b_row(bb[0]),
        w16(bw[1]), b_row(bb[1]),
        w16(bw[2]), b_row(bb[2]),
        w16(bw[3]), b_row(bb[3]),
        # box FC head                                                      idx 20-25
        w16(bfw[0][:b_feat]), b_row(bfb[0]),
        w16(bfw[1]), b_row(bfb[1]),
        w16(pad_cols(bfw[2], out_pad)),
        b_row(jnp.pad(bfb[2], (0, out_pad - bfb[2].shape[0]))),
    )
    return {
        "args": args,
        "cpad": cpad,
        "out_pad": out_pad,
        "out_dim": out_dim,
        # f32 one-hot slices of the first FC layers, used in the XLA wrapper.
        "cf1_oh_w": cfw[0][c_feat:].astype(jnp.float32),
        "bf1_oh_w": bfw[0][b_feat:].astype(jnp.float32),
    }


# ----------------------------------------------------------------------------
# Forward pass (mirrors Box3DModelBlock.forward)
# ----------------------------------------------------------------------------
def parse_3dregression_model_output(output, endpoints, NH, NS, mean_size_arr):
    B = output.shape[0]
    endpoints["center_boxnet"] = output[:, 0:3]
    endpoints["heading_scores"] = output[:, 3:3 + NH]
    hrn = output[:, 3 + NH:3 + 2 * NH]
    endpoints["heading_residuals_normalized"] = hrn
    endpoints["heading_residuals"] = hrn * (np.pi / NH)
    endpoints["size_scores"] = output[:, 3 + 2 * NH:3 + 2 * NH + NS]
    srn = output[:, 3 + 2 * NH + NS:].reshape(B, NS, 3)
    endpoints["size_residuals_normalized"] = srn
    endpoints["size_residuals"] = srn * mean_size_arr[None, :, :]
    return endpoints


def box3d_model_block_forward(params, kparams, input_point_cloud, one_hot_vector,
                              segmentation_label, m_points, NH, NS):
    endpoints = {}
    seg_onehot = jax.nn.one_hot(segmentation_label, 2, dtype=jnp.float32)

    obj_pc, mask_mean_xyz, mask = point_cloud_masking(input_point_cloud, seg_onehot, m_points)
    endpoints["mask"] = mask

    # Single fused kernel: center T-Net, in-VMEM re-centering, box regression net.
    out_slab = fused_box3d_stages(obj_pc, mask_mean_xyz, one_hot_vector, kparams)
    out_pad = kparams["out_pad"]
    center_delta = out_slab[:, 0:3]                                      # [B, 3]
    box_out = out_slab[:, out_pad:out_pad + kparams["out_dim"]]          # [B, 3+2NH+4NS]

    endpoints["stage1_center"] = center_delta + mask_mean_xyz
    endpoints = parse_3dregression_model_output(
        box_out, endpoints, NH, NS, params["mean_size_arr"]
    )
    endpoints["center"] = endpoints["center_boxnet"] + endpoints["stage1_center"]
    return endpoints


# ----------------------------------------------------------------------------
if __name__ == "__main__":
    B, N_POINTS, M_POINTS = 2, 32, 16
    N_CHANNELS, N_CLASSES = 4, 3
    NUM_HEADING_BIN, NUM_SIZE_CLUSTER = 12, 8

    key = jax.random.PRNGKey(0)
    k_pc, k_cls, k_seg, k_params = jax.random.split(key, 4)

    input_point_cloud = jax.random.normal(k_pc, (B, N_POINTS, N_CHANNELS), jnp.float32)
    one_hot_vector = jax.nn.one_hot(
        jax.random.randint(k_cls, (B,), 0, N_CLASSES), N_CLASSES, dtype=jnp.float32
    )
    segmentation_label = jax.random.randint(k_seg, (B, N_POINTS), 0, 2)

    params = init_params(k_params, N_CHANNELS, N_CLASSES, NUM_HEADING_BIN, NUM_SIZE_CLUSTER)
    kparams = prepare_kernel_params(params)

    endpoints = box3d_model_block_forward(
        params, kparams, input_point_cloud, one_hot_vector, segmentation_label,
        M_POINTS, NUM_HEADING_BIN, NUM_SIZE_CLUSTER,
    )
    jax.block_until_ready(endpoints)

    # sanity on shapes
    assert endpoints["center"].shape == (B, 3)
    assert endpoints["stage1_center"].shape == (B, 3)
    assert endpoints["heading_scores"].shape == (B, NUM_HEADING_BIN)
    assert endpoints["heading_residuals"].shape == (B, NUM_HEADING_BIN)
    assert endpoints["size_scores"].shape == (B, NUM_SIZE_CLUSTER)
    assert endpoints["size_residuals"].shape == (B, NUM_SIZE_CLUSTER, 3)
    assert endpoints["mask"].shape == (B, N_POINTS)
    print("KERNEL_OK")
</pallas_src>

<mosaic_0001>
module attributes {stable_mosaic.version = 11 : i64} {
  func.func @_fused_box3d_kernel(%arg0: memref<32x16xf32, #tpu.memory_space<vmem>>, %arg1: memref<8x256xf32, #tpu.memory_space<vmem>>, %arg2: memref<8x512xf32, #tpu.memory_space<vmem>>, %arg3: memref<16x128xbf16, #tpu.memory_space<vmem>>, %arg4: memref<1x128xf32, #tpu.memory_space<vmem>>, %arg5: memref<128x128xbf16, #tpu.memory_space<vmem>>, %arg6: memref<1x128xf32, #tpu.memory_space<vmem>>, %arg7: memref<128x256xbf16, #tpu.memory_space<vmem>>, %arg8: memref<1x256xf32, #tpu.memory_space<vmem>>, %arg9: memref<256x256xbf16, #tpu.memory_space<vmem>>, %arg10: memref<1x256xf32, #tpu.memory_space<vmem>>, %arg11: memref<256x128xbf16, #tpu.memory_space<vmem>>, %arg12: memref<1x128xf32, #tpu.memory_space<vmem>>, %arg13: memref<128x128xbf16, #tpu.memory_space<vmem>>, %arg14: memref<1x128xf32, #tpu.memory_space<vmem>>, %arg15: memref<16x128xbf16, #tpu.memory_space<vmem>>, %arg16: memref<1x128xf32, #tpu.memory_space<vmem>>, %arg17: memref<128x128xbf16, #tpu.memory_space<vmem>>, %arg18: memref<1x128xf32, #tpu.memory_space<vmem>>, %arg19: memref<128x256xbf16, #tpu.memory_space<vmem>>, %arg20: memref<1x256xf32, #tpu.memory_space<vmem>>, %arg21: memref<256x512xbf16, #tpu.memory_space<vmem>>, %arg22: memref<1x512xf32, #tpu.memory_space<vmem>>, %arg23: memref<512x512xbf16, #tpu.memory_space<vmem>>, %arg24: memref<1x512xf32, #tpu.memory_space<vmem>>, %arg25: memref<512x256xbf16, #tpu.memory_space<vmem>>, %arg26: memref<1x256xf32, #tpu.memory_space<vmem>>, %arg27: memref<256x128xbf16, #tpu.memory_space<vmem>>, %arg28: memref<1x128xf32, #tpu.memory_space<vmem>>, %arg29: memref<8x256xf32, #tpu.memory_space<vmem>>) attributes {dimension_semantics = [], scalar_prefetch = 0 : i64, scratch_operands = 0 : i64, tpu.core_type = #tpu.core_type<tc>} {
    %c0 = arith.constant 0 : index
    %c0_0 = arith.constant 0 : index
    %0 = vector.load %arg0[%c0, %c0_0] : memref<32x16xf32, #tpu.memory_space<vmem>>, vector<32x16xf32>
    %1 = arith.truncf %0 : vector<32x16xf32> to vector<32x16xbf16>
    %c0_1 = arith.constant 0 : index
    %c0_2 = arith.constant 0 : index
    %2 = vector.load %arg3[%c0_1, %c0_2] : memref<16x128xbf16, #tpu.memory_space<vmem>>, vector<16x128xbf16>
    %cst = arith.constant dense<0.000000e+00> : vector<32x128xf32>
    %3 = tpu.matmul %1, %2, %cst {dimension_numbers = #tpu.dot_dimension_numbers<[1], [0], [0], [1], [0, 0, 1, 1], [], []>} : vector<32x16xbf16>, vector<16x128xbf16>, vector<32x128xf32> -> vector<32x128xf32>
    %c0_3 = arith.constant 0 : index
    %c0_4 = arith.constant 0 : index
    %4 = vector.load %arg4[%c0_3, %c0_4] : memref<1x128xf32, #tpu.memory_space<vmem>>, vector<1x128xf32>
    %5 = vector.broadcast %4 : vector<1x128xf32> to vector<32x128xf32>
    %6 = arith.addf %3, %5 : vector<32x128xf32>
    %cst_5 = arith.constant 0.000000e+00 : f32
    %7 = vector.broadcast %cst_5 : f32 to vector<32x128xf32>
    %8 = arith.maximumf %6, %7 : vector<32x128xf32>
    %9 = arith.truncf %8 : vector<32x128xf32> to vector<32x128xbf16>
    %c0_6 = arith.constant 0 : index
    %c0_7 = arith.constant 0 : index
    %10 = vector.load %arg5[%c0_6, %c0_7] : memref<128x128xbf16, #tpu.memory_space<vmem>>, vector<128x128xbf16>
    %cst_8 = arith.constant dense<0.000000e+00> : vector<32x128xf32>
    %11 = tpu.matmul %9, %10, %cst_8 {dimension_numbers = #tpu.dot_dimension_numbers<[1], [0], [0], [1], [0, 0, 1, 1], [], []>} : vector<32x128xbf16>, vector<128x128xbf16>, vector<32x128xf32> -> vector<32x128xf32>
    %c0_9 = arith.constant 0 : index
    %c0_10 = arith.constant 0 : index
    %12 = vector.load %arg6[%c0_9, %c0_10] : memref<1x128xf32, #tpu.memory_space<vmem>>, vector<1x128xf32>
    %13 = vector.broadcast %12 : vector<1x128xf32> to vector<32x128xf32>
    %14 = arith.addf %11, %13 : vector<32x128xf32>
    %cst_11 = arith.constant 0.000000e+00 : f32
    %15 = vector.broadcast %cst_11 : f32 to vector<32x128xf32>
    %16 = arith.maximumf %14, %15 : vector<32x128xf32>
    %17 = arith.truncf %16 : vector<32x128xf32> to vector<32x128xbf16>
    %c0_12 = arith.constant 0 : index
    %c0_13 = arith.constant 0 : index
    %18 = vector.load %arg7[%c0_12, %c0_13] : memref<128x256xbf16, #tpu.memory_space<vmem>>, vector<128x256xbf16>
    %cst_14 = arith.constant dense<0.000000e+00> : vector<32x256xf32>
    %19 = tpu.matmul %17, %18, %cst_14 {dimension_numbers = #tpu.dot_dimension_numbers<[1], [0], [0], [1], [0, 0, 1, 1], [], []>} : vector<32x128xbf16>, vector<128x256xbf16>, vector<32x256xf32> -> vector<32x256xf32>
    %c0_15 = arith.constant 0 : index
    %c0_16 = arith.constant 0 : index
    %20 = vector.load %arg8[%c0_15, %c0_16] : memref<1x256xf32, #tpu.memory_space<vmem>>, vector<1x256xf32>
    %21 = vector.broadcast %20 : vector<1x256xf32> to vector<32x256xf32>
    %22 = arith.addf %19, %21 : vector<32x256xf32>
    %cst_17 = arith.constant 0.000000e+00 : f32
    %23 = vector.broadcast %cst_17 : f32 to vector<32x256xf32>
    %24 = arith.maximumf %22, %23 : vector<32x256xf32>
    %25 = vector.shape_cast %24 : vector<32x256xf32> to vector<2x16x256xf32>
    %cst_18 = arith.constant dense<0xFF800000> : vector<2x256xf32>
    %26 = vector.multi_reduction <maximumf>, %25, %cst_18 [1] : vector<2x16x256xf32> to vector<2x256xf32>
    %cst_19 = arith.constant 0.000000e+00 : f32
    %27 = vector.broadcast %cst_19 : f32 to vector<6x256xf32>
    %28 = tpu.concatenate %26, %27 in 0 : vector<2x256xf32>, vector<6x256xf32> -> vector<8x256xf32>
    %29 = arith.truncf %28 : vector<8x256xf32> to vector<8x256xbf16>
    %c0_20 = arith.constant 0 : index
    %c0_21 = arith.constant 0 : index
    %30 = vector.load %arg9[%c0_20, %c0_21] : memref<256x256xbf16, #tpu.memory_space<vmem>>, vector<256x256xbf16>
    %cst_22 = arith.constant dense<0.000000e+00> : vector<8x256xf32>
    %31 = tpu.matmul %29, %30, %cst_22 {dimension_numbers = #tpu.dot_dimension_numbers<[1], [0], [0], [1], [0, 0, 1, 1], [], []>} : vector<8x256xbf16>, vector<256x256xbf16>, vector<8x256xf32> -> vector<8x256xf32>
    %c0_23 = arith.constant 0 : index
    %c0_24 = arith.constant 0 : index
    %32 = vector.load %arg1[%c0_23, %c0_24] : memref<8x256xf32, #tpu.memory_space<vmem>>, vector<8x256xf32>
    %33 = arith.addf %31, %32 : vector<8x256xf32>
    %c0_25 = arith.constant 0 : index
    %c0_26 = arith.constant 0 : index
    %34 = vector.load %arg10[%c0_25, %c0_26] : memref<1x256xf32, #tpu.memory_space<vmem>>, vector<1x256xf32>
    %35 = vector.broadcast %34 : vector<1x256xf32> to vector<8x256xf32>
    %36 = arith.addf %33, %35 : vector<8x256xf32>
    %cst_27 = arith.constant 0.000000e+00 : f32
    %37 = vector.broadcast %cst_27 : f32 to vector<8x256xf32>
    %38 = arith.maximumf %36, %37 : vector<8x256xf32>
    %39 = arith.truncf %38 : vector<8x256xf32> to vector<8x256xbf16>
    %c0_28 = arith.constant 0 : index
    %c0_29 = arith.constant 0 : index
    %40 = vector.load %arg11[%c0_28, %c0_29] : memref<256x128xbf16, #tpu.memory_space<vmem>>, vector<256x128xbf16>
    %cst_30 = arith.constant dense<0.000000e+00> : vector<8x128xf32>
    %41 = tpu.matmul %39, %40, %cst_30 {dimension_numbers = #tpu.dot_dimension_numbers<[1], [0], [0], [1], [0, 0, 1, 1], [], []>} : vector<8x256xbf16>, vector<256x128xbf16>, vector<8x128xf32> -> vector<8x128xf32>
    %c0_31 = arith.constant 0 : index
    %c0_32 = arith.constant 0 : index
    %42 = vector.load %arg12[%c0_31, %c0_32] : memref<1x128xf32, #tpu.memory_space<vmem>>, vector<1x128xf32>
    %43 = vector.broadcast %42 : vector<1x128xf32> to vector<8x128xf32>
    %44 = arith.addf %41, %43 : vector<8x128xf32>
    %cst_33 = arith.constant 0.000000e+00 : f32
    %45 = vector.broadcast %cst_33 : f32 to vector<8x128xf32>
    %46 = arith.maximumf %44, %45 : vector<8x128xf32>
    %47 = arith.truncf %46 : vector<8x128xf32> to vector<8x128xbf16>
    %c0_34 = arith.constant 0 : index
    %c0_35 = arith.constant 0 : index
    %48 = vector.load %arg13[%c0_34, %c0_35] : memref<128x128xbf16, #tpu.memory_space<vmem>>, vector<128x128xbf16>
    %cst_36 = arith.constant dense<0.000000e+00> : vector<8x128xf32>
    %49 = tpu.matmul %47, %48, %cst_36 {dimension_numbers = #tpu.dot_dimension_numbers<[1], [0], [0], [1], [0, 0, 1, 1], [], []>} : vector<8x128xbf16>, vector<128x128xbf16>, vector<8x128xf32> -> vector<8x128xf32>
    %c0_37 = arith.constant 0 : index
    %c0_38 = arith.constant 0 : index
    %50 = vector.load %arg14[%c0_37, %c0_38] : memref<1x128xf32, #tpu.memory_space<vmem>>, vector<1x128xf32>
    %51 = vector.broadcast %50 : vector<1x128xf32> to vector<8x128xf32>
    %52 = arith.addf %49, %51 : vector<8x128xf32>
    %53 = tpu.iota {dimensions = array<i32: 1>} : vector<2x16xi32>
    %c3_i32 = arith.constant 3 : i32
    %54 = vector.broadcast %c3_i32 : i32 to vector<2x16xi32>
    %55 = arith.cmpi slt, %53, %54 : vector<2x16xi32>
    %56 = vector.extract_strided_slice %52 {offsets = [0, 0], sizes = [2, 16], strides = [1, 1]} : vector<8x128xf32> to vector<2x16xf32>
    %cst_39 = arith.constant 0.000000e+00 : f32
    %57 = vector.broadcast %cst_39 : f32 to vector<2x16xf32>
    %58 = arith.select %55, %56, %57 : vector<2x16xi1>, vector<2x16xf32>
    %59 = vector.shape_cast %0 : vector<32x16xf32> to vector<2x16x16xf32>
    %60 = vector.shape_cast %58 : vector<2x16xf32> to vector<2x1x16xf32>
    %61 = vector.broadcast %60 : vector<2x1x16xf32> to vector<2x16x16xf32>
    %62 = arith.subf %59, %61 : vector<2x16x16xf32>
    %63 = vector.shape_cast %62 : vector<2x16x16xf32> to vector<32x16xf32>
    %64 = arith.truncf %63 : vector<32x16xf32> to vector<32x16xbf16>
    %c0_40 = arith.constant 0 : index
    %c0_41 = arith.constant 0 : index
    %65 = vector.load %arg15[%c0_40, %c0_41] : memref<16x128xbf16, #tpu.memory_space<vmem>>, vector<16x128xbf16>
    %cst_42 = arith.constant dense<0.000000e+00> : vector<32x128xf32>
    %66 = tpu.matmul %64, %65, %cst_42 {dimension_numbers = #tpu.dot_dimension_numbers<[1], [0], [0], [1], [0, 0, 1, 1], [], []>} : vector<32x16xbf16>, vector<16x128xbf16>, vector<32x128xf32> -> vector<32x128xf32>
    %c0_43 = arith.constant 0 : index
    %c0_44 = arith.constant 0 : index
    %67 = vector.load %arg16[%c0_43, %c0_44] : memref<1x128xf32, #tpu.memory_space<vmem>>, vector<1x128xf32>
    %68 = vector.broadcast %67 : vector<1x128xf32> to vector<32x128xf32>
    %69 = arith.addf %66, %68 : vector<32x128xf32>
    %cst_45 = arith.constant 0.000000e+00 : f32
    %70 = vector.broadcast %cst_45 : f32 to vector<32x128xf32>
    %71 = arith.maximumf %69, %70 : vector<32x128xf32>
    %72 = arith.truncf %71 : vector<32x128xf32> to vector<32x128xbf16>
    %c0_46 = arith.constant 0 : index
    %c0_47 = arith.constant 0 : index
    %73 = vector.load %arg17[%c0_46, %c0_47] : memref<128x128xbf16, #tpu.memory_space<vmem>>, vector<128x128xbf16>
    %cst_48 = arith.constant dense<0.000000e+00> : vector<32x128xf32>
    %74 = tpu.matmul %72, %73, %cst_48 {dimension_numbers = #tpu.dot_dimension_numbers<[1], [0], [0], [1], [0, 0, 1, 1], [], []>} : vector<32x128xbf16>, vector<128x128xbf16>, vector<32x128xf32> -> vector<32x128xf32>
    %c0_49 = arith.constant 0 : index
    %c0_50 = arith.constant 0 : index
    %75 = vector.load %arg18[%c0_49, %c0_50] : memref<1x128xf32, #tpu.memory_space<vmem>>, vector<1x128xf32>
    %76 = vector.broadcast %75 : vector<1x128xf32> to vector<32x128xf32>
    %77 = arith.addf %74, %76 : vector<32x128xf32>
    %cst_51 = arith.constant 0.000000e+00 : f32
    %78 = vector.broadcast %cst_51 : f32 to vector<32x128xf32>
    %79 = arith.maximumf %77, %78 : vector<32x128xf32>
    %80 = arith.truncf %79 : vector<32x128xf32> to vector<32x128xbf16>
    %c0_52 = arith.constant 0 : index
    %c0_53 = arith.constant 0 : index
    %81 = vector.load %arg19[%c0_52, %c0_53] : memref<128x256xbf16, #tpu.memory_space<vmem>>, vector<128x256xbf16>
    %cst_54 = arith.constant dense<0.000000e+00> : vector<32x256xf32>
    %82 = tpu.matmul %80, %81, %cst_54 {dimension_numbers = #tpu.dot_dimension_numbers<[1], [0], [0], [1], [0, 0, 1, 1], [], []>} : vector<32x128xbf16>, vector<128x256xbf16>, vector<32x256xf32> -> vector<32x256xf32>
    %c0_55 = arith.constant 0 : index
    %c0_56 = arith.constant 0 : index
    %83 = vector.load %arg20[%c0_55, %c0_56] : memref<1x256xf32, #tpu.memory_space<vmem>>, vector<1x256xf32>
    %84 = vector.broadcast %83 : vector<1x256xf32> to vector<32x256xf32>
    %85 = arith.addf %82, %84 : vector<32x256xf32>
    %cst_57 = arith.constant 0.000000e+00 : f32
    %86 = vector.broadcast %cst_57 : f32 to vector<32x256xf32>
    %87 = arith.maximumf %85, %86 : vector<32x256xf32>
    %88 = arith.truncf %87 : vector<32x256xf32> to vector<32x256xbf16>
    %c0_58 = arith.constant 0 : index
    %c0_59 = arith.constant 0 : index
    %89 = vector.load %arg21[%c0_58, %c0_59] : memref<256x512xbf16, #tpu.memory_space<vmem>>, vector<256x512xbf16>
    %cst_60 = arith.constant dense<0.000000e+00> : vector<32x512xf32>
    %90 = tpu.matmul %88, %89, %cst_60 {dimension_numbers = #tpu.dot_dimension_numbers<[1], [0], [0], [1], [0, 0, 1, 1], [], []>} : vector<32x256xbf16>, vector<256x512xbf16>, vector<32x512xf32> -> vector<32x512xf32>
    %c0_61 = arith.constant 0 : index
    %c0_62 = arith.constant 0 : index
    %91 = vector.load %arg22[%c0_61, %c0_62] : memref<1x512xf32, #tpu.memory_space<vmem>>, vector<1x512xf32>
    %92 = vector.broadcast %91 : vector<1x512xf32> to vector<32x512xf32>
    %93 = arith.addf %90, %92 : vector<32x512xf32>
    %cst_63 = arith.constant 0.000000e+00 : f32
    %94 = vector.broadcast %cst_63 : f32 to vector<32x512xf32>
    %95 = arith.maximumf %93, %94 : vector<32x512xf32>
    %96 = vector.shape_cast %95 : vector<32x512xf32> to vector<2x16x512xf32>
    %cst_64 = arith.constant dense<0xFF800000> : vector<2x512xf32>
    %97 = vector.multi_reduction <maximumf>, %96, %cst_64 [1] : vector<2x16x512xf32> to vector<2x512xf32>
    %cst_65 = arith.constant 0.000000e+00 : f32
    %98 = vector.broadcast %cst_65 : f32 to vector<6x512xf32>
    %99 = tpu.concatenate %97, %98 in 0 : vector<2x512xf32>, vector<6x512xf32> -> vector<8x512xf32>
    %100 = arith.truncf %99 : vector<8x512xf32> to vector<8x512xbf16>
    %c0_66 = arith.constant 0 : index
    %c0_67 = arith.constant 0 : index
    %101 = vector.load %arg23[%c0_66, %c0_67] : memref<512x512xbf16, #tpu.memory_space<vmem>>, vector<512x512xbf16>
    %cst_68 = arith.constant dense<0.000000e+00> : vector<8x512xf32>
    %102 = tpu.matmul %100, %101, %cst_68 {dimension_numbers = #tpu.dot_dimension_numbers<[1], [0], [0], [1], [0, 0, 1, 1], [], []>} : vector<8x512xbf16>, vector<512x512xbf16>, vector<8x512xf32> -> vector<8x512xf32>
    %c0_69 = arith.constant 0 : index
    %c0_70 = arith.constant 0 : index
    %103 = vector.load %arg2[%c0_69, %c0_70] : memref<8x512xf32, #tpu.memory_space<vmem>>, vector<8x512xf32>
    %104 = arith.addf %102, %103 : vector<8x512xf32>
    %c0_71 = arith.constant 0 : index
    %c0_72 = arith.constant 0 : index
    %105 = vector.load %arg24[%c0_71, %c0_72] : memref<1x512xf32, #tpu.memory_space<vmem>>, vector<1x512xf32>
    %106 = vector.broadcast %105 : vector<1x512xf32> to vector<8x512xf32>
    %107 = arith.addf %104, %106 : vector<8x512xf32>
    %cst_73 = arith.constant 0.000000e+00 : f32
    %108 = vector.broadcast %cst_73 : f32 to vector<8x512xf32>
    %109 = arith.maximumf %107, %108 : vector<8x512xf32>
    %110 = arith.truncf %109 : vector<8x512xf32> to vector<8x512xbf16>
    %c0_74 = arith.constant 0 : index
    %c0_75 = arith.constant 0 : index
    %111 = vector.load %arg25[%c0_74, %c0_75] : memref<512x256xbf16, #tpu.memory_space<vmem>>, vector<512x256xbf16>
    %cst_76 = arith.constant dense<0.000000e+00> : vector<8x256xf32>
    %112 = tpu.matmul %110, %111, %cst_76 {dimension_numbers = #tpu.dot_dimension_numbers<[1], [0], [0], [1], [0, 0, 1, 1], [], []>} : vector<8x512xbf16>, vector<512x256xbf16>, vector<8x256xf32> -> vector<8x256xf32>
    %c0_77 = arith.constant 0 : index
    %c0_78 = arith.constant 0 : index
    %113 = vector.load %arg26[%c0_77, %c0_78] : memref<1x256xf32, #tpu.memory_space<vmem>>, vector<1x256xf32>
    %114 = vector.broadcast %113 : vector<1x256xf32> to vector<8x256xf32>
    %115 = arith.addf %112, %114 : vector<8x256xf32>
    %cst_79 = arith.constant 0.000000e+00 : f32
    %116 = vector.broadcast %cst_79 : f32 to vector<8x256xf32>
    %117 = arith.maximumf %115, %116 : vector<8x256xf32>
    %118 = arith.truncf %117 : vector<8x256xf32> to vector<8x256xbf16>
    %c0_80 = arith.constant 0 : index
    %c0_81 = arith.constant 0 : index
    %119 = vector.load %arg27[%c0_80, %c0_81] : memref<256x128xbf16, #tpu.memory_space<vmem>>, vector<256x128xbf16>
    %cst_82 = arith.constant dense<0.000000e+00> : vector<8x128xf32>
    %120 = tpu.matmul %118, %119, %cst_82 {dimension_numbers = #tpu.dot_dimension_numbers<[1], [0], [0], [1], [0, 0, 1, 1], [], []>} : vector<8x256xbf16>, vector<256x128xbf16>, vector<8x128xf32> -> vector<8x128xf32>
    %c0_83 = arith.constant 0 : index
    %c0_84 = arith.constant 0 : index
    %121 = vector.load %arg28[%c0_83, %c0_84] : memref<1x128xf32, #tpu.memory_space<vmem>>, vector<1x128xf32>
    %122 = vector.broadcast %121 : vector<1x128xf32> to vector<8x128xf32>
    %123 = arith.addf %120, %122 : vector<8x128xf32>
    %124 = tpu.concatenate %52, %123 in 1 : vector<8x128xf32>, vector<8x128xf32> -> vector<8x256xf32>
    %c0_85 = arith.constant 0 : index
    %c0_86 = arith.constant 0 : index
    %125 = vector.load %arg29[%c0_85, %c0_86] : memref<8x256xf32, #tpu.memory_space<vmem>>, vector<8x256xf32>
    tpu.vector_store %arg29[%c0_85, %c0_86], %124 {strides = array<i32>} : memref<8x256xf32, #tpu.memory_space<vmem>>, vector<8x256xf32>,
    return
  }
}

</mosaic_0001>

<bundles_post_ra>
// kernel: tpu_custom_call.1
= control target key start
LH: loop header
LB: loop body
LE: loop exit
PB: predicated region body
PF: predicated region fallthrough
CT: control target
= control target key end

     0   :  { %s5819_s6 = smov 1   ;;  %s5820_s10 = smov 2   ;;  %s6285_s0 = inlined_call_operand.smem [shape: u32[30], index: -1, kind: input, shape index: {}] }
   0x1   :  { %s5890_s5 = sld [smem:[%s6285_s0]]   ;;  %s5821_s14 = smov 3  }
   0x2   :  { %s5895_s9 = sld [smem:[%s6285_s0 + %s5819_s6]]   ;;  %s5822_s18 = smov 4  }
   0x3   :  { %s5900_s13 = sld [smem:[%s6285_s0 + %s5820_s10]]   ;;  %s5823_s22 = smov 5  }
   0x4   :  { %s5905_s17 = sld [smem:[%s6285_s0 + %s5821_s14]]   ;;  %s5824_s26 = smov 6  }
   0x5   :  { %s5910_s21 = sld [smem:[%s6285_s0 + %s5822_s18]]   ;;  %s5825_s30 = smov 7  }
   0x6   :  { %s5915_s25 = sld [smem:[%s6285_s0 + %s5823_s22]]   ;;  %s5826_s4 = smov 8  }
   0x7   :  { %6296 = sst [smem:[#allocation52_spill]] %s5890_s5  ;;  %s5827_s10 = smov 9  }
   0x8   :  { %6297 = sst [smem:[#allocation53_spill]] %s5895_s9  ;;  %s5828_s15 = smov 10  }
   0x9   :  { %s5920_s29 = sld [smem:[%s6285_s0 + %s5824_s26]]   ;;  %s5829_s20 = smov 11  }
   0xa   :  { %s5925_s3 = sld [smem:[%s6285_s0 + %s5825_s30]]   ;;  %s5830_s26 = smov 12  }
   0xb   :  { %s5930_s8 = sld [smem:[%s6285_s0 + %s5826_s4]]   ;;  %s5831_s1 = smov 13  }
   0xc   :  { %s5935_s14 = sld [smem:[%s6285_s0 + %s5827_s10]]   ;;  %s5832_s7 = smov 14  }
   0xd   :  { %s5940_s19 = sld [smem:[%s6285_s0 + %s5828_s15]]   ;;  %s5833_s15 = smov 15  }
   0xe   :  { %s5945_s24 = sld [smem:[%s6285_s0 + %s5829_s20]]   ;;  %s5834_s22 = smov 16  }
   0xf   :  { %s5950_s30 = sld [smem:[%s6285_s0 + %s5830_s26]]   ;;  %s5835_s28 = smov 17  }
  0x10   :  { %s5955_s6 = sld [smem:[%s6285_s0 + %s5831_s1]]  }
  0x11   :  { %6298 = sst [smem:[#allocation54_spill]] %s5930_s8 }
  0x12   :  { %6299 = sst [smem:[#allocation55_spill]] %s5935_s14 }
  0x13   :  { %s5960_s12 = sld [smem:[%s6285_s0 + %s5832_s7]]   ;;  %s5836_s7 = smov 18  }
  0x14   :  { %6300 = sst [smem:[#allocation56_spill]] %s5945_s24 }
  0x15   :  { %s5965_s20 = sld [smem:[%s6285_s0 + %s5833_s15]]   ;;  %s5837_s15 = smov 19  }
  0x16   :  { %6301 = sst [smem:[#allocation57_spill]] %s5955_s6 }
  0x17   :  { %s5970_s27 = sld [smem:[%s6285_s0 + %s5834_s22]]   ;;  %s5838_s22 = smov 20  }
  0x18   :  { %s5975_s4 = sld [smem:[%s6285_s0 + %s5835_s28]]   ;;  %s5839_s28 = smov 21  }
  0x19   :  { %s5980_s9 = sld [smem:[%s6285_s0 + %s5836_s7]]   ;;  %s5840_s7 = smov 22  }
  0x1a   :  { %s5985_s8 = sld [smem:[%s6285_s0 + %s5837_s15]]   ;;  %s5841_s15 = smov 23  }
  0x1b   :  { %6302 = sst [smem:[#allocation58_spill]] %s5965_s20 }
  0x1c   :  { %s5990_s5 = sld [smem:[%s6285_s0 + %s5838_s22]]   ;;  %s5842_s22 = smov 24  }
  0x1d   :  { %s6000_s20 = sld [smem:[%s6285_s0 + %s5840_s7]]   ;;  %s5844_s7 = smov 26  }
  0x1e   :  { %6303 = sst [smem:[#allocation59_spill]] %s5975_s4 }
  0x1f   :  { %s5995_s4 = sld [smem:[%s6285_s0 + %s5839_s28]]   ;;  %s5843_s28 = smov 25  }
  0x20   :  { %6304 = sst [smem:[#allocation60_spill]] %s5985_s8 }
  0x21   :  { %s6005_s8 = sld [smem:[%s6285_s0 + %s5841_s15]]   ;;  %s5845_s15 = smov 27  }
  0x22   :  { %s6010_s6 = sld [smem:[%s6285_s0 + %s5842_s22]]   ;;  %s5846_s22 = smov 28  }
  0x23   :  { %6306 = sst [smem:[#allocation62_spill]] %s6000_s20 }
  0x24   :  { %s6020_s20 = sld [smem:[%s6285_s0 + %s5844_s7]]  }
  0x25   :  { %6305 = sst [smem:[#allocation61_spill]] %s5995_s4 }
  0x26   :  { %s6015_s4 = sld [smem:[%s6285_s0 + %s5843_s28]]   ;;  %s5847_s28 = smov 29  }
  0x27   :  { %s6025_s24 = sld [smem:[%s6285_s0 + %s5845_s15]]  }
  0x28   :  { %6307 = sst [smem:[#allocation63_spill]] %s6010_s6 }
  0x29   :  { %s6030_s6 = sld [smem:[%s6285_s0 + %s5846_s22]]  }
  0x2a   :  { %s6035_s14 = sld [smem:[%s6285_s0 + %s5847_s28]]  }
  0x2b   :  { %64 = vsyncpa [#allocation3], 0 }
  0x2c   :  { %65 = vsyncpa [#allocation6], 0 }
  0x2d   :  { %66 = vsyncpa [#allocation9], 0 }
  0x2e   :  { %67 = vsyncpa [#allocation12], 0 }
  0x2f   :  { %68 = vsyncpa [#allocation15], 0 }
  0x30   :  { %69 = vsyncpa [#allocation18], 0 }
  0x31   :  { %70 = vsyncpa [#allocation21], 0 }
  0x32   :  { %71 = vsyncpa [#allocation24], 0 }
  0x33   :  { %72 = vsyncpa [#allocation27], 0 }
  0x34   :  { %73 = vsyncpa [#allocation30], 0 }
  0x35   :  { %74 = vsyncpa [#allocation33], 0 }
  0x36   :  { %75 = vsyncpa [#allocation36], 0 }
  0x37   :  { %76 = vsyncpa [#allocation4], 0  ;;  %s5848_s7 = smov [#allocation5]   ;;  %s5265_s0 = scalar_lea.hbm %s5905_s17, 128 }
  0x38   :  { %s96_s10 = sshll.u32 %s5848_s7, 4  ;;  %p5266_p0 = scmp.ne.s32.totalorder %s5905_s17, %s5265_s0  ;;  %s97_s10 = int_to_ptr.vmem [resolvable:$true] %s96_s10 }
  0x39   :  { %p5269_p1 = scmp.lt.u32.totalorder %s5265_s0, %s5905_s17 }
  0x3b   :  { %p5271_p2 = pnand %p5269_p1, %p5266_p0 }
  0x3d   :  { %5274 = shalt.err (!%p5271_p2)
}
  0x3e   :  { %s5275_s11 = scalar_lea.vmem %s97_s10, 128  ;;  %p5280_p4 = scmp.lt.s32.totalorder %s97_s10, %s97_s10 }
  0x3f   :  { %p5276_p3 = scmp.ne.s32.totalorder %s97_s10, %s5275_s11  ;;  %p5281_p5 = scmp.lt.s32.totalorder %s5275_s11, %s5275_s11 }
  0x41   :  { %p5282_p6 = por %p5281_p5, %p5280_p4 }
  0x43   :  { %p5283_p7 = pnand %p5282_p6, %p5276_p3 }
  0x45   :  { %5286 = shalt.err (!%p5283_p7)
}
  0x46   :  { %s5849_s15 = smov 64   ;;  %s5850_s16 = smov 4  }
  0x47   :  { %102 = dma.hbm_to_vmem [thread:$0]  %s5905_s17, 128, %s97_s10, [#allocation6], %s5849_s15, %s5849_s15, %s5850_s16  }
  0x48   :  { %s5851_s18 = smov [#allocation8]   ;;  %s5852_s23 = smov [#allocation11]  }
  0x49   :  { %s118_s22 = sshll.u32 %s5851_s18, 4  ;;  %s140_s26 = sshll.u32 %s5852_s23, 4  ;;  %s119_s22 = int_to_ptr.vmem [resolvable:$true] %s118_s22  ;;  %s141_s26 = int_to_ptr.vmem [resolvable:$true] %s140_s26 }
  0x4a   :  { %s5287_s28 = scalar_lea.hbm %s5915_s25, 1024 }
  0x4b   :  { %p5288_p8 = scmp.ne.s32.totalorder %s5915_s25, %s5287_s28  ;;  %p5291_p9 = scmp.lt.u32.totalorder %s5287_s28, %s5915_s25 }
  0x4d   :  { %p5293_p10 = pnand %p5291_p9, %p5288_p8 }
  0x4f   :  { %5296 = shalt.err (!%p5293_p10)
}
  0x50   :  { %s5297_s1 = scalar_lea.vmem %s119_s22, 1024  ;;  %p5302_p12 = scmp.lt.s32.totalorder %s119_s22, %s119_s22 }
  0x51   :  { %p5298_p11 = scmp.ne.s32.totalorder %s119_s22, %s5297_s1  ;;  %p5303_p13 = scmp.lt.s32.totalorder %s5297_s1, %s5297_s1 }
  0x53   :  { %p5304_p0 = por %p5303_p13, %p5302_p12 }
  0x55   :  { %p5305_p1 = pnand %p5304_p0, %p5298_p11 }
  0x57   :  { %5308 = shalt.err (!%p5305_p1)
}
  0x58   :  { %124 = dma.hbm_to_vmem [thread:$0]  %s5915_s25, 1024, %s119_s22, [#allocation9], %s5849_s15, %s5849_s15, %s5850_s16  }
  0x59   :  { %s5309_s17 = scalar_lea.hbm %s5925_s3, 2048 }
  0x5a   :  { %p5310_p2 = scmp.ne.s32.totalorder %s5925_s3, %s5309_s17  ;;  %p5313_p3 = scmp.lt.u32.totalorder %s5309_s17, %s5925_s3 }
  0x5c   :  { %p5315_p4 = pnand %p5313_p3, %p5310_p2 }
  0x5e   :  { %5318 = shalt.err (!%p5315_p4)
}
  0x5f   :  { %s5319_s2 = scalar_lea.vmem %s141_s26, 2048  ;;  %p5324_p6 = scmp.lt.s32.totalorder %s141_s26, %s141_s26 }
  0x60   :  { %p5320_p5 = scmp.ne.s32.totalorder %s141_s26, %s5319_s2  ;;  %p5325_p7 = scmp.lt.s32.totalorder %s5319_s2, %s5319_s2 }
  0x62   :  { %p5326_p8 = por %p5325_p7, %p5324_p6 }
  0x64   :  { %p5327_p9 = pnand %p5326_p8, %p5320_p5 }
  0x66   :  { %5330 = shalt.err (!%p5327_p9)
}
  0x67   :  { %s5853_s7 = smov 128   ;;  %s5854_s10 = smov 8  }
  0x68   :  { %146 = dma.hbm_to_vmem [thread:$0]  %s5925_s3, 2048, %s141_s26, [#allocation12], %s5853_s7, %s5853_s7, %s5854_s10  }
  0x69   :  { %s5855_s25 = smov [#allocation14]   ;;  %s5856_s11 = smov [#allocation17]  }
  0x6a   :  { %s167_s0 = sshll.u32 %s5855_s25, 4  ;;  %s189_s18 = sshll.u32 %s5856_s11, 4  ;;  %s168_s0 = int_to_ptr.vmem [resolvable:$true] %s167_s0  ;;  %s190_s18 = int_to_ptr.vmem [resolvable:$true] %s189_s18 }
  0x6b   :  { %s5331_s22 = scalar_lea.hbm %s5940_s19, 32 }
  0x6c   :  { %p5332_p10 = scmp.ne.s32.totalorder %s5940_s19, %s5331_s22  ;;  %p5335_p11 = scmp.lt.u32.totalorder %s5331_s22, %s5940_s19 }
  0x6e   :  { %p5337_p12 = pnand %p5335_p11, %p5332_p10 }
  0x70   :  { %5340 = shalt.err (!%p5337_p12)
}
  0x71   :  { %s5341_s23 = scalar_lea.vmem %s168_s0, 32  ;;  %p5346_p0 = scmp.lt.s32.totalorder %s168_s0, %s168_s0 }
  0x72   :  { %p5342_p13 = scmp.ne.s32.totalorder %s168_s0, %s5341_s23  ;;  %p5347_p1 = scmp.lt.s32.totalorder %s5341_s23, %s5341_s23 }
  0x74   :  { %p5348_p2 = por %p5347_p1, %p5346_p0 }
  0x76   :  { %p5349_p3 = pnand %p5348_p2, %p5342_p13 }
  0x78   :  { %5352 = shalt.err (!%p5349_p3)
}
  0x79   :  { %170 = dma.hbm_to_vmem [thread:$0]  %s5940_s19, 32, %s168_s0, [#allocation15]  }
  0x7a   :  { %s5353_s3 = scalar_lea.hbm %s5950_s30, 16 }
  0x7b   :  { %p5354_p4 = scmp.ne.s32.totalorder %s5950_s30, %s5353_s3  ;;  %p5357_p5 = scmp.lt.u32.totalorder %s5353_s3, %s5950_s30 }
  0x7d   :  { %p5359_p6 = pnand %p5357_p5, %p5354_p4 }
  0x7f   :  { %5362 = shalt.err (!%p5359_p6)
}
  0x80   :  { %s5363_s26 = scalar_lea.vmem %s190_s18, 16  ;;  %s5367_s28 = scalar_lea.vmem %s190_s18, 32 }
  0x81   :  { %p5364_p7 = scmp.ne.s32.totalorder %s190_s18, %s5363_s26  ;;  %p5368_p8 = scmp.lt.s32.totalorder %s190_s18, %s190_s18 }
  0x82   :  { %p5369_p9 = scmp.lt.s32.totalorder %s5367_s28, %s5363_s26 }
  0x84   :  { %p5370_p10 = por %p5369_p9, %p5368_p8 }
  0x86   :  { %p5371_p11 = pnand %p5370_p10, %p5364_p7 }
  0x88   :  { %5374 = shalt.err (!%p5371_p11)
}
  0x89   :  { %192 = dma.hbm_to_vmem [thread:$0]  %s5950_s30, 16, %s190_s18, [#allocation18]  }
  0x8a   :  { %s5857_s19 = smov [#allocation20]   ;;  %s5858_s17 = smov [#allocation23]  }
  0x8b   :  { %s211_s1 = sshll.u32 %s5857_s19, 4  ;;  %s233_s2 = sshll.u32 %s5858_s17, 4  ;;  %s212_s1 = int_to_ptr.vmem [resolvable:$true] %s211_s1  ;;  %s234_s2 = int_to_ptr.vmem [resolvable:$true] %s233_s2 }
  0x8c   :  { %s5375_s25 = scalar_lea.hbm %s5960_s12, 16 }
  0x8d   :  { %p5376_p12 = scmp.ne.s32.totalorder %s5960_s12, %s5375_s25  ;;  %p5379_p13 = scmp.lt.u32.totalorder %s5375_s25, %s5960_s12 }
  0x8f   :  { %p5381_p0 = pnand %p5379_p13, %p5376_p12 }
  0x91   :  { %5384 = shalt.err (!%p5381_p0)
}
  0x92   :  { %s5385_s0 = scalar_lea.vmem %s212_s1, 16  ;;  %s5389_s11 = scalar_lea.vmem %s212_s1, 32 }
  0x93   :  { %p5386_p1 = scmp.ne.s32.totalorder %s212_s1, %s5385_s0  ;;  %p5390_p2 = scmp.lt.s32.totalorder %s212_s1, %s212_s1 }
  0x94   :  { %p5391_p3 = scmp.lt.s32.totalorder %s5389_s11, %s5385_s0 }
  0x96   :  { %p5392_p4 = por %p5391_p3, %p5390_p2 }
  0x98   :  { %p5393_p5 = pnand %p5392_p4, %p5386_p1 }
  0x9a   :  { %5396 = shalt.err (!%p5393_p5)
}
  0x9b   :  { %214 = dma.hbm_to_vmem [thread:$0]  %s5960_s12, 16, %s212_s1, [#allocation21]  }
  0x9c   :  { %s5397_s30 = scalar_lea.hbm %s5970_s27, 16 }
  0x9d   :  { %p5398_p6 = scmp.ne.s32.totalorder %s5970_s27, %s5397_s30  ;;  %p5401_p7 = scmp.lt.u32.totalorder %s5397_s30, %s5970_s27 }
  0x9f   :  { %p5403_p8 = pnand %p5401_p7, %p5398_p6 }
  0xa1   :  { %5406 = shalt.err (!%p5403_p8)
}
  0xa2   :  { %s5407_s18 = scalar_lea.vmem %s234_s2, 16  ;;  %s5411_s22 = scalar_lea.vmem %s234_s2, 32 }
  0xa3   :  { %p5408_p9 = scmp.ne.s32.totalorder %s234_s2, %s5407_s18  ;;  %p5412_p10 = scmp.lt.s32.totalorder %s234_s2, %s234_s2 }
  0xa4   :  { %p5413_p11 = scmp.lt.s32.totalorder %s5411_s22, %s5407_s18 }
  0xa6   :  { %p5414_p12 = por %p5413_p11, %p5412_p10 }
  0xa8   :  { %p5415_p13 = pnand %p5414_p12, %p5408_p9 }
  0xaa   :  { %5418 = shalt.err (!%p5415_p13)
}
  0xab   :  { %236 = dma.hbm_to_vmem [thread:$0]  %s5970_s27, 16, %s234_s2, [#allocation24]  }
  0xac   :  { %s5859_s12 = smov [#allocation26]   ;;  %s5860_s3 = smov [#allocation29]  }
  0xad   :  { %s255_s23 = sshll.u32 %s5859_s12, 4  ;;  %s277_s26 = sshll.u32 %s5860_s3, 4  ;;  %s256_s23 = int_to_ptr.vmem [resolvable:$true] %s255_s23  ;;  %s278_s26 = int_to_ptr.vmem [resolvable:$true] %s277_s26 }
  0xae   :  { %s5419_s28 = scalar_lea.hbm %s5980_s9, 16 }
  0xaf   :  { %p5420_p0 = scmp.ne.s32.totalorder %s5980_s9, %s5419_s28  ;;  %p5423_p1 = scmp.lt.u32.totalorder %s5419_s28, %s5980_s9 }
  0xb1   :  { %p5425_p2 = pnand %p5423_p1, %p5420_p0 }
  0xb3   :  { %5428 = shalt.err (!%p5425_p2)
}
  0xb4   :  { %s5429_s19 = scalar_lea.vmem %s256_s23, 16  ;;  %s5433_s1 = scalar_lea.vmem %s256_s23, 32 }
  0xb5   :  { %p5430_p3 = scmp.ne.s32.totalorder %s256_s23, %s5429_s19  ;;  %p5434_p4 = scmp.lt.s32.totalorder %s256_s23, %s256_s23 }
  0xb6   :  { %p5435_p5 = scmp.lt.s32.totalorder %s5433_s1, %s5429_s19 }
  0xb8   :  { %p5436_p6 = por %p5435_p5, %p5434_p4 }
  0xba   :  { %p5437_p7 = pnand %p5436_p6, %p5430_p3 }
  0xbc   :  { %5440 = shalt.err (!%p5437_p7)
}
  0xbd   :  { %258 = dma.hbm_to_vmem [thread:$0]  %s5980_s9, 16, %s256_s23, [#allocation27]  }
  0xbe   :  { %s5441_s27 = scalar_lea.hbm %s5990_s5, 32 }
  0xbf   :  { %p5442_p8 = scmp.ne.s32.totalorder %s5990_s5, %s5441_s27  ;;  %p5445_p9 = scmp.lt.u32.totalorder %s5441_s27, %s5990_s5 }
  0xc1   :  { %p5447_p10 = pnand %p5445_p9, %p5442_p8 }
  0xc3   :  { %5450 = shalt.err (!%p5447_p10)
}
  0xc4   :  { %s5451_s17 = scalar_lea.vmem %s278_s26, 32  ;;  %p5456_p12 = scmp.lt.s32.totalorder %s278_s26, %s278_s26 }
  0xc5   :  { %p5452_p11 = scmp.ne.s32.totalorder %s278_s26, %s5451_s17  ;;  %p5457_p13 = scmp.lt.s32.totalorder %s5451_s17, %s5451_s17 }
  0xc7   :  { %p5458_p0 = por %p5457_p13, %p5456_p12 }
  0xc9   :  { %p5459_p1 = pnand %p5458_p0, %p5452_p11 }
  0xcb   :  { %5462 = shalt.err (!%p5459_p1)
}
  0xcc   :  { %280 = dma.hbm_to_vmem [thread:$0]  %s5990_s5, 32, %s278_s26, [#allocation30]  }
  0xcd   :  { %s5861_s2 = smov [#allocation32]   ;;  %s5862_s25 = smov [#allocation35]  }
  0xce   :  { %s300_s9 = sshll.u32 %s5861_s2, 4  ;;  %s322_s0 = sshll.u32 %s5862_s25, 4  ;;  %s301_s9 = int_to_ptr.vmem [resolvable:$true] %s300_s9  ;;  %s323_s0 = int_to_ptr.vmem [resolvable:$true] %s322_s0 }
  0xcf   :  { %s5463_s11 = scalar_lea.hbm %s6005_s8, 16384 }
  0xd0   :  { %p5464_p2 = scmp.ne.s32.totalorder %s6005_s8, %s5463_s11  ;;  %p5467_p3 = scmp.lt.u32.totalorder %s5463_s11, %s6005_s8 }
  0xd2   :  { %p5469_p4 = pnand %p5467_p3, %p5464_p2 }
  0xd4   :  { %5472 = shalt.err (!%p5469_p4)
}
  0xd5   :  { %s5473_s30 = scalar_lea.vmem %s301_s9, 16384  ;;  %p5478_p6 = scmp.lt.s32.totalorder %s301_s9, %s301_s9 }
  0xd6   :  { %p5474_p5 = scmp.ne.s32.totalorder %s301_s9, %s5473_s30  ;;  %p5479_p7 = scmp.lt.s32.totalorder %s5473_s30, %s5473_s30 }
  0xd8   :  { %p5480_p8 = por %p5479_p7, %p5478_p6 }
  0xda   :  { %p5481_p9 = pnand %p5480_p8, %p5474_p5 }
  0xdc   :  { %5484 = shalt.err (!%p5481_p9)
}
  0xdd   :  { %s5863_s18 = smov 256   ;;  %s5864_s5 = smov 16  }
  0xde   :  { %306 = dma.hbm_to_vmem [thread:$0]  %s6005_s8, 16384, %s301_s9, [#allocation33], %s5863_s18, %s5863_s18, %s5864_s5  }
  0xdf   :  { %s5485_s22 = scalar_lea.hbm %s6015_s4, 8192 }
  0xe0   :  { %p5486_p10 = scmp.ne.s32.totalorder %s6015_s4, %s5485_s22  ;;  %p5489_p11 = scmp.lt.u32.totalorder %s5485_s22, %s6015_s4 }
  0xe2   :  { %p5491_p12 = pnand %p5489_p11, %p5486_p10 }
  0xe4   :  { %5494 = shalt.err (!%p5491_p12)
}
  0xe5   :  { %s5495_s12 = scalar_lea.vmem %s323_s0, 8192  ;;  %p5500_p0 = scmp.lt.s32.totalorder %s323_s0, %s323_s0 }
  0xe6   :  { %p5496_p13 = scmp.ne.s32.totalorder %s323_s0, %s5495_s12  ;;  %p5501_p1 = scmp.lt.s32.totalorder %s5495_s12, %s5495_s12 }
  0xe8   :  { %p5502_p2 = por %p5501_p1, %p5500_p0 }
  0xea   :  { %p5503_p3 = pnand %p5502_p2, %p5496_p13 }
  0xec   :  { %5506 = shalt.err (!%p5503_p3)
}
  0xed   :  { %328 = dma.hbm_to_vmem [thread:$0]  %s6015_s4, 8192, %s323_s0, [#allocation36], %s5853_s7, %s5853_s7, %s5854_s10  }
  0xee   :  { %s5865_s8 = smov [#allocation2]   ;;  %s5866_s3 = smov [#allocation7]  }
  0xef   :  { %s87_s23 = sshll.u32 %s5865_s8, 4  ;;  %s109_s26 = sshll.u32 %s5866_s3, 4  ;;  %s88_s23 = int_to_ptr.vmem [resolvable:$true] %s87_s23  ;;  %s110_s26 = int_to_ptr.vmem [resolvable:$true] %s109_s26 }
  0xf0   :  { %s5507_s28 = scalar_lea.hbm %s5900_s13, 512 }
  0xf1   :  { %p5508_p4 = scmp.ne.s32.totalorder %s5900_s13, %s5507_s28  ;;  %p5511_p5 = scmp.lt.u32.totalorder %s5507_s28, %s5900_s13 }
  0xf3   :  { %p5513_p6 = pnand %p5511_p5, %p5508_p4 }
  0xf5   :  { %5516 = shalt.err (!%p5513_p6)
}
  0xf6   :  { %s5517_s19 = scalar_lea.vmem %s88_s23, 512  ;;  %p5522_p8 = scmp.lt.s32.totalorder %s88_s23, %s88_s23 }
  0xf7   :  { %p5518_p7 = scmp.ne.s32.totalorder %s88_s23, %s5517_s19  ;;  %p5523_p9 = scmp.lt.s32.totalorder %s5517_s19, %s5517_s19 }
  0xf9   :  { %p5524_p10 = por %p5523_p9, %p5522_p8 }
  0xfb   :  { %p5525_p11 = pnand %p5524_p10, %p5518_p7 }
  0xfd   :  { %5528 = shalt.err (!%p5525_p11)
}
  0xfe   :  { %90 = dma.hbm_to_vmem [thread:$0]  %s5900_s13, 512, %s88_s23, [#allocation3]  }
  0xff   :  { %s5529_s4 = scalar_lea.hbm %s5910_s21, 16 }
 0x100   :  { %p5530_p12 = scmp.ne.s32.totalorder %s5910_s21, %s5529_s4  ;;  %p5533_p13 = scmp.lt.u32.totalorder %s5529_s4, %s5910_s21 }
 0x102   :  { %p5535_p0 = pnand %p5533_p13, %p5530_p12 }
 0x104   :  { %5538 = shalt.err (!%p5535_p0)
}
 0x105   :  { %s5539_s1 = scalar_lea.vmem %s110_s26, 16  ;;  %s5543_s27 = scalar_lea.vmem %s110_s26, 32 }
 0x106   :  { %p5540_p1 = scmp.ne.s32.totalorder %s110_s26, %s5539_s1  ;;  %p5544_p2 = scmp.lt.s32.totalorder %s110_s26, %s110_s26 }
 0x107   :  { %p5545_p3 = scmp.lt.s32.totalorder %s5543_s27, %s5539_s1 }
 0x109   :  { %p5546_p4 = por %p5545_p3, %p5544_p2 }
 0x10b   :  { %p5547_p5 = pnand %p5546_p4, %p5540_p1 }
 0x10d   :  { %5550 = shalt.err (!%p5547_p5)
}
 0x10e   :  { %112 = dma.hbm_to_vmem [thread:$0]  %s5910_s21, 16, %s110_s26, [#allocation6]  }
 0x10f   :  { %s5867_s13 = smov [#allocation10]   ;;  %s5868_s2 = smov [#allocation13]  }
 0x110   :  { %s131_s17 = sshll.u32 %s5867_s13, 4  ;;  %s154_s9 = sshll.u32 %s5868_s2, 4  ;;  %s132_s17 = int_to_ptr.vmem [resolvable:$true] %s131_s17  ;;  %s155_s9 = int_to_ptr.vmem [resolvable:$true] %s154_s9 }
 0x111   :  { %s5551_s25 = scalar_lea.hbm %s5920_s29, 16 }
 0x112   :  { %p5552_p6 = scmp.ne.s32.totalorder %s5920_s29, %s5551_s25  ;;  %p5555_p7 = scmp.lt.u32.totalorder %s5551_s25, %s5920_s29 }
 0x114   :  { %p5557_p8 = pnand %p5555_p7, %p5552_p6 }
 0x116   :  { %5560 = shalt.err (!%p5557_p8)
}
 0x117   :  { %s5561_s0 = scalar_lea.vmem %s132_s17, 16  ;;  %s5565_s11 = scalar_lea.vmem %s132_s17, 32 }
 0x118   :  { %p5562_p9 = scmp.ne.s32.totalorder %s132_s17, %s5561_s0  ;;  %p5566_p10 = scmp.lt.s32.totalorder %s132_s17, %s132_s17 }
 0x119   :  { %p5567_p11 = scmp.lt.s32.totalorder %s5565_s11, %s5561_s0 }
 0x11b   :  { %p5568_p12 = por %p5567_p11, %p5566_p10 }
 0x11d   :  { %p5569_p13 = pnand %p5568_p12, %p5562_p9 }
 0x11f   :  { %5572 = shalt.err (!%p5569_p13)
}
 0x120   :  { %s6308_s21 = sld [smem:[#allocation55_spill]] }
 0x121   :  { %134 = dma.hbm_to_vmem [thread:$0]  %s5920_s29, 16, %s132_s17, [#allocation9]  }
 0x126   :  { %s5573_s30 = scalar_lea.hbm %s6308_s21, 4096 }
 0x127   :  { %p5574_p0 = scmp.ne.s32.totalorder %s6308_s21, %s5573_s30  ;;  %p5577_p1 = scmp.lt.u32.totalorder %s5573_s30, %s6308_s21 }
 0x129   :  { %p5579_p2 = pnand %p5577_p1, %p5574_p0 }
 0x12b   :  { %5582 = shalt.err (!%p5579_p2)
}
 0x12c   :  { %s5583_s22 = scalar_lea.vmem %s155_s9, 4096  ;;  %p5588_p4 = scmp.lt.s32.totalorder %s155_s9, %s155_s9 }
 0x12d   :  { %p5584_p3 = scmp.ne.s32.totalorder %s155_s9, %s5583_s22  ;;  %p5589_p5 = scmp.lt.s32.totalorder %s5583_s22, %s5583_s22 }
 0x12f   :  { %p5590_p6 = por %p5589_p5, %p5588_p4 }
 0x131   :  { %p5591_p7 = pnand %p5590_p6, %p5584_p3 }
 0x133   :  { %5594 = shalt.err (!%p5591_p7)
}
 0x134   :  { %s6309_s12 = sld [smem:[#allocation56_spill]]  ;;  %s5869_s29 = smov [#allocation16]  }
 0x135   :  { %160 = dma.hbm_to_vmem [thread:$0]  %s6308_s21, 4096, %s155_s9, [#allocation12], %s5853_s7, %s5853_s7, %s5854_s10  }
 0x136   :  { %s176_s8 = sshll.u32 %s5869_s29, 4  ;;  %s5870_s23 = smov [#allocation19]   ;;  %s177_s8 = int_to_ptr.vmem [resolvable:$true] %s176_s8 }
 0x137   :  { %s198_s3 = sshll.u32 %s5870_s23, 4  ;;  %s199_s3 = int_to_ptr.vmem [resolvable:$true] %s198_s3 }
 0x13a   :  { %s5595_s26 = scalar_lea.hbm %s6309_s12, 2048 }
 0x13b   :  { %p5596_p8 = scmp.ne.s32.totalorder %s6309_s12, %s5595_s26  ;;  %p5599_p9 = scmp.lt.u32.totalorder %s5595_s26, %s6309_s12 }
 0x13d   :  { %p5601_p10 = pnand %p5599_p9, %p5596_p8 }
 0x13f   :  { %5604 = shalt.err (!%p5601_p10)
}
 0x140   :  { %s5605_s28 = scalar_lea.vmem %s177_s8, 2048  ;;  %p5610_p12 = scmp.lt.s32.totalorder %s177_s8, %s177_s8 }
 0x141   :  { %p5606_p11 = scmp.ne.s32.totalorder %s177_s8, %s5605_s28  ;;  %p5611_p13 = scmp.lt.s32.totalorder %s5605_s28, %s5605_s28 }
 0x143   :  { %p5612_p0 = por %p5611_p13, %p5610_p12 }
 0x145   :  { %p5613_p1 = pnand %p5612_p0, %p5606_p11 }
 0x147   :  { %5616 = shalt.err (!%p5613_p1)
}
 0x148   :  { %s6310_s19 = sld [smem:[#allocation57_spill]] }
 0x149   :  { %182 = dma.hbm_to_vmem [thread:$0]  %s6309_s12, 2048, %s177_s8, [#allocation15], %s5849_s15, %s5849_s15, %s5850_s16  }
 0x14e   :  { %s5617_s4 = scalar_lea.hbm %s6310_s19, 1024 }
 0x14f   :  { %p5618_p2 = scmp.ne.s32.totalorder %s6310_s19, %s5617_s4  ;;  %p5621_p3 = scmp.lt.u32.totalorder %s5617_s4, %s6310_s19 }
 0x151   :  { %p5623_p4 = pnand %p5621_p3, %p5618_p2 }
 0x153   :  { %5626 = shalt.err (!%p5623_p4)
}
 0x154   :  { %s5627_s1 = scalar_lea.vmem %s199_s3, 1024  ;;  %p5632_p6 = scmp.lt.s32.totalorder %s199_s3, %s199_s3 }
 0x155   :  { %p5628_p5 = scmp.ne.s32.totalorder %s199_s3, %s5627_s1  ;;  %p5633_p7 = scmp.lt.s32.totalorder %s5627_s1, %s5627_s1 }
 0x157   :  { %p5634_p8 = por %p5633_p7, %p5632_p6 }
 0x159   :  { %p5635_p9 = pnand %p5634_p8, %p5628_p5 }
 0x15b   :  { %5638 = shalt.err (!%p5635_p9)
}
 0x15c   :  { %s6311_s27 = sld [smem:[#allocation58_spill]]  ;;  %s5871_s13 = smov [#allocation22]  }
 0x15d   :  { %204 = dma.hbm_to_vmem [thread:$0]  %s6310_s19, 1024, %s199_s3, [#allocation18], %s5849_s15, %s5849_s15, %s5850_s16  }
 0x15e   :  { %s220_s17 = sshll.u32 %s5871_s13, 4  ;;  %s5872_s2 = smov [#allocation25]   ;;  %s221_s17 = int_to_ptr.vmem [resolvable:$true] %s220_s17 }
 0x15f   :  { %s242_s9 = sshll.u32 %s5872_s2, 4  ;;  %s243_s9 = int_to_ptr.vmem [resolvable:$true] %s242_s9 }
 0x162   :  { %s5639_s25 = scalar_lea.hbm %s6311_s27, 128 }
 0x163   :  { %p5640_p10 = scmp.ne.s32.totalorder %s6311_s27, %s5639_s25  ;;  %p5643_p11 = scmp.lt.u32.totalorder %s5639_s25, %s6311_s27 }
 0x165   :  { %p5645_p12 = pnand %p5643_p11, %p5640_p10 }
 0x167   :  { %5648 = shalt.err (!%p5645_p12)
}
 0x168   :  { %s5649_s0 = scalar_lea.vmem %s221_s17, 128  ;;  %p5654_p0 = scmp.lt.s32.totalorder %s221_s17, %s221_s17 }
 0x169   :  { %p5650_p13 = scmp.ne.s32.totalorder %s221_s17, %s5649_s0  ;;  %p5655_p1 = scmp.lt.s32.totalorder %s5649_s0, %s5649_s0 }
 0x16b   :  { %p5656_p2 = por %p5655_p1, %p5654_p0 }
 0x16d   :  { %p5657_p3 = pnand %p5656_p2, %p5650_p13 }
 0x16f   :  { %5660 = shalt.err (!%p5657_p3)
}
 0x170   :  { %s6312_s11 = sld [smem:[#allocation59_spill]] }
 0x171   :  { %226 = dma.hbm_to_vmem [thread:$0]  %s6311_s27, 128, %s221_s17, [#allocation21], %s5849_s15, %s5849_s15, %s5850_s16  }
 0x176   :  { %s5661_s21 = scalar_lea.hbm %s6312_s11, 1024 }
 0x177   :  { %p5662_p4 = scmp.ne.s32.totalorder %s6312_s11, %s5661_s21  ;;  %p5665_p5 = scmp.lt.u32.totalorder %s5661_s21, %s6312_s11 }
 0x179   :  { %p5667_p6 = pnand %p5665_p5, %p5662_p4 }
 0x17b   :  { %5670 = shalt.err (!%p5667_p6)
}
 0x17c   :  { %s5671_s30 = scalar_lea.vmem %s243_s9, 1024  ;;  %p5676_p8 = scmp.lt.s32.totalorder %s243_s9, %s243_s9 }
 0x17d   :  { %p5672_p7 = scmp.ne.s32.totalorder %s243_s9, %s5671_s30  ;;  %p5677_p9 = scmp.lt.s32.totalorder %s5671_s30, %s5671_s30 }
 0x17f   :  { %p5678_p10 = por %p5677_p9, %p5676_p8 }
 0x181   :  { %p5679_p11 = pnand %p5678_p10, %p5672_p7 }
 0x183   :  { %5682 = shalt.err (!%p5679_p11)
}
 0x184   :  { %s6313_s22 = sld [smem:[#allocation60_spill]]  ;;  %s5873_s12 = smov [#allocation28]  }
 0x185   :  { %248 = dma.hbm_to_vmem [thread:$0]  %s6312_s11, 1024, %s243_s9, [#allocation24], %s5849_s15, %s5849_s15, %s5850_s16  }
 0x186   :  { %s264_s29 = sshll.u32 %s5873_s12, 4  ;;  %s5874_s8 = smov [#allocation31]   ;;  %s265_s29 = int_to_ptr.vmem [resolvable:$true] %s264_s29 }
 0x187   :  { %s286_s23 = sshll.u32 %s5874_s8, 4  ;;  %s287_s23 = int_to_ptr.vmem [resolvable:$true] %s286_s23 }
 0x18a   :  { %s5683_s3 = scalar_lea.hbm %s6313_s22, 2048 }
 0x18b   :  { %p5684_p12 = scmp.ne.s32.totalorder %s6313_s22, %s5683_s3  ;;  %p5687_p13 = scmp.lt.u32.totalorder %s5683_s3, %s6313_s22 }
 0x18d   :  { %p5689_p0 = pnand %p5687_p13, %p5684_p12 }
 0x18f   :  { %5692 = shalt.err (!%p5689_p0)
}
 0x190   :  { %s5693_s26 = scalar_lea.vmem %s265_s29, 2048  ;;  %p5698_p2 = scmp.lt.s32.totalorder %s265_s29, %s265_s29 }
 0x191   :  { %p5694_p1 = scmp.ne.s32.totalorder %s265_s29, %s5693_s26  ;;  %p5699_p3 = scmp.lt.s32.totalorder %s5693_s26, %s5693_s26 }
 0x193   :  { %p5700_p4 = por %p5699_p3, %p5698_p2 }
 0x195   :  { %p5701_p5 = pnand %p5700_p4, %p5694_p1 }
 0x197   :  { %5704 = shalt.err (!%p5701_p5)
}
 0x198   :  { %s6314_s15 = sld [smem:[#allocation61_spill]] }
 0x199   :  { %270 = dma.hbm_to_vmem [thread:$0]  %s6313_s22, 2048, %s265_s29, [#allocation27], %s5853_s7, %s5853_s7, %s5854_s10  }
 0x19e   :  { %s5705_s16 = scalar_lea.hbm %s6314_s15, 8192 }
 0x19f   :  { %p5706_p6 = scmp.ne.s32.totalorder %s6314_s15, %s5705_s16  ;;  %p5709_p7 = scmp.lt.u32.totalorder %s5705_s16, %s6314_s15 }
 0x1a1   :  { %p5711_p8 = pnand %p5709_p7, %p5706_p6 }
 0x1a3   :  { %5714 = shalt.err (!%p5711_p8)
}
 0x1a4   :  { %s5715_s28 = scalar_lea.vmem %s287_s23, 8192  ;;  %p5720_p10 = scmp.lt.s32.totalorder %s287_s23, %s287_s23 }
 0x1a5   :  { %p5716_p9 = scmp.ne.s32.totalorder %s287_s23, %s5715_s28  ;;  %p5721_p11 = scmp.lt.s32.totalorder %s5715_s28, %s5715_s28 }
 0x1a7   :  { %p5722_p12 = por %p5721_p11, %p5720_p10 }
 0x1a9   :  { %p5723_p13 = pnand %p5722_p12, %p5716_p9 }
 0x1ab   :  { %5726 = shalt.err (!%p5723_p13)
}
 0x1ac   :  { %s6315_s19 = sld [smem:[#allocation63_spill]]  ;;  %s5875_s7 = smov [#allocation34]  }
 0x1ad   :  { %292 = dma.hbm_to_vmem [thread:$0]  %s6314_s15, 8192, %s287_s23, [#allocation30], %s5863_s18, %s5863_s18, %s5864_s5  }
 0x1ae   :  { %s313_s10 = sshll.u32 %s5875_s7, 4  ;;  %s5876_s4 = smov [#allocation37]   ;;  %s314_s10 = int_to_ptr.vmem [resolvable:$true] %s313_s10 }
 0x1af   :  { %s335_s1 = sshll.u32 %s5876_s4, 4  ;;  %s336_s1 = int_to_ptr.vmem [resolvable:$true] %s335_s1 }
 0x1b2   :  { %s5727_s27 = scalar_lea.hbm %s6315_s19, 64 }
 0x1b3   :  { %p5728_p0 = scmp.ne.s32.totalorder %s6315_s19, %s5727_s27  ;;  %p5731_p1 = scmp.lt.u32.totalorder %s5727_s27, %s6315_s19 }
 0x1b5   :  { %p5733_p2 = pnand %p5731_p1, %p5728_p0 }
 0x1b7   :  { %5736 = shalt.err (!%p5733_p2)
}
 0x1b8   :  { %s5737_s13 = scalar_lea.vmem %s314_s10, 64  ;;  %p5742_p4 = scmp.lt.s32.totalorder %s314_s10, %s314_s10 }
 0x1b9   :  { %p5738_p3 = scmp.ne.s32.totalorder %s314_s10, %s5737_s13  ;;  %p5743_p5 = scmp.lt.s32.totalorder %s5737_s13, %s5737_s13 }
 0x1bb   :  { %p5744_p6 = por %p5743_p5, %p5742_p4 }
 0x1bd   :  { %p5745_p7 = pnand %p5744_p6, %p5738_p3 }
 0x1bf   :  { %5748 = shalt.err (!%p5745_p7)
}
 0x1c0   :  { %316 = dma.hbm_to_vmem [thread:$0]  %s6315_s19, 64, %s314_s10, [#allocation33]  }
 0x1c1   :  { %s5749_s18 = scalar_lea.hbm %s6020_s20, 32 }
 0x1c2   :  { %p5750_p8 = scmp.ne.s32.totalorder %s6020_s20, %s5749_s18  ;;  %p5753_p9 = scmp.lt.u32.totalorder %s5749_s18, %s6020_s20 }
 0x1c4   :  { %p5755_p10 = pnand %p5753_p9, %p5750_p8 }
 0x1c6   :  { %5758 = shalt.err (!%p5755_p10)
}
 0x1c7   :  { %s5759_s5 = scalar_lea.vmem %s336_s1, 32  ;;  %p5764_p12 = scmp.lt.s32.totalorder %s336_s1, %s336_s1 }
 0x1c8   :  { %p5760_p11 = scmp.ne.s32.totalorder %s336_s1, %s5759_s5  ;;  %p5765_p13 = scmp.lt.s32.totalorder %s5759_s5, %s5759_s5 }
 0x1ca   :  { %p5766_p0 = por %p5765_p13, %p5764_p12 }
 0x1cc   :  { %p5767_p1 = pnand %p5766_p0, %p5760_p11 }
 0x1ce   :  { %5770 = shalt.err (!%p5767_p1)
}
 0x1cf   :  { %338 = dma.hbm_to_vmem [thread:$0]  %s6020_s20, 32, %s336_s1, [#allocation36]  }
 0x1d0   :  { %5793 = dma.done.wait [#allocation3], 512  }
 0x1d1   :  { %5794 = vsyncadd [#allocation3], 4294966784 }
 0x1d2   :  { %5795 = dma.done.wait [#allocation6], 144  }
 0x1d3   :  { %5796 = vsyncadd [#allocation6], 4294967152 }
 0x1d4   :  { %5797 = dma.done.wait [#allocation9], 1040  }
 0x1d5   :  { %5798 = vsyncadd [#allocation9], 4294966256 }
 0x1d6   :  { %5799 = dma.done.wait [#allocation12], 6144  }
 0x1d7   :  { %5800 = vsyncadd [#allocation12], 4294961152 }
 0x1d8   :  { %5801 = dma.done.wait [#allocation15], 2080  }
 0x1d9   :  { %5802 = vsyncadd [#allocation15], 4294965216 }
 0x1da   :  { %5803 = dma.done.wait [#allocation18], 1040  }
 0x1db   :  { %5804 = vsyncadd [#allocation18], 4294966256 }
 0x1dc   :  { %5805 = dma.done.wait [#allocation21], 144  }
 0x1dd   :  { %5806 = vsyncadd [#allocation21], 4294967152 }
 0x1de   :  { %5807 = dma.done.wait [#allocation24], 1040  }
 0x1df   :  { %5808 = vsyncadd [#allocation24], 4294966256 }
 0x1e0   :  { %5809 = dma.done.wait [#allocation27], 2064  }
 0x1e1   :  { %5810 = vsyncadd [#allocation27], 4294965232 }
 0x1e2   :  { %5811 = dma.done.wait [#allocation30], 8224  }
 0x1e3   :  { %5812 = vsyncadd [#allocation30], 4294959072 }
 0x1e4   :  { %5813 = dma.done.wait [#allocation33], 16448  }
 0x1e5   :  { %5814 = vsyncadd [#allocation33], 4294950848 }
 0x1e6   :  { %5815 = dma.done.wait [#allocation36], 8224  }
 0x1e7   :  { %5816 = vsyncadd [#allocation36], 4294959072  ;;  %s6316_s20 = sld [smem:[#allocation52_spill]]  ;;  %v4723_v0 = vld [vmem:[#allocation5] sm:$0xff]   ;;  %vm434_vm0 = vcmask 130048   ;;  %v4724_v7 = vld [vmem:[#allocation8] sm:$0xff]  }
 0x1e8   :  { %4582 = vmatprep.subr.bf16.mxu1 %v4723_v0  ;;  %v4725_v8 = vld [vmem:[#allocation8 + $0x8] sm:$0xff]   ;;  %v4726_v9 = vld [vmem:[#allocation8 + $0x10] sm:$0xff]   ;;  %v4727_v10 = vld [vmem:[#allocation8 + $0x18] sm:$0xff]   ;;  %v5877_v46 = vmov 0   ;;  %s6317_s17 = sld [smem:[#allocation54_spill]]  ;;  %vm823_vm1 = vcmask 1041409  }
 0x1e9   :  { %4583 = vmatpush3.bf16.msra.mxu1 %v4723_v0  ;;  %v4728_v11 = vld [vmem:[#allocation8 + $0x20] sm:$0xff]   ;;  %v4729_v12 = vld [vmem:[#allocation8 + $0x28] sm:$0xff]   ;;  %v4730_v13 = vld [vmem:[#allocation8 + $0x30] sm:$0xff]   ;;  %vm828_vm2 = vcmask 1041408   ;;  %s6320_s2 = sld [smem:[#allocation53_spill]]  ;;  %vm5879_vm4 = vmmov 0  }
 0x1ea   :  { %4588 = vmatprep.subr.bf16.mxu1 %v4724_v7  ;;  %v4731_v14 = vld [vmem:[#allocation8 + $0x38] sm:$0xff]   ;;  %v4734_v15 = vld [vmem:[#allocation11 + $0x4] ss:$8 sps:$4 sm:$0xff]   ;;  %v4732_v31 = vld [vmem:[#allocation11] ss:$8 sps:$4 sm:$0xff]   ;;  %s6321_s9 = sld [smem:[#allocation62_spill]] }
 0x1eb   :  { %v4084_v16 = vld [vmem:[#allocation7] ss:$0 sm:$0xff]  ;;  %v4735_v33 = vld [vmem:[#allocation11 + $0x10] ss:$8 sps:$4 sm:$0xff]   ;;  %v4740_v34 = vld [vmem:[#allocation11 + $0x24] ss:$8 sps:$4 sm:$0xff]  }
 0x1ec   :  { %v4737_v32 = vld [vmem:[#allocation11 + $0x14] ss:$8 sps:$4 sm:$0xff]   ;;  %v4738_v35 = vld [vmem:[#allocation11 + $0x20] ss:$8 sps:$4 sm:$0xff]   ;;  %v4741_v37 = vld [vmem:[#allocation11 + $0x30] ss:$8 sps:$4 sm:$0xff]  }
 0x1ed   :  { %v413_v1 = vld [vmem:[%s6316_s20] sm:$0xff]  ;;  %v414_v2 = vld [vmem:[%s6316_s20 + $0x8] sm:$0xff]  ;;  %v415_v3 = vld [vmem:[%s6316_s20 + $0x10] sm:$0xff] }
 0x1ee   :  { %v417_v4 = vpack.c.bf16 %v414_v2, %v413_v1  ;;  %v416_v5 = vld [vmem:[%s6316_s20 + $0x18] sm:$0xff]  ;;  %v4743_v36 = vld [vmem:[#allocation11 + $0x34] ss:$8 sps:$4 sm:$0xff]   ;;  %v4744_v39 = vld [vmem:[#allocation11 + $0x40] ss:$8 sps:$4 sm:$0xff]  }
 0x1ef   :  { %v418_v6 = vpack.c.bf16 %v416_v5, %v415_v3  ;;  %v4746_v38 = vld [vmem:[#allocation11 + $0x44] ss:$8 sps:$4 sm:$0xff]   ;;  %v4749_v40 = vld [vmem:[#allocation11 + $0x54] ss:$8 sps:$4 sm:$0xff]   ;;  %v4747_v41 = vld [vmem:[#allocation11 + $0x50] ss:$8 sps:$4 sm:$0xff]  }
 0x1f0   :  { %4584 = vmatprep.mubr.msk.bf16.mxu1 %vm434_vm0, %v417_v4  ;;  %v4752_v42 = vld [vmem:[#allocation11 + $0x64] ss:$8 sps:$4 sm:$0xff]   ;;  %v4750_v43 = vld [vmem:[#allocation11 + $0x60] ss:$8 sps:$4 sm:$0xff]   ;;  %v4755_v44 = vld [vmem:[#allocation11 + $0x74] ss:$8 sps:$4 sm:$0xff]  }
 0x1f1   :  { %4585 = vmatmul.mubr.msk.bf16.vlgmr.msra.gmra.mrb[0].mxu1 %vm434_vm0, %v418_v6  ;;  %v4753_v45 = vld [vmem:[#allocation11 + $0x70] ss:$8 sps:$4 sm:$0xff]   ;;  %v4758_v47 = vld [vmem:[#allocation13 + $0x4] ss:$8 sps:$4 sm:$0xff]   ;;  %v4088_v48 = vld [vmem:[#allocation10] ss:$0 sm:$0xff] }
 0x1f2   :  { %4589 = vmatpush3.bf16.msra.mxu1 %v4724_v7  ;;  %v4756_v62 = vld [vmem:[#allocation13] ss:$8 sps:$4 sm:$0xff]   ;;  %v4761_v0 = vld [vmem:[#allocation13 + $0x14] ss:$8 sps:$4 sm:$0xff]   ;;  %v4759_v1 = vld [vmem:[#allocation13 + $0x10] ss:$8 sps:$4 sm:$0xff]  }
 0x1f3   :  { %4590 = vmatprep.subr.bf16.mxu1 %v4725_v8  ;;  %v4764_v2 = vld [vmem:[#allocation13 + $0x24] ss:$8 sps:$4 sm:$0xff]   ;;  %v4762_v3 = vld [vmem:[#allocation13 + $0x20] ss:$8 sps:$4 sm:$0xff]   ;;  %v4767_v4 = vld [vmem:[#allocation13 + $0x34] ss:$8 sps:$4 sm:$0xff]  }
 0x1f4   :  { %v4765_v5 = vld [vmem:[#allocation13 + $0x30] ss:$8 sps:$4 sm:$0xff]   ;;  %v4770_v6 = vld [vmem:[#allocation13 + $0x44] ss:$8 sps:$4 sm:$0xff]   ;;  %v4768_v7 = vld [vmem:[#allocation13 + $0x40] ss:$8 sps:$4 sm:$0xff]  }
 0x1f5   :  { %vm6187_vm3 = vmpackc.low %vm828_vm2, %vm828_vm2 }
 0x1f6   :  { %4591 = vmatpush3.bf16.msra.mxu1 %v4725_v8  ;;  %v4773_v8 = vld [vmem:[#allocation13 + $0x54] ss:$8 sps:$4 sm:$0xff]  }
 0x1f7   :  { %4592 = vmatprep.subr.bf16.mxu1 %v4726_v9 }
 0x1fa   :  { %4593 = vmatpush3.bf16.msra.mxu1 %v4726_v9  ;;  %v4771_v9 = vld [vmem:[#allocation13 + $0x50] ss:$8 sps:$4 sm:$0xff]  }
 0x1fb   :  { %4594 = vmatprep.subr.bf16.mxu1 %v4727_v10 }
 0x1fe   :  { %4595 = vmatpush3.bf16.msra.mxu1 %v4727_v10  ;;  %v4776_v10 = vld [vmem:[#allocation13 + $0x64] ss:$8 sps:$4 sm:$0xff]  }
 0x1ff   :  { %4596 = vmatprep.subr.bf16.mxu1 %v4728_v11 }
 0x202   :  { %4597 = vmatpush3.bf16.msra.mxu1 %v4728_v11  ;;  %v4774_v11 = vld [vmem:[#allocation13 + $0x60] ss:$8 sps:$4 sm:$0xff]  }
 0x203   :  { %4598 = vmatprep.subr.bf16.mxu1 %v4729_v12 }
 0x206   :  { %4599 = vmatpush3.bf16.msra.mxu1 %v4729_v12  ;;  %v4779_v12 = vld [vmem:[#allocation13 + $0x74] ss:$8 sps:$4 sm:$0xff]  }
 0x207   :  { %4600 = vmatprep.subr.bf16.mxu1 %v4730_v13 }
 0x20a   :  { %4601 = vmatpush3.bf16.msra.mxu1 %v4730_v13  ;;  %v4777_v13 = vld [vmem:[#allocation13 + $0x70] ss:$8 sps:$4 sm:$0xff]  }
 0x20b   :  { %4602 = vmatprep.subr.bf16.mxu1 %v4731_v14 }
 0x20e   :  { %4603 = vmatpush3.bf16.msra.mxu1 %v4731_v14  ;;  %v4782_v14 = vld [vmem:[#allocation13 + $0x84] ss:$8 sps:$4 sm:$0xff]  }
 0x20f   :  { %730 = vmatprep.subr.bf16.mxu1 %v4734_v15  ;;  %v4780_v15 = vld [vmem:[#allocation13 + $0x80] ss:$8 sps:$4 sm:$0xff]  }
 0x2c4   :  { %v4586_v17 = vpop.f32.mrb[0].mxu1 }
 0x2c5   :  { %v484_v18 = vadd.f32 %v4586_v17, %v4084_v16  ;;  %v475_v19 = vpop.f32.mrb[1].mxu1  ;;  %v4783_v17 = vld [vmem:[#allocation13 + $0x90] ss:$8 sps:$4 sm:$0xff]  }
 0x2c6   :  { %v476_v20 = vadd.f32 %v4084_v16, %v475_v19  ;;  %v4587_v21 = vpop.f32.mrb[2].mxu1  ;;  %v4786_v19 = vld [vmem:[#allocation13 + $0xa0] ss:$8 sps:$4 sm:$0xff]  }
 0x2c7   :  { %v487_v22 = vadd.f32 %v4587_v21, %v4084_v16  ;;  %v478_v23 = vpop.f32.mrb[3].mxu1  ;;  %v492_v25 = vmax.f32 %v484_v18, 0.0  ;;  %v4788_v18 = vld [vmem:[#allocation13 + $0xa4] ss:$8 sps:$4 sm:$0xff]   ;;  %v4789_v21 = vld [vmem:[#allocation13 + $0xb0] ss:$8 sps:$4 sm:$0xff]  }
 0x2c8   :  { %v479_v24 = vadd.f32 %v4084_v16, %v478_v23  ;;  %v490_v27 = vmax.f32 %v476_v20, 0.0  ;;  %v4785_v16 = vld [vmem:[#allocation13 + $0x94] ss:$8 sps:$4 sm:$0xff]   ;;  %v4792_v23 = vld [vmem:[#allocation13 + $0xc0] ss:$8 sps:$4 sm:$0xff]  }
 0x2c9   :  { %v493_v26 = vmax.f32 %v487_v22, 0.0  ;;  %v4791_v20 = vld [vmem:[#allocation13 + $0xb4] ss:$8 sps:$4 sm:$0xff]   ;;  %v4794_v22 = vld [vmem:[#allocation13 + $0xc4] ss:$8 sps:$4 sm:$0xff]  }
 0x2ca   :  { %v491_v28 = vmax.f32 %v479_v24, 0.0  ;;  %v4797_v24 = vld [vmem:[#allocation13 + $0xd4] ss:$8 sps:$4 sm:$0xff]  }
 0x2cb   :  { %v495_v29 = vpack.c.bf16 %v493_v26, %v492_v25  ;;  %v4795_v25 = vld [vmem:[#allocation13 + $0xd0] ss:$8 sps:$4 sm:$0xff]   ;;  %v4800_v26 = vld [vmem:[#allocation13 + $0xe4] ss:$8 sps:$4 sm:$0xff]  }
 0x2cc   :  { %v494_v30 = vpack.c.bf16 %v491_v28, %v490_v27  ;;  %v4798_v27 = vld [vmem:[#allocation13 + $0xe0] ss:$8 sps:$4 sm:$0xff]   ;;  %v4803_v28 = vld [vmem:[#allocation13 + $0xf4] ss:$8 sps:$4 sm:$0xff]  }
 0x2ce   :  { %4604 = vmatprep.mubr.bf16.mxu1 %v494_v30  ;;  %v4804_v30 = vld [vmem:[#allocation16 + $0x40] sm:$0xff]  }
 0x2cf   :  { %4605 = vmatmul.mubr.bf16.vlgmr.msra.gmra.mrb[4].mxu1 %v495_v29  ;;  %v4801_v29 = vld [vmem:[#allocation13 + $0xf0] ss:$8 sps:$4 sm:$0xff]   ;;  %4516 = vmatprep.subr.bf16.mxu0 %v4804_v30 }
 0x2d0   :  { %731 = vmatpush1.bf16.msra.mxu1 %v4732_v31  ;;  %762 = vmatprep.mubr.bf16.mxu1 %v5877_v46  ;;  %v4805_v31 = vld [vmem:[#allocation16] sm:$0xff]  }
 0x2d1   :  { %732 = vmatprep.subr.bf16.mxu1 %v4737_v32  ;;  %v4806_v32 = vld [vmem:[#allocation16 + $0x48] sm:$0xff]   ;;  %4517 = vmatpush3.bf16.msra.mxu0 %v4805_v31 }
 0x2d2   :  { %4518 = vmatprep.subr.bf16.mxu0 %v4806_v32 }
 0x2d4   :  { %733 = vmatpush1.bf16.msra.mxu1 %v4735_v33  ;;  %v4807_v33 = vld [vmem:[#allocation16 + $0x8] sm:$0xff]  }
 0x2d5   :  { %734 = vmatprep.subr.bf16.mxu1 %v4740_v34  ;;  %v4808_v34 = vld [vmem:[#allocation16 + $0x50] sm:$0xff]   ;;  %4519 = vmatpush3.bf16.msra.mxu0 %v4807_v33 }
 0x2d6   :  { %4520 = vmatprep.subr.bf16.mxu0 %v4808_v34 }
 0x2d8   :  { %735 = vmatpush1.bf16.msra.mxu1 %v4738_v35  ;;  %v4809_v35 = vld [vmem:[#allocation16 + $0x10] sm:$0xff]  }
 0x2d9   :  { %736 = vmatprep.subr.bf16.mxu1 %v4743_v36  ;;  %v4810_v36 = vld [vmem:[#allocation16 + $0x58] sm:$0xff]   ;;  %4521 = vmatpush3.bf16.msra.mxu0 %v4809_v35 }
 0x2da   :  { %4522 = vmatprep.subr.bf16.mxu0 %v4810_v36 }
 0x2dc   :  { %737 = vmatpush1.bf16.msra.mxu1 %v4741_v37  ;;  %v4811_v37 = vld [vmem:[#allocation16 + $0x18] sm:$0xff]  }
 0x2dd   :  { %738 = vmatprep.subr.bf16.mxu1 %v4746_v38  ;;  %v4812_v38 = vld [vmem:[#allocation16 + $0x60] sm:$0xff]   ;;  %4523 = vmatpush3.bf16.msra.mxu0 %v4811_v37 }
 0x2de   :  { %4524 = vmatprep.subr.bf16.mxu0 %v4812_v38 }
 0x2e0   :  { %739 = vmatpush1.bf16.msra.mxu1 %v4744_v39  ;;  %v4813_v39 = vld [vmem:[#allocation16 + $0x20] sm:$0xff]  }
 0x2e1   :  { %740 = vmatprep.subr.bf16.mxu1 %v4749_v40  ;;  %v4814_v40 = vld [vmem:[#allocation16 + $0x68] sm:$0xff]   ;;  %4525 = vmatpush3.bf16.msra.mxu0 %v4813_v39  ;;  %v5169_v39 = vld [vmem:[#allocation35 + $0x64] ss:$8 sps:$4 sm:$0xff]  }
 0x2e2   :  { %4526 = vmatprep.subr.bf16.mxu0 %v4814_v40 }
 0x2e4   :  { %741 = vmatpush1.bf16.msra.mxu1 %v4747_v41  ;;  %v640_v41 = vlaneseq }
 0x2e5   :  { %742 = vmatprep.subr.bf16.mxu1 %v4752_v42 }
 0x2e6   :  { %v6174_v42 = vshrl.u32 %v640_v41, 7 }
 0x2e8   :  { %743 = vmatpush1.bf16.msra.mxu1 %v4750_v43  ;;  %v6177_v43 = vsub.s32 0, %v6174_v42 }
 0x2e9   :  { %744 = vmatprep.subr.bf16.mxu1 %v4755_v44  ;;  %v638_v44 = vld [vmem:[%s6317_s17] sm:$0x3] }
 0x2ec   :  { %745 = vmatpush1.bf16.msra.mxu1 %v4753_v45  ;;  %v6181_v45 = vsub.s32 1, %v6174_v42 }
 0x2ed   :  { %1027 = vmatprep.subr.bf16.mxu1 %v4758_v47  ;;  %v643_v47 = vrot.slane %v638_v44, %v6177_v43 }
 0x3a2   :  { %v4606_v49 = vpop.f32.mrb[4].mxu1 }
 0x3a3   :  { %v610_v50 = vadd.f32 %v4606_v49, %v4088_v48  ;;  %v601_v51 = vpop.f32.mrb[5].mxu1 }
 0x3a4   :  { %v602_v52 = vadd.f32 %v4088_v48, %v601_v51  ;;  %v4607_v53 = vpop.f32.mrb[6].mxu1 }
 0x3a5   :  { %v613_v54 = vadd.f32 %v4607_v53, %v4088_v48  ;;  %v604_v55 = vpop.f32.mrb[7].mxu1  ;;  %v618_v57 = vmax.f32 %v610_v50, 0.0 }
 0x3a6   :  { %v605_v56 = vadd.f32 %v4088_v48, %v604_v55  ;;  %v616_v59 = vmax.f32 %v602_v52, 0.0  ;;  %v647_v48 = vrot.slane %v638_v44, %v6181_v45 }
 0x3a7   :  { %v619_v58 = vmax.f32 %v613_v54, 0.0 }
 0x3a8   :  { %v617_v60 = vmax.f32 %v605_v56, 0.0 }
 0x3a9   :  { %v621_v61 = vpack.c.bf16 %v619_v58, %v618_v57 }
 0x3aa   :  { %v620_v63 = vpack.c.bf16 %v617_v60, %v616_v59 }
 0x3ac   :  { %763 = vmatmul.mubr.bf16.vlgmr.msra.gmra.mrb[8].mxu1 %v620_v63 }
 0x3ad   :  { %772 = vmatprep.mubr.bf16.mxu1 %v5877_v46  ;;  %1028 = vmatpush1.bf16.msra.mxu1 %v4756_v62 }
 0x3ae   :  { %1029 = vmatprep.subr.bf16.mxu1 %v4761_v0 }
 0x3b1   :  { %1030 = vmatpush1.bf16.msra.mxu1 %v4759_v1 }
 0x3b2   :  { %1031 = vmatprep.subr.bf16.mxu1 %v4764_v2 }
 0x3b4   :  { %773 = vmatmul.mubr.bf16.gmra.mrb[12].mxu1 %v621_v61 }
 0x3b5   :  { %1032 = vmatpush1.bf16.msra.mxu1 %v4762_v3 }
 0x3b6   :  { %1033 = vmatprep.subr.bf16.mxu1 %v4767_v4 }
 0x3b9   :  { %1034 = vmatpush1.bf16.msra.mxu1 %v4765_v5 }
 0x3ba   :  { %1035 = vmatprep.subr.bf16.mxu1 %v4770_v6 }
 0x3bd   :  { %1036 = vmatpush1.bf16.msra.mxu1 %v4768_v7 }
 0x3be   :  { %1037 = vmatprep.subr.bf16.mxu1 %v4773_v8 }
 0x3c1   :  { %1038 = vmatpush1.bf16.msra.mxu1 %v4771_v9 }
 0x3c2   :  { %1039 = vmatprep.subr.bf16.mxu1 %v4776_v10 }
 0x3c5   :  { %1040 = vmatpush1.bf16.msra.mxu1 %v4774_v11 }
 0x3c6   :  { %1041 = vmatprep.subr.bf16.mxu1 %v4779_v12 }
 0x3c9   :  { %1042 = vmatpush1.bf16.msra.mxu1 %v4777_v13 }
 0x3ca   :  { %1043 = vmatprep.subr.bf16.mxu1 %v4782_v14 }
 0x3cd   :  { %1044 = vmatpush1.bf16.msra.mxu1 %v4780_v15 }
 0x3ce   :  { %1045 = vmatprep.subr.bf16.mxu1 %v4785_v16 }
 0x3d1   :  { %1046 = vmatpush1.bf16.msra.mxu1 %v4783_v17 }
 0x3d2   :  { %1047 = vmatprep.subr.bf16.mxu1 %v4788_v18 }
 0x3d5   :  { %1048 = vmatpush1.bf16.msra.mxu1 %v4786_v19 }
 0x3d6   :  { %1049 = vmatprep.subr.bf16.mxu1 %v4791_v20 }
 0x3d9   :  { %1050 = vmatpush1.bf16.msra.mxu1 %v4789_v21 }
 0x3da   :  { %1051 = vmatprep.subr.bf16.mxu1 %v4794_v22 }
 0x3dd   :  { %1052 = vmatpush1.bf16.msra.mxu1 %v4792_v23 }
 0x3de   :  { %1053 = vmatprep.subr.bf16.mxu1 %v4797_v24 }
 0x3e1   :  { %1054 = vmatpush1.bf16.msra.mxu1 %v4795_v25 }
 0x3e2   :  { %1055 = vmatprep.subr.bf16.mxu1 %v4800_v26 }
 0x3e5   :  { %1056 = vmatpush1.bf16.msra.mxu1 %v4798_v27 }
 0x3e6   :  { %1057 = vmatprep.subr.bf16.mxu1 %v4803_v28 }
 0x3e9   :  { %1058 = vmatpush1.bf16.msra.mxu1 %v4801_v29 }
 0x47f   :  { %v764_v49 = vpop.f32.mrb[8].mxu1 }
 0x480   :  { %v765_v50 = vadd.f32 %v764_v49, %v643_v47  ;;  %v766_v51 = vpop.f32.mrb[9].mxu1  ;;  %v4817_v49 = vld [vmem:[#allocation16 + $0x30] sm:$0xff]  }
 0x481   :  { %v767_v52 = vadd.f32 %v766_v51, %v647_v48  ;;  %v768_v53 = vpop.f32.mrb[10].mxu1  ;;  %v4819_v51 = vld [vmem:[#allocation16 + $0x38] sm:$0xff]  }
 0x482   :  { %v769_v54 = vadd.f32 %v768_v53, %v643_v47  ;;  %v770_v55 = vpop.f32.mrb[11].mxu1  ;;  %v783_v57 = vmax.f32 %v765_v50, 0.0  ;;  %v4818_v50 = vld [vmem:[#allocation16 + $0x78] sm:$0xff]  }
 0x483   :  { %v771_v56 = vadd.f32 %v770_v55, %v647_v48  ;;  %v784_v59 = vmax.f32 %v767_v52, 0.0  ;;  %v5878_v52 = vmov 0.0   ;;  %v1068_v53 = vld [vmem:[#allocation14] sm:$0x3] }
 0x484   :  { %v785_v58 = vmax.f32 %v769_v54, 0.0  ;;  %v865_v54 = vld [vmem:[%s6320_s2] sm:$0xff]  ;;  %v1073_v55 = vrot.slane %v1068_v53, %v6177_v43 }
 0x485   :  { %v786_v60 = vmax.f32 %v771_v56, 0.0  ;;  %v866_v56 = vld [vmem:[%s6320_s2 + $0x8] sm:$0xff] }
 0x486   :  { %v791_v61 = vmax.f32 %v783_v57, %v785_v58  ;;  %v1077_v58 = vrot.slane %v1068_v53, %v6181_v45  ;;  %v5261_v53 = vld [vmem:[%s6316_s20] sm:$0xff] }
 0x487   :  { %v798_v62 = vmax.f32 %v784_v59, %v786_v60  ;;  %v774_v63 = vpop.f32.mrb[12].mxu1 }
 0x488   :  { %v792_v0 = vrot.slane %v791_v61, 4  ;;  %v775_v1 = vadd.f32 %v774_v63, %v643_v47  ;;  %v776_v2 = vpop.f32.mrb[13].mxu1 }
 0x489   :  { %v799_v3 = vrot.slane %v798_v62, 4  ;;  %v777_v4 = vadd.f32 %v776_v2, %v647_v48  ;;  %v778_v5 = vpop.f32.mrb[14].mxu1 }
 0x48a   :  { %v793_v6 = vmax.f32 %v791_v61, %v792_v0  ;;  %v779_v7 = vadd.f32 %v778_v5, %v643_v47  ;;  %v780_v8 = vpop.f32.mrb[15].mxu1  ;;  %v787_v11 = vmax.f32 %v775_v1, 0.0  ;;  %v4815_v47 = vld [vmem:[#allocation16 + $0x28] sm:$0xff]  }
 0x48b   :  { %v800_v9 = vmax.f32 %v798_v62, %v799_v3  ;;  %v781_v10 = vadd.f32 %v780_v8, %v647_v48  ;;  %v788_v13 = vmax.f32 %v777_v4, 0.0  ;;  %4527 = vmatpush3.bf16.msra.mxu0 %v4815_v47  ;;  %v4816_v48 = vld [vmem:[#allocation16 + $0x70] sm:$0xff]   ;;  %v4820_v5 = vld [vmem:[#allocation19] sm:$0xff]  }
 0x48c   :  { %v789_v12 = vmax.f32 %v779_v7, 0.0  ;;  %v794_v15 = vrot.slane %v793_v6, 2  ;;  %4528 = vmatprep.subr.bf16.mxu0 %v4816_v48  ;;  %v4821_v7 = vld [vmem:[#allocation19 + $0x8] sm:$0xff]   ;;  %v4822_v8 = vld [vmem:[#allocation19 + $0x10] sm:$0xff]  }
 0x48d   :  { %v790_v14 = vmax.f32 %v781_v10, 0.0  ;;  %v801_v17 = vrot.slane %v800_v9, 2  ;;  %v4824_v10 = vld [vmem:[#allocation19 + $0x20] sm:$0xff]  }
 0x48e   :  { %v805_v16 = vmax.f32 %v787_v11, %v789_v12  ;;  %v795_v21 = vmax.f32 %v793_v6, %v794_v15  ;;  %v4825_v11 = vld [vmem:[#allocation19 + $0x28] sm:$0xff]   ;;  %v4826_v12 = vld [vmem:[#allocation19 + $0x30] sm:$0xff]   ;;  %v4151_v15 = vld [vmem:[#allocation17] ss:$0 sm:$0xff] }
 0x48f   :  { %v812_v18 = vmax.f32 %v788_v13, %v790_v14  ;;  %v802_v23 = vmax.f32 %v800_v9, %v801_v17  ;;  %4529 = vmatpush3.bf16.msra.mxu0 %v4817_v49  ;;  %v4823_v9 = vld [vmem:[#allocation19 + $0x18] sm:$0xff]  }
 0x490   :  { %v806_v19 = vrot.slane %v805_v16, 4  ;;  %v796_v27 = vrot.slane %v795_v21, 1  ;;  %4530 = vmatprep.subr.bf16.mxu0 %v4818_v50  ;;  %v4827_v13 = vld [vmem:[#allocation19 + $0x38] sm:$0xff]  }
 0x491   :  { %v813_v20 = vrot.slane %v812_v18, 4  ;;  %v803_v29 = vrot.slane %v802_v23, 1 }
 0x492   :  { %v807_v22 = vmax.f32 %v805_v16, %v806_v19  ;;  %v797_v33 = vmax.f32 %v795_v21, %v796_v27  ;;  %v4832_v27 = vld [vmem:[#allocation25 + $0x18] sm:$0xff]  }
 0x493   :  { %v814_v24 = vmax.f32 %v812_v18, %v813_v20  ;;  %v804_v35 = vmax.f32 %v802_v23, %v803_v29  ;;  %4531 = vmatpush3.bf16.msra.mxu0 %v4819_v51  ;;  %v4828_v23 = vld [vmem:[#allocation22] sm:$0xff]   ;;  %v4834_v29 = vld [vmem:[#allocation25 + $0x28] sm:$0xff]  }
 0x494   :  { %v808_v25 = vrot.slane %v807_v22, 2  ;;  %4608 = vmatprep.subr.bf16.mxu0 %v5878_v52  ;;  %4628 = vmatprep.subr.bf16.mxu1 %v4828_v23 }
 0x495   :  { %v815_v26 = vrot.slane %v814_v24, 2 }
 0x496   :  { %v809_v28 = vmax.f32 %v807_v22, %v808_v25  ;;  %v4830_v25 = vld [vmem:[#allocation25 + $0x8] sm:$0xff]  }
 0x497   :  { %v816_v30 = vmax.f32 %v814_v24, %v815_v26  ;;  %v4829_v24 = vld [vmem:[#allocation25] sm:$0xff]   ;;  %v4831_v26 = vld [vmem:[#allocation25 + $0x10] sm:$0xff]  }
 0x498   :  { %v810_v31 = vrot.slane %v809_v28, 1 }
 0x499   :  { %v817_v32 = vrot.slane %v816_v30, 1 }
 0x49a   :  { %v811_v34 = vmax.f32 %v809_v28, %v810_v31  ;;  %v4833_v28 = vld [vmem:[#allocation25 + $0x20] sm:$0xff]  }
 0x49b   :  { %v818_v36 = vmax.f32 %v816_v30, %v817_v32  ;;  %v5880_v30 = vmov 1966171168   ;;  %v1375_v32 = vand.u32 127, %v640_v41 }
 0x49c   :  { %v824_v37 = vsel %vm823_vm1, %v811_v34, %v797_v33  ;;  %v1380_v31 = vunpack.c.l.s4 %v5880_v30  ;;  %v4168_v34 = vld [vmem:[#allocation20] ss:$0 sm:$0xff]  ;;  %v4860_v30 = vld [vmem:[#allocation28 + $0x74] ss:$8 sps:$4 sm:$0xff]  }
 0x49d   :  { %v825_v38 = vsel %vm823_vm1, %v818_v36, %v804_v35  ;;  %v4149_v44 = vpack.c.bf16 %v824_v37, %v824_v37  ;;  %vm1376_vm5 = vcmp.lt.s32.totalorder %v1375_v32, 3  ;;  %v4861_v32 = vld [vmem:[#allocation31] ss:$16 sps:$4 sm:$0xff]  }
 0x49e   :  { %v4146_v40 = vpack.c.bf16 %v825_v38, %v825_v38  ;;  %v1381_v33 = vunpack.c.0.s8 %v1380_v31  ;;  %v4858_v31 = vld [vmem:[#allocation28 + $0x70] ss:$8 sps:$4 sm:$0xff]  }
 0x4a0   :  { %4147 = vmatprep.mubr.msk.bf16.mxu1 %vm6187_vm3, %v4146_v40  ;;  %v1384_v36 = vsub.s32 %v1381_v33, %v6174_v42  ;;  %v4863_v33 = vld [vmem:[#allocation31 + $0x4] ss:$16 sps:$4 sm:$0xff]  }
 0x4a1   :  { %4150 = vmatmul.mubr.msk.bf16.vlgmr.msra.gmra.mrb[16].mxu1 %vm6187_vm3, %v4149_v44 }
 0x4a2   :  { %4629 = vmatpush3.bf16.msra.mxu1 %v4828_v23 }
 0x574   :  { %v1061_v57 = vpop.f32.mrb[16].mxu1 }
 0x575   :  { %v1062_v59 = vadd.f32 %v1061_v57, %v865_v54  ;;  %v1063_v60 = vpop.f32.mrb[17].mxu1  ;;  %v5263_v57 = vld [vmem:[%s6316_s20 + $0x10] sm:$0xff] }
 0x576   :  { %v1064_v61 = vadd.f32 %v1063_v60, %v866_v56  ;;  %v1065_v62 = vpop.f32.mrb[18].mxu1 }
 0x577   :  { %v1080_v63 = vadd.f32 %v1073_v55, %v1062_v59  ;;  %v1066_v0 = vpop.f32.mrb[19].mxu1  ;;  %v5262_v55 = vld [vmem:[%s6316_s20 + $0x8] sm:$0xff]  ;;  %v5264_v59 = vld [vmem:[%s6316_s20 + $0x18] sm:$0xff] }
 0x578   :  { %v1081_v1 = vadd.f32 %v1077_v58, %v1064_v61  ;;  %v4836_v0 = vld [vmem:[#allocation25 + $0x38] sm:$0xff]  }
 0x579   :  { %v1082_v2 = vmax.f32 %v1080_v63, 0.0  ;;  %v4835_v63 = vld [vmem:[#allocation25 + $0x30] sm:$0xff]  }
 0x57a   :  { %v1083_v3 = vmax.f32 %v1081_v1, 0.0  ;;  %v4837_v1 = vld [vmem:[#allocation28] ss:$8 sps:$4 sm:$0xff]  }
 0x57b   :  { %v1084_v6 = vpack.c.bf16 %v1082_v2, %v1082_v2  ;;  %v4839_v2 = vld [vmem:[#allocation28 + $0x4] ss:$8 sps:$4 sm:$0xff]  }
 0x57c   :  { %v1085_v4 = vpack.c.bf16 %v1083_v3, %v1083_v3  ;;  %v4842_v3 = vld [vmem:[#allocation28 + $0x14] ss:$8 sps:$4 sm:$0xff]   ;;  %1727 = vmatprep.subr.bf16.mxu1 %v4839_v2 }
 0x57d   :  { %v4181_v2 = vld [vmem:[#allocation26] ss:$0 sm:$0xff] }
 0x57e   :  { %1253 = vmatprep.mubr.bf16.mxu0 %v1085_v4  ;;  %v4840_v4 = vld [vmem:[#allocation28 + $0x10] ss:$8 sps:$4 sm:$0xff]  }
 0x57f   :  { %1254 = vmatmul.mubr.bf16.vlgmr.msra.gmra.mrb[0].mxu0 %v1084_v6  ;;  %v4843_v6 = vld [vmem:[#allocation28 + $0x20] ss:$8 sps:$4 sm:$0xff]  }
 0x580   :  { %4609 = vmatpush3.bf16.msra.mxu0 %v4820_v5  ;;  %4624 = vmatprep.mubr.msk.bf16.mxu0 %vm5879_vm4, %v5878_v52  ;;  %v4845_v5 = vld [vmem:[#allocation28 + $0x24] ss:$8 sps:$4 sm:$0xff]  }
 0x581   :  { %4610 = vmatprep.subr.bf16.mxu0 %v5878_v52 }
 0x584   :  { %4611 = vmatpush3.bf16.msra.mxu0 %v4821_v7  ;;  %v4848_v7 = vld [vmem:[#allocation28 + $0x34] ss:$8 sps:$4 sm:$0xff]  }
 0x585   :  { %4612 = vmatprep.subr.bf16.mxu0 %v5878_v52 }
 0x588   :  { %4613 = vmatpush3.bf16.msra.mxu0 %v4822_v8  ;;  %v4846_v8 = vld [vmem:[#allocation28 + $0x30] ss:$8 sps:$4 sm:$0xff]  }
 0x589   :  { %4614 = vmatprep.subr.bf16.mxu0 %v5878_v52 }
 0x58c   :  { %4615 = vmatpush3.bf16.msra.mxu0 %v4823_v9  ;;  %v4851_v9 = vld [vmem:[#allocation28 + $0x44] ss:$8 sps:$4 sm:$0xff]  }
 0x58d   :  { %4616 = vmatprep.subr.bf16.mxu0 %v5878_v52 }
 0x590   :  { %4617 = vmatpush3.bf16.msra.mxu0 %v4824_v10  ;;  %v4849_v10 = vld [vmem:[#allocation28 + $0x40] ss:$8 sps:$4 sm:$0xff]  }
 0x591   :  { %4618 = vmatprep.subr.bf16.mxu0 %v5878_v52 }
 0x594   :  { %4619 = vmatpush3.bf16.msra.mxu0 %v4825_v11  ;;  %v4854_v11 = vld [vmem:[#allocation28 + $0x54] ss:$8 sps:$4 sm:$0xff]  }
 0x595   :  { %4620 = vmatprep.subr.bf16.mxu0 %v5878_v52 }
 0x598   :  { %4621 = vmatpush3.bf16.msra.mxu0 %v4826_v12  ;;  %v4852_v12 = vld [vmem:[#allocation28 + $0x50] ss:$8 sps:$4 sm:$0xff]  }
 0x599   :  { %4622 = vmatprep.subr.bf16.mxu0 %v5878_v52 }
 0x59c   :  { %4623 = vmatpush3.bf16.msra.mxu0 %v4827_v13  ;;  %v4177_v13 = vld [vmem:[#allocation23] ss:$0 sm:$0xff] }
 0x59d   :  { %4634 = vmatprep.subr.bf16.mxu0 %v4829_v24 }
 0x652   :  { %v4532_v14 = vpop.f32.mrb[0].mxu0 }
 0x653   :  { %v4533_v16 = vpop.f32.mrb[1].mxu0 }
 0x654   :  { %v4534_v17 = vadd.f32 %v4533_v16, %v4532_v14  ;;  %v4535_v18 = vpop.f32.mrb[2].mxu0 }
 0x655   :  { %v4536_v19 = vpop.f32.mrb[3].mxu0 }
 0x656   :  { %v1256_v20 = vadd.f32 %v4534_v17, %v4151_v15 }
 0x658   :  { %v1261_v21 = vmax.f32 %v1256_v20, 0.0 }
 0x65a   :  { %v1262_v22 = vpack.c.bf16 %v1261_v21, %v1261_v21 }
 0x65c   :  { %4625 = vmatmul.mubr.bf16.vlgmr.msra.gmra.mrb[4].mxu0 %v1262_v22 }
 0x65d   :  { %4635 = vmatpush3.bf16.msra.mxu0 %v4829_v24 }
 0x65e   :  { %4636 = vmatprep.subr.bf16.mxu0 %v4830_v25 }
 0x661   :  { %4637 = vmatpush3.bf16.msra.mxu0 %v4830_v25 }
 0x662   :  { %4638 = vmatprep.subr.bf16.mxu0 %v4831_v26 }
 0x665   :  { %4639 = vmatpush3.bf16.msra.mxu0 %v4831_v26 }
 0x666   :  { %4640 = vmatprep.subr.bf16.mxu0 %v4832_v27 }
 0x669   :  { %4641 = vmatpush3.bf16.msra.mxu0 %v4832_v27 }
 0x66a   :  { %4642 = vmatprep.subr.bf16.mxu0 %v4833_v28 }
 0x66d   :  { %4643 = vmatpush3.bf16.msra.mxu0 %v4833_v28  ;;  %v4857_v28 = vld [vmem:[#allocation28 + $0x64] ss:$8 sps:$4 sm:$0xff]  }
 0x66e   :  { %4644 = vmatprep.subr.bf16.mxu0 %v4834_v29 }
 0x671   :  { %4645 = vmatpush3.bf16.msra.mxu0 %v4834_v29  ;;  %v4855_v29 = vld [vmem:[#allocation28 + $0x60] ss:$8 sps:$4 sm:$0xff]  }
 0x672   :  { %4646 = vmatprep.subr.bf16.mxu0 %v4835_v63 }
 0x675   :  { %4647 = vmatpush3.bf16.msra.mxu0 %v4835_v63  ;;  %v4933_v63 = vld [vmem:[#allocation31 + $0x180] ss:$16 sps:$4 sm:$0xff]  }
 0x676   :  { %4648 = vmatprep.subr.bf16.mxu0 %v4836_v0 }
 0x679   :  { %4649 = vmatpush3.bf16.msra.mxu0 %v4836_v0  ;;  %v4941_v0 = vld [vmem:[#allocation31 + $0x1a4] ss:$16 sps:$4 sm:$0xff]  }
 0x67a   :  { %2198 = vmatprep.subr.bf16.mxu0 %v4863_v33  ;;  %v4920_v33 = vld [vmem:[#allocation31 + $0x12c] ss:$16 sps:$4 sm:$0xff]  }
 0x72f   :  { %v1368_v35 = vpop.f32.mrb[4].mxu0 }
 0x730   :  { %v1369_v37 = vadd.f32 %v4168_v34, %v1368_v35  ;;  %v4626_v38 = vpop.f32.mrb[5].mxu0  ;;  %v4866_v34 = vld [vmem:[#allocation31 + $0xc] ss:$16 sps:$4 sm:$0xff]   ;;  %v4869_v35 = vld [vmem:[#allocation31 + $0x24] ss:$16 sps:$4 sm:$0xff]  }
 0x731   :  { %v1371_v40 = vpop.f32.mrb[6].mxu0  ;;  %v4873_v38 = vld [vmem:[#allocation31 + $0x40] ss:$16 sps:$4 sm:$0xff]  }
 0x732   :  { %v1377_v44 = vsel %vm1376_vm5, %v1369_v37, 0.0  ;;  %4027 = vst [vmem:[#allocation38] sm:$0xff] %v1369_v37  ;;  %v4627_v47 = vpop.f32.mrb[7].mxu0  ;;  %v4875_v37 = vld [vmem:[#allocation31 + $0x44] ss:$16 sps:$4 sm:$0xff]  }
 0x733   :  { %v1385_v48 = vrot.slane %v1377_v44, %v1384_v36  ;;  %v4881_v40 = vld [vmem:[#allocation31 + $0x64] ss:$16 sps:$4 sm:$0xff]   ;;  %v4879_v44 = vld [vmem:[#allocation31 + $0x60] ss:$16 sps:$4 sm:$0xff]  }
 0x734   :  { %v4887_v47 = vld [vmem:[#allocation31 + $0x84] ss:$16 sps:$4 sm:$0xff]  }
 0x735   :  { %v1386_v49 = vcombine.high %v1385_v48, %v1385_v48  ;;  %v1393_v50 = vrot.slane %v1385_v48, %v1384_v36  ;;  %v4885_v48 = vld [vmem:[#allocation31 + $0x80] ss:$16 sps:$4 sm:$0xff]  }
 0x737   :  { %v1400_v41 = vrot.slane %v1386_v49, %v1384_v36  ;;  %v1404_v51 = vrot.slane %v1393_v50, %v6177_v43  ;;  %v4867_v36 = vld [vmem:[#allocation31 + $0x20] ss:$16 sps:$4 sm:$0xff]   ;;  %v4893_v49 = vld [vmem:[#allocation31 + $0xa4] ss:$16 sps:$4 sm:$0xff]  }
 0x738   :  { %v4891_v50 = vld [vmem:[#allocation31 + $0xa0] ss:$16 sps:$4 sm:$0xff]  }
 0x739   :  { %v1408_v52 = vrot.slane %v1400_v41, %v6177_v43  ;;  %v1411_v54 = vsub.f32 %v5261_v53, %v1404_v51  ;;  %v1412_v56 = vsub.f32 %v5262_v55, %v1404_v51  ;;  %v4899_v41 = vld [vmem:[#allocation31 + $0xc4] ss:$16 sps:$4 sm:$0xff]   ;;  %v4897_v51 = vld [vmem:[#allocation31 + $0xc0] ss:$16 sps:$4 sm:$0xff]  }
 0x73a   :  { %v4903_v53 = vld [vmem:[#allocation31 + $0xe0] ss:$16 sps:$4 sm:$0xff]  }
 0x73b   :  { %v1413_v58 = vsub.f32 %v5263_v57, %v1408_v52  ;;  %v1414_v60 = vsub.f32 %v5264_v59, %v1408_v52  ;;  %v1415_v61 = vpack.c.bf16 %v1412_v56, %v1411_v54  ;;  %v4905_v52 = vld [vmem:[#allocation31 + $0xe4] ss:$16 sps:$4 sm:$0xff]   ;;  %v4909_v55 = vld [vmem:[#allocation31 + $0x100] ss:$16 sps:$4 sm:$0xff]  }
 0x73c   :  { %v4911_v54 = vld [vmem:[#allocation31 + $0x104] ss:$16 sps:$4 sm:$0xff]   ;;  %v4915_v57 = vld [vmem:[#allocation31 + $0x120] ss:$16 sps:$4 sm:$0xff]  }
 0x73d   :  { %4630 = vmatprep.mubr.msk.bf16.mxu1 %vm434_vm0, %v1415_v61  ;;  %v1416_v62 = vpack.c.bf16 %v1414_v60, %v1413_v58  ;;  %v4917_v56 = vld [vmem:[#allocation31 + $0x124] ss:$16 sps:$4 sm:$0xff]   ;;  %v4921_v59 = vld [vmem:[#allocation31 + $0x140] ss:$16 sps:$4 sm:$0xff]  }
 0x73e   :  { %v4923_v58 = vld [vmem:[#allocation31 + $0x144] ss:$16 sps:$4 sm:$0xff]   ;;  %v4927_v61 = vld [vmem:[#allocation31 + $0x160] ss:$16 sps:$4 sm:$0xff]  }
 0x73f   :  { %4631 = vmatmul.mubr.msk.bf16.vlgmr.msra.gmra.mrb[20].mxu1 %vm434_vm0, %v1416_v62  ;;  %v4929_v60 = vld [vmem:[#allocation31 + $0x164] ss:$16 sps:$4 sm:$0xff]  }
 0x740   :  { %1759 = vmatprep.mubr.bf16.mxu1 %v5877_v46  ;;  %1728 = vmatpush1.bf16.msra.mxu1 %v4837_v1  ;;  %v4935_v62 = vld [vmem:[#allocation31 + $0x184] ss:$16 sps:$4 sm:$0xff]   ;;  %v4939_v1 = vld [vmem:[#allocation31 + $0x1a0] ss:$16 sps:$4 sm:$0xff]  }
 0x741   :  { %1729 = vmatprep.subr.bf16.mxu1 %v4842_v3 }
 0x744   :  { %1730 = vmatpush1.bf16.msra.mxu1 %v4840_v4 }
 0x745   :  { %1731 = vmatprep.subr.bf16.mxu1 %v4845_v5 }
 0x748   :  { %1732 = vmatpush1.bf16.msra.mxu1 %v4843_v6 }
 0x749   :  { %1733 = vmatprep.subr.bf16.mxu1 %v4848_v7 }
 0x74c   :  { %1734 = vmatpush1.bf16.msra.mxu1 %v4846_v8 }
 0x74d   :  { %1735 = vmatprep.subr.bf16.mxu1 %v4851_v9 }
 0x750   :  { %1736 = vmatpush1.bf16.msra.mxu1 %v4849_v10 }
 0x751   :  { %1737 = vmatprep.subr.bf16.mxu1 %v4854_v11 }
 0x754   :  { %1738 = vmatpush1.bf16.msra.mxu1 %v4852_v12 }
 0x755   :  { %1739 = vmatprep.subr.bf16.mxu1 %v4857_v28  ;;  %v4900_v28 = vld [vmem:[#allocation31 + $0xc8] ss:$16 sps:$4 sm:$0xff]  }
 0x758   :  { %1740 = vmatpush1.bf16.msra.mxu1 %v4855_v29  ;;  %v4908_v29 = vld [vmem:[#allocation31 + $0xec] ss:$16 sps:$4 sm:$0xff]  }
 0x759   :  { %1741 = vmatprep.subr.bf16.mxu1 %v4860_v30  ;;  %v4906_v30 = vld [vmem:[#allocation31 + $0xe8] ss:$16 sps:$4 sm:$0xff]  }
 0x75c   :  { %1742 = vmatpush1.bf16.msra.mxu1 %v4858_v31  ;;  %v4914_v31 = vld [vmem:[#allocation31 + $0x10c] ss:$16 sps:$4 sm:$0xff]  }
 0x75d   :  { %2251 = vmatprep.subr.bf16.mxu1 %v4866_v34  ;;  %v4918_v34 = vld [vmem:[#allocation31 + $0x128] ss:$16 sps:$4 sm:$0xff]  }
 0x812   :  { %v4632_v14 = vpop.f32.mrb[20].mxu1 }
 0x813   :  { %v1481_v15 = vadd.f32 %v4632_v14, %v4177_v13  ;;  %v1472_v16 = vpop.f32.mrb[21].mxu1 }
 0x814   :  { %v1473_v17 = vadd.f32 %v4177_v13, %v1472_v16  ;;  %v4633_v18 = vpop.f32.mrb[22].mxu1  ;;  %v4864_v16 = vld [vmem:[#allocation31 + $0x8] ss:$16 sps:$4 sm:$0xff]  }
 0x815   :  { %v1484_v19 = vadd.f32 %v4633_v18, %v4177_v13  ;;  %v1475_v20 = vpop.f32.mrb[23].mxu1  ;;  %v1489_v22 = vmax.f32 %v1481_v15, 0.0  ;;  %v4872_v18 = vld [vmem:[#allocation31 + $0x2c] ss:$16 sps:$4 sm:$0xff]  }
 0x816   :  { %v1476_v21 = vadd.f32 %v4177_v13, %v1475_v20  ;;  %v1487_v24 = vmax.f32 %v1473_v17, 0.0  ;;  %v4878_v20 = vld [vmem:[#allocation31 + $0x4c] ss:$16 sps:$4 sm:$0xff]  }
 0x817   :  { %v1490_v23 = vmax.f32 %v1484_v19, 0.0  ;;  %v4870_v19 = vld [vmem:[#allocation31 + $0x28] ss:$16 sps:$4 sm:$0xff]  }
 0x818   :  { %v1488_v25 = vmax.f32 %v1476_v21, 0.0  ;;  %v4876_v21 = vld [vmem:[#allocation31 + $0x48] ss:$16 sps:$4 sm:$0xff]  }
 0x819   :  { %v1492_v26 = vpack.c.bf16 %v1490_v23, %v1489_v22  ;;  %v4884_v22 = vld [vmem:[#allocation31 + $0x6c] ss:$16 sps:$4 sm:$0xff]   ;;  %v4882_v23 = vld [vmem:[#allocation31 + $0x68] ss:$16 sps:$4 sm:$0xff]  }
 0x81a   :  { %v1491_v27 = vpack.c.bf16 %v1488_v25, %v1487_v24  ;;  %v4890_v24 = vld [vmem:[#allocation31 + $0x8c] ss:$16 sps:$4 sm:$0xff]   ;;  %v4888_v25 = vld [vmem:[#allocation31 + $0x88] ss:$16 sps:$4 sm:$0xff]  }
 0x81c   :  { %4650 = vmatprep.mubr.bf16.mxu0 %v1491_v27  ;;  %v4894_v27 = vld [vmem:[#allocation31 + $0xa8] ss:$16 sps:$4 sm:$0xff]  }
 0x81d   :  { %4651 = vmatmul.mubr.bf16.vlgmr.msra.gmra.mrb[8].mxu0 %v1492_v26  ;;  %v4896_v26 = vld [vmem:[#allocation31 + $0xac] ss:$16 sps:$4 sm:$0xff]  }
 0x81e   :  { %2199 = vmatpush1.bf16.msra.mxu0 %v4861_v32  ;;  %v4912_v32 = vld [vmem:[#allocation31 + $0x108] ss:$16 sps:$4 sm:$0xff]  }
 0x81f   :  { %2200 = vmatprep.subr.bf16.mxu0 %v4869_v35  ;;  %v4926_v35 = vld [vmem:[#allocation31 + $0x14c] ss:$16 sps:$4 sm:$0xff]  }
 0x822   :  { %2201 = vmatpush1.bf16.msra.mxu0 %v4867_v36  ;;  %v4924_v36 = vld [vmem:[#allocation31 + $0x148] ss:$16 sps:$4 sm:$0xff]  }
 0x823   :  { %2202 = vmatprep.subr.bf16.mxu0 %v4875_v37  ;;  %v4932_v37 = vld [vmem:[#allocation31 + $0x16c] ss:$16 sps:$4 sm:$0xff]  }
 0x826   :  { %2203 = vmatpush1.bf16.msra.mxu0 %v4873_v38  ;;  %v4930_v38 = vld [vmem:[#allocation31 + $0x168] ss:$16 sps:$4 sm:$0xff]  }
 0x827   :  { %2204 = vmatprep.subr.bf16.mxu0 %v4881_v40  ;;  %v4938_v40 = vld [vmem:[#allocation31 + $0x18c] ss:$16 sps:$4 sm:$0xff]  }
 0x82a   :  { %2205 = vmatpush1.bf16.msra.mxu0 %v4879_v44  ;;  %v4936_v44 = vld [vmem:[#allocation31 + $0x188] ss:$16 sps:$4 sm:$0xff]  }
 0x82b   :  { %2206 = vmatprep.subr.bf16.mxu0 %v4887_v47  ;;  %v4944_v47 = vld [vmem:[#allocation31 + $0x1ac] ss:$16 sps:$4 sm:$0xff]  }
 0x82e   :  { %2207 = vmatpush1.bf16.msra.mxu0 %v4885_v48  ;;  %v4942_v48 = vld [vmem:[#allocation31 + $0x1a8] ss:$16 sps:$4 sm:$0xff]  }
 0x82f   :  { %2208 = vmatprep.subr.bf16.mxu0 %v4893_v49  ;;  %v4947_v49 = vld [vmem:[#allocation31 + $0x1c4] ss:$16 sps:$4 sm:$0xff]  }
 0x832   :  { %2209 = vmatpush1.bf16.msra.mxu0 %v4891_v50  ;;  %v4950_v50 = vld [vmem:[#allocation31 + $0x1cc] ss:$16 sps:$4 sm:$0xff]  }
 0x833   :  { %2210 = vmatprep.subr.bf16.mxu0 %v4899_v41  ;;  %v4945_v41 = vld [vmem:[#allocation31 + $0x1c0] ss:$16 sps:$4 sm:$0xff]  }
 0x836   :  { %2211 = vmatpush1.bf16.msra.mxu0 %v4897_v51  ;;  %v4948_v51 = vld [vmem:[#allocation31 + $0x1c8] ss:$16 sps:$4 sm:$0xff]  }
 0x837   :  { %2212 = vmatprep.subr.bf16.mxu0 %v4905_v52  ;;  %v4953_v52 = vld [vmem:[#allocation31 + $0x1e4] ss:$16 sps:$4 sm:$0xff]  }
 0x83a   :  { %2213 = vmatpush1.bf16.msra.mxu0 %v4903_v53  ;;  %v4956_v53 = vld [vmem:[#allocation31 + $0x1ec] ss:$16 sps:$4 sm:$0xff]  }
 0x83b   :  { %2214 = vmatprep.subr.bf16.mxu0 %v4911_v54  ;;  %v4951_v54 = vld [vmem:[#allocation31 + $0x1e0] ss:$16 sps:$4 sm:$0xff]  }
 0x83e   :  { %2215 = vmatpush1.bf16.msra.mxu0 %v4909_v55  ;;  %v4954_v55 = vld [vmem:[#allocation31 + $0x1e8] ss:$16 sps:$4 sm:$0xff]  }
 0x83f   :  { %2216 = vmatprep.subr.bf16.mxu0 %v4917_v56  ;;  %v4959_v56 = vld [vmem:[#allocation32 + $0x4] ss:$16 sps:$4 sm:$0xff]  }
 0x842   :  { %2217 = vmatpush1.bf16.msra.mxu0 %v4915_v57  ;;  %v4962_v57 = vld [vmem:[#allocation32 + $0x204] ss:$16 sps:$4 sm:$0xff]  }
 0x843   :  { %2218 = vmatprep.subr.bf16.mxu0 %v4923_v58  ;;  %v1635_v58 = vld [vmem:[#allocation29] sm:$0x3] }
 0x846   :  { %2219 = vmatpush1.bf16.msra.mxu0 %v4921_v59  ;;  %v1640_v59 = vrot.slane %v1635_v58, %v6177_v43 }
 0x847   :  { %2220 = vmatprep.subr.bf16.mxu0 %v4929_v60  ;;  %v1644_v60 = vrot.slane %v1635_v58, %v6181_v45  ;;  %v5002_v58 = vld [vmem:[#allocation32 + $0x2e0] ss:$16 sps:$4 sm:$0xff]  }
 0x84a   :  { %2221 = vmatpush1.bf16.msra.mxu0 %v4927_v61 }
 0x84b   :  { %2222 = vmatprep.subr.bf16.mxu0 %v4935_v62 }
 0x84e   :  { %2223 = vmatpush1.bf16.msra.mxu0 %v4933_v63 }
 0x84f   :  { %2224 = vmatprep.subr.bf16.mxu0 %v4941_v0 }
 0x852   :  { %2225 = vmatpush1.bf16.msra.mxu0 %v4939_v1 }
 0x853   :  { %2226 = vmatprep.subr.bf16.mxu0 %v4947_v49  ;;  %v4992_v49 = vld [vmem:[#allocation32 + $0x2a4] ss:$16 sps:$4 sm:$0xff]  }
 0x856   :  { %2227 = vmatpush1.bf16.msra.mxu0 %v4945_v41  ;;  %v4990_v41 = vld [vmem:[#allocation32 + $0x2a0] ss:$16 sps:$4 sm:$0xff]  }
 0x857   :  { %2228 = vmatprep.subr.bf16.mxu0 %v4953_v52  ;;  %v4998_v52 = vld [vmem:[#allocation32 + $0x2c4] ss:$16 sps:$4 sm:$0xff]  }
 0x85a   :  { %2229 = vmatpush1.bf16.msra.mxu0 %v4951_v54  ;;  %v4996_v54 = vld [vmem:[#allocation32 + $0x2c0] ss:$16 sps:$4 sm:$0xff]  }
 0x85b   :  { %3172 = vmatprep.subr.bf16.mxu0 %v4959_v56  ;;  %v5004_v56 = vld [vmem:[#allocation32 + $0x2e4] ss:$16 sps:$4 sm:$0xff]  }
 0x8f0   :  { %v4652_v3 = vpop.f32.mrb[8].mxu0 }
 0x8f1   :  { %v1607_v4 = vadd.f32 %v4652_v3, %v4181_v2  ;;  %v1598_v5 = vpop.f32.mrb[9].mxu0 }
 0x8f2   :  { %v1599_v6 = vadd.f32 %v4181_v2, %v1598_v5  ;;  %v4653_v7 = vpop.f32.mrb[10].mxu0 }
 0x8f3   :  { %v1610_v8 = vadd.f32 %v4653_v7, %v4181_v2  ;;  %v1601_v9 = vpop.f32.mrb[11].mxu0  ;;  %v1615_v11 = vmax.f32 %v1607_v4, 0.0 }
 0x8f4   :  { %v1602_v10 = vadd.f32 %v4181_v2, %v1601_v9  ;;  %v1613_v13 = vmax.f32 %v1599_v6, 0.0 }
 0x8f5   :  { %v1616_v12 = vmax.f32 %v1610_v8, 0.0 }
 0x8f6   :  { %v1614_v14 = vmax.f32 %v1602_v10, 0.0 }
 0x8f7   :  { %v1618_v15 = vpack.c.bf16 %v1616_v12, %v1615_v11  ;;  %v4957_v12 = vld [vmem:[#allocation32] ss:$16 sps:$4 sm:$0xff]  }
 0x8f8   :  { %v1617_v17 = vpack.c.bf16 %v1614_v14, %v1613_v13  ;;  %v4960_v13 = vld [vmem:[#allocation32 + $0x200] ss:$16 sps:$4 sm:$0xff]  }
 0x8fa   :  { %1760 = vmatmul.mubr.bf16.vlgmr.msra.gmra.mrb[24].mxu1 %v1617_v17  ;;  %v4968_v17 = vld [vmem:[#allocation32 + $0x224] ss:$16 sps:$4 sm:$0xff]  }
 0x8fb   :  { %1769 = vmatprep.mubr.bf16.mxu1 %v5877_v46  ;;  %2252 = vmatpush1.bf16.msra.mxu1 %v4864_v16  ;;  %v4902_v46 = vld [vmem:[#allocation31 + $0xcc] ss:$16 sps:$4 sm:$0xff]   ;;  %v4965_v16 = vld [vmem:[#allocation32 + $0x24] ss:$16 sps:$4 sm:$0xff]  }
 0x8fc   :  { %2253 = vmatprep.subr.bf16.mxu1 %v4872_v18 }
 0x8ff   :  { %2254 = vmatpush1.bf16.msra.mxu1 %v4870_v19 }
 0x900   :  { %2255 = vmatprep.subr.bf16.mxu1 %v4878_v20 }
 0x902   :  { %1770 = vmatmul.mubr.bf16.gmra.mrb[28].mxu1 %v1618_v15 }
 0x903   :  { %2256 = vmatpush1.bf16.msra.mxu1 %v4876_v21 }
 0x904   :  { %2257 = vmatprep.subr.bf16.mxu1 %v4884_v22 }
 0x907   :  { %2258 = vmatpush1.bf16.msra.mxu1 %v4882_v23  ;;  %v4963_v23 = vld [vmem:[#allocation32 + $0x20] ss:$16 sps:$4 sm:$0xff]  }
 0x908   :  { %2259 = vmatprep.subr.bf16.mxu1 %v4890_v24  ;;  %v4966_v24 = vld [vmem:[#allocation32 + $0x220] ss:$16 sps:$4 sm:$0xff]  }
 0x90b   :  { %2260 = vmatpush1.bf16.msra.mxu1 %v4888_v25 }
 0x90c   :  { %2261 = vmatprep.subr.bf16.mxu1 %v4896_v26 }
 0x90f   :  { %2262 = vmatpush1.bf16.msra.mxu1 %v4894_v27  ;;  %v4971_v27 = vld [vmem:[#allocation32 + $0x44] ss:$16 sps:$4 sm:$0xff]  }
 0x910   :  { %2263 = vmatprep.subr.bf16.mxu1 %v4902_v46  ;;  %v4974_v46 = vld [vmem:[#allocation32 + $0x244] ss:$16 sps:$4 sm:$0xff]  }
 0x913   :  { %2264 = vmatpush1.bf16.msra.mxu1 %v4900_v28 }
 0x914   :  { %2265 = vmatprep.subr.bf16.mxu1 %v4908_v29 }
 0x917   :  { %2266 = vmatpush1.bf16.msra.mxu1 %v4906_v30 }
 0x918   :  { %2267 = vmatprep.subr.bf16.mxu1 %v4914_v31 }
 0x91b   :  { %2268 = vmatpush1.bf16.msra.mxu1 %v4912_v32  ;;  %v4969_v32 = vld [vmem:[#allocation32 + $0x40] ss:$16 sps:$4 sm:$0xff]  }
 0x91c   :  { %2269 = vmatprep.subr.bf16.mxu1 %v4920_v33  ;;  %v4972_v33 = vld [vmem:[#allocation32 + $0x240] ss:$16 sps:$4 sm:$0xff]  }
 0x91f   :  { %2270 = vmatpush1.bf16.msra.mxu1 %v4918_v34  ;;  %v4977_v34 = vld [vmem:[#allocation32 + $0x64] ss:$16 sps:$4 sm:$0xff]  }
 0x920   :  { %2271 = vmatprep.subr.bf16.mxu1 %v4926_v35  ;;  %v4980_v35 = vld [vmem:[#allocation32 + $0x264] ss:$16 sps:$4 sm:$0xff]  }
 0x923   :  { %2272 = vmatpush1.bf16.msra.mxu1 %v4924_v36  ;;  %v4975_v36 = vld [vmem:[#allocation32 + $0x60] ss:$16 sps:$4 sm:$0xff]  }
 0x924   :  { %2273 = vmatprep.subr.bf16.mxu1 %v4932_v37  ;;  %v4978_v37 = vld [vmem:[#allocation32 + $0x260] ss:$16 sps:$4 sm:$0xff]  }
 0x927   :  { %2274 = vmatpush1.bf16.msra.mxu1 %v4930_v38  ;;  %v4983_v38 = vld [vmem:[#allocation32 + $0x84] ss:$16 sps:$4 sm:$0xff]  }
 0x928   :  { %2275 = vmatprep.subr.bf16.mxu1 %v4938_v40  ;;  %v4986_v40 = vld [vmem:[#allocation32 + $0x284] ss:$16 sps:$4 sm:$0xff]  }
 0x92b   :  { %2276 = vmatpush1.bf16.msra.mxu1 %v4936_v44  ;;  %v4981_v44 = vld [vmem:[#allocation32 + $0x80] ss:$16 sps:$4 sm:$0xff]  }
 0x92c   :  { %2277 = vmatprep.subr.bf16.mxu1 %v4944_v47  ;;  %v4984_v47 = vld [vmem:[#allocation32 + $0x280] ss:$16 sps:$4 sm:$0xff]  }
 0x92f   :  { %2278 = vmatpush1.bf16.msra.mxu1 %v4942_v48  ;;  %v4989_v48 = vld [vmem:[#allocation32 + $0xa4] ss:$16 sps:$4 sm:$0xff]  }
 0x930   :  { %2279 = vmatprep.subr.bf16.mxu1 %v4950_v50  ;;  %v4987_v50 = vld [vmem:[#allocation32 + $0xa0] ss:$16 sps:$4 sm:$0xff]  }
 0x933   :  { %2280 = vmatpush1.bf16.msra.mxu1 %v4948_v51  ;;  %v4995_v51 = vld [vmem:[#allocation32 + $0xc4] ss:$16 sps:$4 sm:$0xff]  }
 0x934   :  { %2281 = vmatprep.subr.bf16.mxu1 %v4956_v53  ;;  %v4993_v53 = vld [vmem:[#allocation32 + $0xc0] ss:$16 sps:$4 sm:$0xff]  }
 0x937   :  { %2282 = vmatpush1.bf16.msra.mxu1 %v4954_v55  ;;  %v5001_v55 = vld [vmem:[#allocation32 + $0xe4] ss:$16 sps:$4 sm:$0xff]  }
 0x938   :  { %3213 = vmatprep.subr.bf16.mxu1 %v4962_v57  ;;  %v4999_v57 = vld [vmem:[#allocation32 + $0xe0] ss:$16 sps:$4 sm:$0xff]  }
 0x9cd   :  { %v1761_v61 = vpop.f32.mrb[24].mxu1 }
 0x9ce   :  { %v1762_v62 = vadd.f32 %v1761_v61, %v1640_v59  ;;  %v1763_v63 = vpop.f32.mrb[25].mxu1  ;;  %v5005_v61 = vld [vmem:[#allocation32 + $0x100] ss:$16 sps:$4 sm:$0xff]  }
 0x9cf   :  { %v1764_v0 = vadd.f32 %v1763_v63, %v1644_v60  ;;  %v1765_v1 = vpop.f32.mrb[26].mxu1  ;;  %v5013_v63 = vld [vmem:[#allocation32 + $0x124] ss:$16 sps:$4 sm:$0xff]  }
 0x9d0   :  { %v1766_v2 = vadd.f32 %v1765_v1, %v1640_v59  ;;  %v1767_v3 = vpop.f32.mrb[27].mxu1  ;;  %v1780_v5 = vmax.f32 %v1762_v62, 0.0  ;;  %v5008_v62 = vld [vmem:[#allocation32 + $0x300] ss:$16 sps:$4 sm:$0xff]  }
 0x9d1   :  { %v1768_v4 = vadd.f32 %v1767_v3, %v1644_v60  ;;  %v1781_v7 = vmax.f32 %v1764_v0, 0.0  ;;  %v5016_v0 = vld [vmem:[#allocation32 + $0x324] ss:$16 sps:$4 sm:$0xff]   ;;  %v5011_v1 = vld [vmem:[#allocation32 + $0x120] ss:$16 sps:$4 sm:$0xff]  }
 0x9d2   :  { %v1782_v6 = vmax.f32 %v1766_v2, 0.0  ;;  %v5014_v2 = vld [vmem:[#allocation32 + $0x320] ss:$16 sps:$4 sm:$0xff]   ;;  %v5019_v3 = vld [vmem:[#allocation32 + $0x144] ss:$16 sps:$4 sm:$0xff]  }
 0x9d3   :  { %v1783_v8 = vmax.f32 %v1768_v4, 0.0  ;;  %v5022_v4 = vld [vmem:[#allocation32 + $0x344] ss:$16 sps:$4 sm:$0xff]  }
 0x9d4   :  { %v1788_v9 = vpack.c.bf16 %v1782_v6, %v1780_v5  ;;  %v5017_v5 = vld [vmem:[#allocation32 + $0x140] ss:$16 sps:$4 sm:$0xff]  }
 0x9d5   :  { %v1789_v10 = vpack.c.bf16 %v1783_v8, %v1781_v7  ;;  %v1771_v11 = vpop.f32.mrb[28].mxu1  ;;  %v5020_v6 = vld [vmem:[#allocation32 + $0x340] ss:$16 sps:$4 sm:$0xff]   ;;  %v5025_v7 = vld [vmem:[#allocation32 + $0x164] ss:$16 sps:$4 sm:$0xff]  }
 0x9d6   :  { %v1772_v14 = vadd.f32 %v1771_v11, %v1640_v59  ;;  %v1773_v15 = vpop.f32.mrb[29].mxu1  ;;  %v5028_v8 = vld [vmem:[#allocation32 + $0x364] ss:$16 sps:$4 sm:$0xff]  }
 0x9d7   :  { %v1774_v18 = vadd.f32 %v1773_v15, %v1644_v60  ;;  %v1775_v19 = vpop.f32.mrb[30].mxu1  ;;  %2230 = vmatprep.mubr.bf16.mxu0 %v1789_v10  ;;  %2283 = vmatprep.mubr.bf16.mxu1 %v1789_v10  ;;  %v5026_v10 = vld [vmem:[#allocation32 + $0x360] ss:$16 sps:$4 sm:$0xff]   ;;  %v5031_v11 = vld [vmem:[#allocation32 + $0x184] ss:$16 sps:$4 sm:$0xff]  }
 0x9d8   :  { %v1776_v20 = vadd.f32 %v1775_v19, %v1640_v59  ;;  %v1777_v21 = vpop.f32.mrb[31].mxu1  ;;  %2231 = vmatmul.mubr.bf16.vlgmr.msra.gmra.mrb[12].mxu0 %v1788_v9  ;;  %2284 = vmatmul.mubr.bf16.vlgmr.msra.gmra.mrb[32].mxu1 %v1788_v9  ;;  %v1784_v25 = vmax.f32 %v1772_v14, 0.0  ;;  %v5007_v59 = vld [vmem:[#allocation32 + $0x104] ss:$16 sps:$4 sm:$0xff]   ;;  %v5023_v9 = vld [vmem:[#allocation32 + $0x160] ss:$16 sps:$4 sm:$0xff]  }
 0x9d9   :  { %v1778_v22 = vadd.f32 %v1777_v21, %v1644_v60  ;;  %3173 = vmatpush1.bf16.msra.mxu0 %v4957_v12  ;;  %3214 = vmatpush1.bf16.msra.mxu1 %v4960_v13  ;;  %v1785_v28 = vmax.f32 %v1774_v18, 0.0  ;;  %v5010_v60 = vld [vmem:[#allocation32 + $0x304] ss:$16 sps:$4 sm:$0xff]   ;;  %v5029_v13 = vld [vmem:[#allocation32 + $0x180] ss:$16 sps:$4 sm:$0xff]  }
 0x9da   :  { %v1786_v26 = vmax.f32 %v1776_v20, 0.0  ;;  %3174 = vmatprep.subr.bf16.mxu0 %v4965_v16  ;;  %3215 = vmatprep.subr.bf16.mxu1 %v4968_v17  ;;  %v5034_v12 = vld [vmem:[#allocation32 + $0x384] ss:$16 sps:$4 sm:$0xff]   ;;  %v5032_v14 = vld [vmem:[#allocation32 + $0x380] ss:$16 sps:$4 sm:$0xff]  }
 0x9db   :  { %v1787_v29 = vmax.f32 %v1778_v22, 0.0  ;;  %v5037_v15 = vld [vmem:[#allocation32 + $0x1a4] ss:$16 sps:$4 sm:$0xff]   ;;  %v5035_v17 = vld [vmem:[#allocation32 + $0x1a0] ss:$16 sps:$4 sm:$0xff]  }
 0x9dc   :  { %v1790_v30 = vpack.c.bf16 %v1786_v26, %v1784_v25  ;;  %v5040_v16 = vld [vmem:[#allocation32 + $0x3a4] ss:$16 sps:$4 sm:$0xff]   ;;  %v5038_v18 = vld [vmem:[#allocation32 + $0x3a0] ss:$16 sps:$4 sm:$0xff]  }
 0x9dd   :  { %v1791_v31 = vpack.c.bf16 %v1787_v29, %v1785_v28  ;;  %3175 = vmatpush1.bf16.msra.mxu0 %v4963_v23  ;;  %3216 = vmatpush1.bf16.msra.mxu1 %v4966_v24  ;;  %v5043_v19 = vld [vmem:[#allocation32 + $0x1c4] ss:$16 sps:$4 sm:$0xff]   ;;  %v5041_v21 = vld [vmem:[#allocation32 + $0x1c0] ss:$16 sps:$4 sm:$0xff]   ;;  %v1868_v28 = vsub.s32 2, %v6174_v42 }
 0x9de   :  { %3176 = vmatprep.subr.bf16.mxu0 %v4971_v27  ;;  %3217 = vmatprep.subr.bf16.mxu1 %v4974_v46  ;;  %v5046_v20 = vld [vmem:[#allocation32 + $0x3c4] ss:$16 sps:$4 sm:$0xff]   ;;  %v5044_v22 = vld [vmem:[#allocation32 + $0x3c0] ss:$16 sps:$4 sm:$0xff]   ;;  %v5055_v27 = vld [vmem:[#allocation32 + $0xc] ss:$16 sps:$4 sm:$0xff]  }
 0x9df   :  { %2240 = vmatprep.mubr.bf16.mxu0 %v1791_v31  ;;  %2293 = vmatprep.mubr.bf16.mxu1 %v1791_v31  ;;  %v5049_v23 = vld [vmem:[#allocation32 + $0x1e4] ss:$16 sps:$4 sm:$0xff]   ;;  %v5047_v25 = vld [vmem:[#allocation32 + $0x1e0] ss:$16 sps:$4 sm:$0xff]   ;;  %v5058_v46 = vld [vmem:[#allocation32 + $0x20c] ss:$16 sps:$4 sm:$0xff]  }
 0x9e0   :  { %2241 = vmatmul.mubr.bf16.gmra.mrb[16].mxu0 %v1790_v30  ;;  %2294 = vmatmul.mubr.bf16.gmra.mrb[36].mxu1 %v1790_v30  ;;  %v5052_v24 = vld [vmem:[#allocation32 + $0x3e4] ss:$16 sps:$4 sm:$0xff]   ;;  %v5050_v26 = vld [vmem:[#allocation32 + $0x3e0] ss:$16 sps:$4 sm:$0xff]   ;;  %v1872_v30 = vsub.s32 3, %v6174_v42 }
 0x9e1   :  { %3177 = vmatpush1.bf16.msra.mxu0 %v4969_v32  ;;  %3218 = vmatpush1.bf16.msra.mxu1 %v4972_v33  ;;  %v1856_v29 = vld [vmem:[%s6321_s9] sm:$0xf]  ;;  %v5242_v42 = vld [vmem:[#allocation35 + $0x1f0] ss:$8 sps:$4 sm:$0xff]  }
 0x9e2   :  { %3178 = vmatprep.subr.bf16.mxu0 %v4977_v34  ;;  %3219 = vmatprep.subr.bf16.mxu1 %v4980_v35  ;;  %v1861_v31 = vrot.slane %v1856_v29, %v6177_v43  ;;  %v1869_v32 = vrot.slane %v1856_v29, %v1868_v28  ;;  %v1865_v33 = vrot.slane %v1856_v29, %v6181_v45 }
 0x9e3   :  { %v1873_v34 = vrot.slane %v1856_v29, %v1872_v30 }
 0x9e5   :  { %3179 = vmatpush1.bf16.msra.mxu0 %v4975_v36  ;;  %3220 = vmatpush1.bf16.msra.mxu1 %v4978_v37 }
 0x9e6   :  { %3180 = vmatprep.subr.bf16.mxu0 %v4983_v38  ;;  %3221 = vmatprep.subr.bf16.mxu1 %v4986_v40 }
 0x9e9   :  { %3181 = vmatpush1.bf16.msra.mxu0 %v4981_v44  ;;  %3222 = vmatpush1.bf16.msra.mxu1 %v4984_v47 }
 0x9ea   :  { %3182 = vmatprep.subr.bf16.mxu0 %v4989_v48  ;;  %3223 = vmatprep.subr.bf16.mxu1 %v4992_v49 }
 0x9ed   :  { %3183 = vmatpush1.bf16.msra.mxu0 %v4987_v50  ;;  %3224 = vmatpush1.bf16.msra.mxu1 %v4990_v41 }
 0x9ee   :  { %3184 = vmatprep.subr.bf16.mxu0 %v4995_v51  ;;  %3225 = vmatprep.subr.bf16.mxu1 %v4998_v52 }
 0x9f1   :  { %3185 = vmatpush1.bf16.msra.mxu0 %v4993_v53  ;;  %3226 = vmatpush1.bf16.msra.mxu1 %v4996_v54 }
 0x9f2   :  { %3186 = vmatprep.subr.bf16.mxu0 %v5001_v55  ;;  %3227 = vmatprep.subr.bf16.mxu1 %v5004_v56 }
 0x9f5   :  { %3187 = vmatpush1.bf16.msra.mxu0 %v4999_v57  ;;  %3228 = vmatpush1.bf16.msra.mxu1 %v5002_v58 }
 0x9f6   :  { %3188 = vmatprep.subr.bf16.mxu0 %v5007_v59  ;;  %3229 = vmatprep.subr.bf16.mxu1 %v5010_v60 }
 0x9f9   :  { %3189 = vmatpush1.bf16.msra.mxu0 %v5005_v61  ;;  %3230 = vmatpush1.bf16.msra.mxu1 %v5008_v62 }
 0x9fa   :  { %3190 = vmatprep.subr.bf16.mxu0 %v5013_v63  ;;  %3231 = vmatprep.subr.bf16.mxu1 %v5016_v0 }
 0x9fd   :  { %3191 = vmatpush1.bf16.msra.mxu0 %v5011_v1  ;;  %3232 = vmatpush1.bf16.msra.mxu1 %v5014_v2 }
 0x9fe   :  { %3192 = vmatprep.subr.bf16.mxu0 %v5019_v3  ;;  %3233 = vmatprep.subr.bf16.mxu1 %v5022_v4 }
 0xa01   :  { %3193 = vmatpush1.bf16.msra.mxu0 %v5017_v5  ;;  %3234 = vmatpush1.bf16.msra.mxu1 %v5020_v6 }
 0xa02   :  { %3194 = vmatprep.subr.bf16.mxu0 %v5025_v7  ;;  %3235 = vmatprep.subr.bf16.mxu1 %v5028_v8 }
 0xa05   :  { %3195 = vmatpush1.bf16.msra.mxu0 %v5023_v9  ;;  %3236 = vmatpush1.bf16.msra.mxu1 %v5026_v10 }
 0xa06   :  { %3196 = vmatprep.subr.bf16.mxu0 %v5031_v11  ;;  %3237 = vmatprep.subr.bf16.mxu1 %v5034_v12 }
 0xa09   :  { %3197 = vmatpush1.bf16.msra.mxu0 %v5029_v13  ;;  %3238 = vmatpush1.bf16.msra.mxu1 %v5032_v14 }
 0xa0a   :  { %3198 = vmatprep.subr.bf16.mxu0 %v5037_v15  ;;  %3239 = vmatprep.subr.bf16.mxu1 %v5040_v16 }
 0xa0d   :  { %3199 = vmatpush1.bf16.msra.mxu0 %v5035_v17  ;;  %3240 = vmatpush1.bf16.msra.mxu1 %v5038_v18 }
 0xa0e   :  { %3200 = vmatprep.subr.bf16.mxu0 %v5043_v19  ;;  %3241 = vmatprep.subr.bf16.mxu1 %v5046_v20 }
 0xa11   :  { %3201 = vmatpush1.bf16.msra.mxu0 %v5041_v21  ;;  %3242 = vmatpush1.bf16.msra.mxu1 %v5044_v22 }
 0xa12   :  { %3202 = vmatprep.subr.bf16.mxu0 %v5049_v23  ;;  %3243 = vmatprep.subr.bf16.mxu1 %v5052_v24 }
 0xa15   :  { %3203 = vmatpush1.bf16.msra.mxu0 %v5047_v25  ;;  %3244 = vmatpush1.bf16.msra.mxu1 %v5050_v26 }
 0xa16   :  { %3254 = vmatprep.subr.bf16.mxu0 %v5055_v27  ;;  %3295 = vmatprep.subr.bf16.mxu1 %v5058_v46 }
 0xaab   :  { %v2232_v35 = vpop.f32.mrb[12].mxu0  ;;  %v2285_v36 = vpop.f32.mrb[32].mxu1 }
 0xaac   :  { %v2233_v37 = vadd.f32 %v2232_v35, %v1861_v31  ;;  %v2286_v38 = vadd.f32 %v2285_v36, %v1869_v32  ;;  %v2234_v40 = vpop.f32.mrb[13].mxu0  ;;  %v2287_v44 = vpop.f32.mrb[33].mxu1 }
 0xaad   :  { %v2235_v47 = vadd.f32 %v2234_v40, %v1865_v33  ;;  %v2288_v48 = vadd.f32 %v2287_v44, %v1873_v34  ;;  %v2236_v49 = vpop.f32.mrb[14].mxu0  ;;  %v2289_v50 = vpop.f32.mrb[34].mxu1 }
 0xaae   :  { %v2237_v41 = vadd.f32 %v2236_v49, %v1861_v31  ;;  %v2290_v51 = vadd.f32 %v2289_v50, %v1869_v32  ;;  %v2238_v52 = vpop.f32.mrb[15].mxu0  ;;  %v2291_v53 = vpop.f32.mrb[35].mxu1  ;;  %v2304_v56 = vmax.f32 %v2233_v37, 0.0  ;;  %v2306_v57 = vmax.f32 %v2286_v38, 0.0 }
 0xaaf   :  { %v2239_v54 = vadd.f32 %v2238_v52, %v1865_v33  ;;  %v2292_v55 = vadd.f32 %v2291_v53, %v1873_v34  ;;  %v2305_v60 = vmax.f32 %v2235_v47, 0.0  ;;  %v2307_v61 = vmax.f32 %v2288_v48, 0.0 }
 0xab0   :  { %v2308_v58 = vmax.f32 %v2237_v41, 0.0  ;;  %v2310_v59 = vmax.f32 %v2290_v51, 0.0 }
 0xab1   :  { %v2309_v62 = vmax.f32 %v2239_v54, 0.0  ;;  %v2311_v63 = vmax.f32 %v2292_v55, 0.0 }
 0xab2   :  { %v2320_v0 = vmax.f32 %v2304_v56, %v2308_v58  ;;  %v2334_v1 = vmax.f32 %v2306_v57, %v2310_v59 }
 0xab3   :  { %v2327_v2 = vmax.f32 %v2305_v60, %v2309_v62  ;;  %v2341_v3 = vmax.f32 %v2307_v61, %v2311_v63  ;;  %v2242_v4 = vpop.f32.mrb[16].mxu0  ;;  %v2295_v5 = vpop.f32.mrb[36].mxu1 }
 0xab4   :  { %v2321_v6 = vrot.slane %v2320_v0, 4  ;;  %v2335_v7 = vrot.slane %v2334_v1, 4  ;;  %v2244_v8 = vpop.f32.mrb[17].mxu0  ;;  %v2297_v9 = vpop.f32.mrb[37].mxu1  ;;  %v2243_v14 = vadd.f32 %v2242_v4, %v1861_v31  ;;  %v2296_v15 = vadd.f32 %v2295_v5, %v1869_v32 }
 0xab5   :  { %v2328_v10 = vrot.slane %v2327_v2, 4  ;;  %v2342_v11 = vrot.slane %v2341_v3, 4  ;;  %v2246_v12 = vpop.f32.mrb[18].mxu0  ;;  %v2299_v13 = vpop.f32.mrb[38].mxu1  ;;  %v2245_v18 = vadd.f32 %v2244_v8, %v1865_v33  ;;  %v2298_v19 = vadd.f32 %v2297_v9, %v1873_v34 }
 0xab6   :  { %v2248_v16 = vpop.f32.mrb[19].mxu0  ;;  %v2301_v17 = vpop.f32.mrb[39].mxu1  ;;  %v2322_v20 = vmax.f32 %v2320_v0, %v2321_v6  ;;  %v2336_v21 = vmax.f32 %v2334_v1, %v2335_v7  ;;  %v2247_v22 = vadd.f32 %v2246_v12, %v1861_v31  ;;  %v2300_v23 = vadd.f32 %v2299_v13, %v1869_v32 }
 0xab7   :  { %v2329_v24 = vmax.f32 %v2327_v2, %v2328_v10  ;;  %v2343_v25 = vmax.f32 %v2341_v3, %v2342_v11  ;;  %v2249_v26 = vadd.f32 %v2248_v16, %v1865_v33  ;;  %v2302_v27 = vadd.f32 %v2301_v17, %v1873_v34 }
 0xab8   :  { %v2312_v46 = vmax.f32 %v2243_v14, 0.0  ;;  %v2314_v29 = vmax.f32 %v2296_v15, 0.0  ;;  %v2316_v35 = vmax.f32 %v2247_v22, 0.0  ;;  %v2318_v36 = vmax.f32 %v2300_v23, 0.0 }
 0xab9   :  { %v2313_v37 = vmax.f32 %v2245_v18, 0.0  ;;  %v2315_v38 = vmax.f32 %v2298_v19, 0.0  ;;  %v2317_v40 = vmax.f32 %v2249_v26, 0.0  ;;  %v2319_v44 = vmax.f32 %v2302_v27, 0.0 }
 0xaba   :  { %v2323_v47 = vrot.slane %v2322_v20, 2  ;;  %v2337_v48 = vrot.slane %v2336_v21, 2  ;;  %v2348_v49 = vmax.f32 %v2312_v46, %v2316_v35  ;;  %v2362_v50 = vmax.f32 %v2314_v29, %v2318_v36  ;;  %v5053_v46 = vld [vmem:[#allocation32 + $0x8] ss:$16 sps:$4 sm:$0xff]  }
 0xabb   :  { %v2330_v41 = vrot.slane %v2329_v24, 2  ;;  %v2344_v51 = vrot.slane %v2343_v25, 2  ;;  %v2355_v31 = vmax.f32 %v2313_v37, %v2317_v40  ;;  %v2369_v32 = vmax.f32 %v2315_v38, %v2319_v44  ;;  %v5056_v29 = vld [vmem:[#allocation32 + $0x208] ss:$16 sps:$4 sm:$0xff]   ;;  %v5061_v37 = vld [vmem:[#allocation32 + $0x2c] ss:$16 sps:$4 sm:$0xff]  }
 0xabc   :  { %v2349_v52 = vrot.slane %v2348_v49, 4  ;;  %v2363_v53 = vrot.slane %v2362_v50, 4  ;;  %v2324_v54 = vmax.f32 %v2322_v20, %v2323_v47  ;;  %v2338_v55 = vmax.f32 %v2336_v21, %v2337_v48  ;;  %v5064_v38 = vld [vmem:[#allocation32 + $0x22c] ss:$16 sps:$4 sm:$0xff]   ;;  %v5059_v40 = vld [vmem:[#allocation32 + $0x28] ss:$16 sps:$4 sm:$0xff]  }
 0xabd   :  { %v2356_v33 = vrot.slane %v2355_v31, 4  ;;  %v2370_v34 = vrot.slane %v2369_v32, 4  ;;  %v2331_v58 = vmax.f32 %v2329_v24, %v2330_v41  ;;  %v2345_v59 = vmax.f32 %v2343_v25, %v2344_v51  ;;  %v5062_v44 = vld [vmem:[#allocation32 + $0x228] ss:$16 sps:$4 sm:$0xff]   ;;  %v5067_v47 = vld [vmem:[#allocation32 + $0x4c] ss:$16 sps:$4 sm:$0xff]  }
 0xabe   :  { %v2350_v56 = vmax.f32 %v2348_v49, %v2349_v52  ;;  %v2364_v57 = vmax.f32 %v2362_v50, %v2363_v53  ;;  %v2325_v2 = vrot.slane %v2324_v54, 1  ;;  %v2339_v3 = vrot.slane %v2338_v55, 1  ;;  %v5070_v48 = vld [vmem:[#allocation32 + $0x24c] ss:$16 sps:$4 sm:$0xff]   ;;  %v5065_v49 = vld [vmem:[#allocation32 + $0x48] ss:$16 sps:$4 sm:$0xff]  }
 0xabf   :  { %v2357_v60 = vmax.f32 %v2355_v31, %v2356_v33  ;;  %v2371_v61 = vmax.f32 %v2369_v32, %v2370_v34  ;;  %v2332_v6 = vrot.slane %v2331_v58, 1  ;;  %v2346_v7 = vrot.slane %v2345_v59, 1  ;;  %v5068_v50 = vld [vmem:[#allocation32 + $0x248] ss:$16 sps:$4 sm:$0xff]   ;;  %v5073_v41 = vld [vmem:[#allocation32 + $0x6c] ss:$16 sps:$4 sm:$0xff]  }
 0xac0   :  { %v2351_v62 = vrot.slane %v2350_v56, 2  ;;  %v2365_v63 = vrot.slane %v2364_v57, 2  ;;  %v2326_v14 = vmax.f32 %v2324_v54, %v2325_v2  ;;  %v2340_v15 = vmax.f32 %v2338_v55, %v2339_v3  ;;  %v5076_v51 = vld [vmem:[#allocation32 + $0x26c] ss:$16 sps:$4 sm:$0xff]   ;;  %v5071_v31 = vld [vmem:[#allocation32 + $0x68] ss:$16 sps:$4 sm:$0xff]  }
 0xac1   :  { %v2358_v0 = vrot.slane %v2357_v60, 2  ;;  %v2372_v1 = vrot.slane %v2371_v61, 2  ;;  %v2333_v18 = vmax.f32 %v2331_v58, %v2332_v6  ;;  %v2347_v19 = vmax.f32 %v2345_v59, %v2346_v7  ;;  %v5074_v32 = vld [vmem:[#allocation32 + $0x268] ss:$16 sps:$4 sm:$0xff]   ;;  %v5079_v52 = vld [vmem:[#allocation32 + $0x8c] ss:$16 sps:$4 sm:$0xff]  }
 0xac2   :  { %v2352_v4 = vmax.f32 %v2350_v56, %v2351_v62  ;;  %v2366_v5 = vmax.f32 %v2364_v57, %v2365_v63  ;;  %v5082_v53 = vld [vmem:[#allocation32 + $0x28c] ss:$16 sps:$4 sm:$0xff]   ;;  %v5077_v33 = vld [vmem:[#allocation32 + $0x88] ss:$16 sps:$4 sm:$0xff]  }
 0xac3   :  { %v2359_v8 = vmax.f32 %v2357_v60, %v2358_v0  ;;  %v2373_v9 = vmax.f32 %v2371_v61, %v2372_v1  ;;  %v5080_v34 = vld [vmem:[#allocation32 + $0x288] ss:$16 sps:$4 sm:$0xff]   ;;  %v5085_v54 = vld [vmem:[#allocation32 + $0xac] ss:$16 sps:$4 sm:$0xff]  }
 0xac4   :  { %v2353_v10 = vrot.slane %v2352_v4, 1  ;;  %v2367_v11 = vrot.slane %v2366_v5, 1  ;;  %v5088_v55 = vld [vmem:[#allocation32 + $0x2ac] ss:$16 sps:$4 sm:$0xff]   ;;  %v5083_v56 = vld [vmem:[#allocation32 + $0xa8] ss:$16 sps:$4 sm:$0xff]  }
 0xac5   :  { %v2360_v12 = vrot.slane %v2359_v8, 1  ;;  %v2374_v13 = vrot.slane %v2373_v9, 1  ;;  %v5086_v57 = vld [vmem:[#allocation32 + $0x2a8] ss:$16 sps:$4 sm:$0xff]   ;;  %v5091_v58 = vld [vmem:[#allocation32 + $0xcc] ss:$16 sps:$4 sm:$0xff]  }
 0xac6   :  { %v2354_v16 = vmax.f32 %v2352_v4, %v2353_v10  ;;  %v2368_v17 = vmax.f32 %v2366_v5, %v2367_v11  ;;  %v5094_v59 = vld [vmem:[#allocation32 + $0x2cc] ss:$16 sps:$4 sm:$0xff]   ;;  %v5089_v60 = vld [vmem:[#allocation32 + $0xc8] ss:$16 sps:$4 sm:$0xff]  }
 0xac7   :  { %v2361_v20 = vmax.f32 %v2359_v8, %v2360_v12  ;;  %v2375_v21 = vmax.f32 %v2373_v9, %v2374_v13  ;;  %v5092_v61 = vld [vmem:[#allocation32 + $0x2c8] ss:$16 sps:$4 sm:$0xff]   ;;  %v5097_v62 = vld [vmem:[#allocation32 + $0xec] ss:$16 sps:$4 sm:$0xff]  }
 0xac8   :  { %v2384_v22 = vsel %vm823_vm1, %v2354_v16, %v2326_v14  ;;  %v2386_v23 = vsel %vm823_vm1, %v2368_v17, %v2340_v15  ;;  %v5100_v63 = vld [vmem:[#allocation32 + $0x2ec] ss:$16 sps:$4 sm:$0xff]   ;;  %v5095_v0 = vld [vmem:[#allocation32 + $0xe8] ss:$16 sps:$4 sm:$0xff]  }
 0xac9   :  { %v2385_v24 = vsel %vm823_vm1, %v2361_v20, %v2333_v18  ;;  %v2387_v25 = vsel %vm823_vm1, %v2375_v21, %v2347_v19  ;;  %v6226_v35 = vpack.c.bf16 %v2384_v22, %v2384_v22  ;;  %v6228_v36 = vpack.c.bf16 %v2386_v23, %v2386_v23  ;;  %v5098_v1 = vld [vmem:[#allocation32 + $0x2e8] ss:$16 sps:$4 sm:$0xff]   ;;  %v5103_v2 = vld [vmem:[#allocation32 + $0x10c] ss:$16 sps:$4 sm:$0xff]  }
 0xaca   :  { %v4399_v26 = vpack.c.bf16 %v2385_v24, %v2385_v24  ;;  %v4405_v27 = vpack.c.bf16 %v2387_v25, %v2387_v25  ;;  %v5106_v3 = vld [vmem:[#allocation32 + $0x30c] ss:$16 sps:$4 sm:$0xff]   ;;  %v5101_v4 = vld [vmem:[#allocation32 + $0x108] ss:$16 sps:$4 sm:$0xff]  }
 0xacb   :  { %v5104_v5 = vld [vmem:[#allocation32 + $0x308] ss:$16 sps:$4 sm:$0xff]   ;;  %v5109_v6 = vld [vmem:[#allocation32 + $0x12c] ss:$16 sps:$4 sm:$0xff]  }
 0xacc   :  { %4400 = vmatprep.mubr.msk.bf16.mxu0 %vm6187_vm3, %v4399_v26  ;;  %4406 = vmatprep.mubr.msk.bf16.mxu1 %vm6187_vm3, %v4405_v27  ;;  %v5112_v7 = vld [vmem:[#allocation32 + $0x32c] ss:$16 sps:$4 sm:$0xff]   ;;  %v5107_v8 = vld [vmem:[#allocation32 + $0x128] ss:$16 sps:$4 sm:$0xff]  }
 0xacd   :  { %4403 = vmatmul.mubr.msk.bf16.vlgmr.msra.gmra.mrb[20].mxu0 %vm6187_vm3, %v6226_v35  ;;  %4409 = vmatmul.mubr.msk.bf16.vlgmr.msra.gmra.mrb[40].mxu1 %vm6187_vm3, %v6228_v36  ;;  %v5110_v9 = vld [vmem:[#allocation32 + $0x328] ss:$16 sps:$4 sm:$0xff]   ;;  %v5115_v10 = vld [vmem:[#allocation32 + $0x14c] ss:$16 sps:$4 sm:$0xff]  }
 0xace   :  { %3255 = vmatpush1.bf16.msra.mxu0 %v5053_v46  ;;  %3296 = vmatpush1.bf16.msra.mxu1 %v5056_v29  ;;  %v5118_v11 = vld [vmem:[#allocation32 + $0x34c] ss:$16 sps:$4 sm:$0xff]   ;;  %v5113_v12 = vld [vmem:[#allocation32 + $0x148] ss:$16 sps:$4 sm:$0xff]  }
 0xacf   :  { %4412 = vmatprep.mubr.msk.bf16.mxu0 %vm6187_vm3, %v4399_v26  ;;  %4418 = vmatprep.mubr.msk.bf16.mxu1 %vm6187_vm3, %v4405_v27  ;;  %v5116_v13 = vld [vmem:[#allocation32 + $0x348] ss:$16 sps:$4 sm:$0xff]   ;;  %v5121_v14 = vld [vmem:[#allocation32 + $0x16c] ss:$16 sps:$4 sm:$0xff]  }
 0xad0   :  { %3256 = vmatprep.subr.bf16.mxu0 %v5061_v37  ;;  %3297 = vmatprep.subr.bf16.mxu1 %v5064_v38  ;;  %v5124_v15 = vld [vmem:[#allocation32 + $0x36c] ss:$16 sps:$4 sm:$0xff]   ;;  %v5119_v16 = vld [vmem:[#allocation32 + $0x168] ss:$16 sps:$4 sm:$0xff]  }
 0xad1   :  { %v5122_v17 = vld [vmem:[#allocation32 + $0x368] ss:$16 sps:$4 sm:$0xff]   ;;  %v5127_v18 = vld [vmem:[#allocation32 + $0x18c] ss:$16 sps:$4 sm:$0xff]  }
 0xad2   :  { %3257 = vmatpush1.bf16.msra.mxu0 %v5059_v40  ;;  %3298 = vmatpush1.bf16.msra.mxu1 %v5062_v44  ;;  %v5130_v19 = vld [vmem:[#allocation32 + $0x38c] ss:$16 sps:$4 sm:$0xff]   ;;  %v5125_v20 = vld [vmem:[#allocation32 + $0x188] ss:$16 sps:$4 sm:$0xff]  }
 0xad3   :  { %3258 = vmatprep.subr.bf16.mxu0 %v5067_v47  ;;  %3299 = vmatprep.subr.bf16.mxu1 %v5070_v48  ;;  %v5128_v21 = vld [vmem:[#allocation32 + $0x388] ss:$16 sps:$4 sm:$0xff]   ;;  %v5133_v22 = vld [vmem:[#allocation32 + $0x1ac] ss:$16 sps:$4 sm:$0xff]  }
 0xad4   :  { %v5136_v23 = vld [vmem:[#allocation32 + $0x3ac] ss:$16 sps:$4 sm:$0xff]   ;;  %v5131_v24 = vld [vmem:[#allocation32 + $0x1a8] ss:$16 sps:$4 sm:$0xff]  }
 0xad5   :  { %v5134_v25 = vld [vmem:[#allocation32 + $0x3a8] ss:$16 sps:$4 sm:$0xff]   ;;  %v5139_v26 = vld [vmem:[#allocation32 + $0x1cc] ss:$16 sps:$4 sm:$0xff]  }
 0xad6   :  { %3259 = vmatpush1.bf16.msra.mxu0 %v5065_v49  ;;  %3300 = vmatpush1.bf16.msra.mxu1 %v5068_v50  ;;  %v5142_v27 = vld [vmem:[#allocation32 + $0x3cc] ss:$16 sps:$4 sm:$0xff]   ;;  %v5137_v46 = vld [vmem:[#allocation32 + $0x1c8] ss:$16 sps:$4 sm:$0xff]  }
 0xad7   :  { %3260 = vmatprep.subr.bf16.mxu0 %v5073_v41  ;;  %3301 = vmatprep.subr.bf16.mxu1 %v5076_v51  ;;  %v5140_v29 = vld [vmem:[#allocation32 + $0x3c8] ss:$16 sps:$4 sm:$0xff]   ;;  %v5145_v37 = vld [vmem:[#allocation32 + $0x1ec] ss:$16 sps:$4 sm:$0xff]  }
 0xad8   :  { %v5148_v38 = vld [vmem:[#allocation32 + $0x3ec] ss:$16 sps:$4 sm:$0xff]   ;;  %v5143_v40 = vld [vmem:[#allocation32 + $0x1e8] ss:$16 sps:$4 sm:$0xff]  }
 0xad9   :  { %v5146_v44 = vld [vmem:[#allocation32 + $0x3e8] ss:$16 sps:$4 sm:$0xff]   ;;  %v5149_v48 = vld [vmem:[#allocation35] ss:$8 sps:$4 sm:$0xff]   ;;  %v5152_v50 = vld [vmem:[#allocation35 + $0x10] ss:$8 sps:$4 sm:$0xff]  }
 0xada   :  { %3261 = vmatpush1.bf16.msra.mxu0 %v5071_v31  ;;  %3302 = vmatpush1.bf16.msra.mxu1 %v5074_v32  ;;  %v5151_v47 = vld [vmem:[#allocation35 + $0x4] ss:$8 sps:$4 sm:$0xff]   ;;  %v5154_v49 = vld [vmem:[#allocation35 + $0x14] ss:$8 sps:$4 sm:$0xff]   ;;  %v5155_v51 = vld [vmem:[#allocation35 + $0x20] ss:$8 sps:$4 sm:$0xff]  }
 0xadb   :  { %3262 = vmatprep.subr.bf16.mxu0 %v5079_v52  ;;  %3303 = vmatprep.subr.bf16.mxu1 %v5082_v53  ;;  %v5157_v41 = vld [vmem:[#allocation35 + $0x24] ss:$8 sps:$4 sm:$0xff]   ;;  %v5160_v31 = vld [vmem:[#allocation35 + $0x34] ss:$8 sps:$4 sm:$0xff]   ;;  %v5158_v32 = vld [vmem:[#allocation35 + $0x30] ss:$8 sps:$4 sm:$0xff]  }
 0xadc   :  { %v5163_v52 = vld [vmem:[#allocation35 + $0x44] ss:$8 sps:$4 sm:$0xff]   ;;  %v5161_v53 = vld [vmem:[#allocation35 + $0x40] ss:$8 sps:$4 sm:$0xff]  }
 0xade   :  { %3263 = vmatpush1.bf16.msra.mxu0 %v5077_v33  ;;  %3304 = vmatpush1.bf16.msra.mxu1 %v5080_v34  ;;  %v5164_v33 = vld [vmem:[#allocation35 + $0x50] ss:$8 sps:$4 sm:$0xff]   ;;  %v5172_v34 = vld [vmem:[#allocation35 + $0x74] ss:$8 sps:$4 sm:$0xff]  }
 0xadf   :  { %3264 = vmatprep.subr.bf16.mxu0 %v5085_v54  ;;  %3305 = vmatprep.subr.bf16.mxu1 %v5088_v55  ;;  %v5170_v54 = vld [vmem:[#allocation35 + $0x70] ss:$8 sps:$4 sm:$0xff]   ;;  %v5175_v55 = vld [vmem:[#allocation35 + $0x84] ss:$8 sps:$4 sm:$0xff]  }
 0xae2   :  { %3265 = vmatpush1.bf16.msra.mxu0 %v5083_v56  ;;  %3306 = vmatpush1.bf16.msra.mxu1 %v5086_v57  ;;  %v5173_v56 = vld [vmem:[#allocation35 + $0x80] ss:$8 sps:$4 sm:$0xff]   ;;  %v5178_v57 = vld [vmem:[#allocation35 + $0x94] ss:$8 sps:$4 sm:$0xff]  }
 0xae3   :  { %3266 = vmatprep.subr.bf16.mxu0 %v5091_v58  ;;  %3307 = vmatprep.subr.bf16.mxu1 %v5094_v59  ;;  %v5176_v58 = vld [vmem:[#allocation35 + $0x90] ss:$8 sps:$4 sm:$0xff]   ;;  %v5181_v59 = vld [vmem:[#allocation35 + $0xa4] ss:$8 sps:$4 sm:$0xff]  }
 0xae6   :  { %3267 = vmatpush1.bf16.msra.mxu0 %v5089_v60  ;;  %3308 = vmatpush1.bf16.msra.mxu1 %v5092_v61  ;;  %v5179_v60 = vld [vmem:[#allocation35 + $0xa0] ss:$8 sps:$4 sm:$0xff]   ;;  %v5184_v61 = vld [vmem:[#allocation35 + $0xb4] ss:$8 sps:$4 sm:$0xff]  }
 0xae7   :  { %3268 = vmatprep.subr.bf16.mxu0 %v5097_v62  ;;  %3309 = vmatprep.subr.bf16.mxu1 %v5100_v63  ;;  %v5182_v62 = vld [vmem:[#allocation35 + $0xb0] ss:$8 sps:$4 sm:$0xff]   ;;  %v5187_v63 = vld [vmem:[#allocation35 + $0xc4] ss:$8 sps:$4 sm:$0xff]  }
 0xaea   :  { %3269 = vmatpush1.bf16.msra.mxu0 %v5095_v0  ;;  %3310 = vmatpush1.bf16.msra.mxu1 %v5098_v1  ;;  %v5185_v0 = vld [vmem:[#allocation35 + $0xc0] ss:$8 sps:$4 sm:$0xff]   ;;  %v5190_v1 = vld [vmem:[#allocation35 + $0xd4] ss:$8 sps:$4 sm:$0xff]  }
 0xaeb   :  { %3270 = vmatprep.subr.bf16.mxu0 %v5103_v2  ;;  %3311 = vmatprep.subr.bf16.mxu1 %v5106_v3  ;;  %v5188_v2 = vld [vmem:[#allocation35 + $0xd0] ss:$8 sps:$4 sm:$0xff]   ;;  %v5193_v3 = vld [vmem:[#allocation35 + $0xe4] ss:$8 sps:$4 sm:$0xff]  }
 0xaee   :  { %3271 = vmatpush1.bf16.msra.mxu0 %v5101_v4  ;;  %3312 = vmatpush1.bf16.msra.mxu1 %v5104_v5  ;;  %v5191_v4 = vld [vmem:[#allocation35 + $0xe0] ss:$8 sps:$4 sm:$0xff]   ;;  %v5196_v5 = vld [vmem:[#allocation35 + $0xf4] ss:$8 sps:$4 sm:$0xff]  }
 0xaef   :  { %3272 = vmatprep.subr.bf16.mxu0 %v5109_v6  ;;  %3313 = vmatprep.subr.bf16.mxu1 %v5112_v7  ;;  %v5194_v6 = vld [vmem:[#allocation35 + $0xf0] ss:$8 sps:$4 sm:$0xff]   ;;  %v5199_v7 = vld [vmem:[#allocation35 + $0x104] ss:$8 sps:$4 sm:$0xff]  }
 0xaf2   :  { %3273 = vmatpush1.bf16.msra.mxu0 %v5107_v8  ;;  %3314 = vmatpush1.bf16.msra.mxu1 %v5110_v9  ;;  %v5245_v8 = vld [vmem:[%s6025_s24 + $0x40] sm:$0xff]  }
 0xaf3   :  { %3274 = vmatprep.subr.bf16.mxu0 %v5115_v10  ;;  %3315 = vmatprep.subr.bf16.mxu1 %v5118_v11  ;;  %v5246_v9 = vld [vmem:[%s6025_s24] sm:$0xff]   ;;  %v5247_v10 = vld [vmem:[%s6025_s24 + $0x48] sm:$0xff]  }
 0xaf4   :  { %v5248_v11 = vld [vmem:[%s6025_s24 + $0x8] sm:$0xff]  }
 0xaf6   :  { %3275 = vmatpush1.bf16.msra.mxu0 %v5113_v12  ;;  %3316 = vmatpush1.bf16.msra.mxu1 %v5116_v13  ;;  %v5249_v12 = vld [vmem:[%s6025_s24 + $0x50] sm:$0xff]  }
 0xaf7   :  { %3276 = vmatprep.subr.bf16.mxu0 %v5121_v14  ;;  %3317 = vmatprep.subr.bf16.mxu1 %v5124_v15  ;;  %v5250_v13 = vld [vmem:[%s6025_s24 + $0x10] sm:$0xff]   ;;  %v5251_v14 = vld [vmem:[%s6025_s24 + $0x58] sm:$0xff]  }
 0xaf8   :  { %v5252_v15 = vld [vmem:[%s6025_s24 + $0x18] sm:$0xff]  }
 0xafa   :  { %3277 = vmatpush1.bf16.msra.mxu0 %v5119_v16  ;;  %3318 = vmatpush1.bf16.msra.mxu1 %v5122_v17  ;;  %v5253_v16 = vld [vmem:[%s6025_s24 + $0x60] sm:$0xff]  }
 0xafb   :  { %3278 = vmatprep.subr.bf16.mxu0 %v5127_v18  ;;  %3319 = vmatprep.subr.bf16.mxu1 %v5130_v19  ;;  %v5254_v17 = vld [vmem:[%s6025_s24 + $0x20] sm:$0xff]   ;;  %v5255_v18 = vld [vmem:[%s6025_s24 + $0x68] sm:$0xff]  }
 0xafc   :  { %v5256_v19 = vld [vmem:[%s6025_s24 + $0x28] sm:$0xff]  }
 0xafe   :  { %3279 = vmatpush1.bf16.msra.mxu0 %v5125_v20  ;;  %3320 = vmatpush1.bf16.msra.mxu1 %v5128_v21  ;;  %v2528_v20 = vld [vmem:[#allocation2] sm:$0xff] }
 0xaff   :  { %3280 = vmatprep.subr.bf16.mxu0 %v5133_v22  ;;  %3321 = vmatprep.subr.bf16.mxu1 %v5136_v23  ;;  %v6262_v21 = vld [vmem:[#allocation34] sm:$0xf]  ;;  %v2529_v22 = vld [vmem:[#allocation2 + $0x8] sm:$0xff] }
 0xb02   :  { %3281 = vmatpush1.bf16.msra.mxu0 %v5131_v24  ;;  %3322 = vmatpush1.bf16.msra.mxu1 %v5134_v25 }
 0xb03   :  { %3282 = vmatprep.subr.bf16.mxu0 %v5139_v26  ;;  %3323 = vmatprep.subr.bf16.mxu1 %v5142_v27  ;;  %v3341_v26 = vrot.slane %v6262_v21, %v6177_v43 }
 0xb06   :  { %3283 = vmatpush1.bf16.msra.mxu0 %v5137_v46  ;;  %3324 = vmatpush1.bf16.msra.mxu1 %v5140_v29 }
 0xb07   :  { %3284 = vmatprep.subr.bf16.mxu0 %v5145_v37  ;;  %3325 = vmatprep.subr.bf16.mxu1 %v5148_v38  ;;  %v3345_v37 = vrot.slane %v6262_v21, %v6181_v45 }
 0xb0a   :  { %3285 = vmatpush1.bf16.msra.mxu0 %v5143_v40  ;;  %3326 = vmatpush1.bf16.msra.mxu1 %v5146_v44 }
 0xb0b   :  { %3766 = vmatprep.subr.bf16.mxu0 %v5151_v47  ;;  %4560 = vmatprep.subr.bf16.mxu1 %v5245_v8  ;;  %v5233_v8 = vld [vmem:[#allocation35 + $0x1c0] ss:$8 sps:$4 sm:$0xff]  }
 0xb0d   :  { %4415 = vmatmul.mubr.msk.bf16.vlgmr.msra.gmra.mrb[24].mxu0 %vm6187_vm3, %v6226_v35  ;;  %4421 = vmatmul.mubr.msk.bf16.vlgmr.msra.gmra.mrb[44].mxu1 %vm6187_vm3, %v6228_v36  ;;  %v5166_v35 = vld [vmem:[#allocation35 + $0x54] ss:$8 sps:$4 sm:$0xff]   ;;  %v5167_v36 = vld [vmem:[#allocation35 + $0x60] ss:$8 sps:$4 sm:$0xff]  }
 0xb0e   :  { %3767 = vmatpush1.bf16.msra.mxu0 %v5149_v48  ;;  %4561 = vmatpush3.bf16.msra.mxu1 %v5246_v9  ;;  %v5238_v9 = vld [vmem:[#allocation35 + $0x1d4] ss:$8 sps:$4 sm:$0xff]  }
 0xb0f   :  { %3768 = vmatprep.subr.bf16.mxu0 %v5154_v49  ;;  %4562 = vmatprep.subr.bf16.mxu1 %v5247_v10  ;;  %v2530_v10 = vld [vmem:[#allocation2 + $0x10] sm:$0xff] }
 0xb12   :  { %3769 = vmatpush1.bf16.msra.mxu0 %v5152_v50  ;;  %4563 = vmatpush3.bf16.msra.mxu1 %v5248_v11  ;;  %v5236_v11 = vld [vmem:[#allocation35 + $0x1d0] ss:$8 sps:$4 sm:$0xff]  }
 0xb13   :  { %3770 = vmatprep.subr.bf16.mxu0 %v5157_v41  ;;  %4564 = vmatprep.subr.bf16.mxu1 %v5249_v12  ;;  %v2531_v12 = vld [vmem:[#allocation2 + $0x18] sm:$0xff] }
 0xb16   :  { %3771 = vmatpush1.bf16.msra.mxu0 %v5155_v51  ;;  %4565 = vmatpush3.bf16.msra.mxu1 %v5250_v13  ;;  %v5241_v13 = vld [vmem:[#allocation35 + $0x1e4] ss:$8 sps:$4 sm:$0xff]  }
 0xb17   :  { %3772 = vmatprep.subr.bf16.mxu0 %v5160_v31  ;;  %4566 = vmatprep.subr.bf16.mxu1 %v5251_v14 }
 0xb1a   :  { %3773 = vmatpush1.bf16.msra.mxu0 %v5158_v32  ;;  %4567 = vmatpush3.bf16.msra.mxu1 %v5252_v15 }
 0xb1b   :  { %3774 = vmatprep.subr.bf16.mxu0 %v5163_v52  ;;  %4568 = vmatprep.subr.bf16.mxu1 %v5253_v16  ;;  %v5197_v52 = vld [vmem:[#allocation35 + $0x100] ss:$8 sps:$4 sm:$0xff]  }
 0xb1e   :  { %3775 = vmatpush1.bf16.msra.mxu0 %v5161_v53  ;;  %4569 = vmatpush3.bf16.msra.mxu1 %v5254_v17  ;;  %v3349_v17 = vrot.slane %v6262_v21, %v1868_v28 }
 0xb1f   :  { %3776 = vmatprep.subr.bf16.mxu0 %v5166_v35  ;;  %4570 = vmatprep.subr.bf16.mxu1 %v5255_v18  ;;  %v5202_v35 = vld [vmem:[#allocation35 + $0x114] ss:$8 sps:$4 sm:$0xff]  }
 0xb22   :  { %3777 = vmatpush1.bf16.msra.mxu0 %v5164_v33  ;;  %4571 = vmatpush3.bf16.msra.mxu1 %v5256_v19  ;;  %v5200_v33 = vld [vmem:[#allocation35 + $0x110] ss:$8 sps:$4 sm:$0xff]  }
 0xb23   :  { %3778 = vmatprep.subr.bf16.mxu0 %v5169_v39  ;;  %v5205_v39 = vld [vmem:[#allocation35 + $0x124] ss:$8 sps:$4 sm:$0xff]  }
 0xb26   :  { %3779 = vmatpush1.bf16.msra.mxu0 %v5167_v36  ;;  %v5203_v36 = vld [vmem:[#allocation35 + $0x120] ss:$8 sps:$4 sm:$0xff]  }
 0xb27   :  { %3780 = vmatprep.subr.bf16.mxu0 %v5172_v34  ;;  %v5208_v34 = vld [vmem:[#allocation35 + $0x134] ss:$8 sps:$4 sm:$0xff]  }
 0xb2a   :  { %3781 = vmatpush1.bf16.msra.mxu0 %v5170_v54  ;;  %v5206_v54 = vld [vmem:[#allocation35 + $0x130] ss:$8 sps:$4 sm:$0xff]  }
 0xb2b   :  { %3782 = vmatprep.subr.bf16.mxu0 %v5175_v55  ;;  %v5211_v55 = vld [vmem:[#allocation35 + $0x144] ss:$8 sps:$4 sm:$0xff]  }
 0xb2e   :  { %3783 = vmatpush1.bf16.msra.mxu0 %v5173_v56  ;;  %v5209_v56 = vld [vmem:[#allocation35 + $0x140] ss:$8 sps:$4 sm:$0xff]  }
 0xb2f   :  { %3784 = vmatprep.subr.bf16.mxu0 %v5178_v57  ;;  %v5214_v57 = vld [vmem:[#allocation35 + $0x154] ss:$8 sps:$4 sm:$0xff]  }
 0xb32   :  { %3785 = vmatpush1.bf16.msra.mxu0 %v5176_v58  ;;  %v5212_v58 = vld [vmem:[#allocation35 + $0x150] ss:$8 sps:$4 sm:$0xff]  }
 0xb33   :  { %3786 = vmatprep.subr.bf16.mxu0 %v5181_v59  ;;  %v5217_v59 = vld [vmem:[#allocation35 + $0x164] ss:$8 sps:$4 sm:$0xff]  }
 0xb36   :  { %3787 = vmatpush1.bf16.msra.mxu0 %v5179_v60  ;;  %v5215_v60 = vld [vmem:[#allocation35 + $0x160] ss:$8 sps:$4 sm:$0xff]  }
 0xb37   :  { %3788 = vmatprep.subr.bf16.mxu0 %v5184_v61  ;;  %v5220_v61 = vld [vmem:[#allocation35 + $0x174] ss:$8 sps:$4 sm:$0xff]  }
 0xb3a   :  { %3789 = vmatpush1.bf16.msra.mxu0 %v5182_v62  ;;  %v5218_v62 = vld [vmem:[#allocation35 + $0x170] ss:$8 sps:$4 sm:$0xff]  }
 0xb3b   :  { %3790 = vmatprep.subr.bf16.mxu0 %v5187_v63  ;;  %v5223_v63 = vld [vmem:[#allocation35 + $0x184] ss:$8 sps:$4 sm:$0xff]  }
 0xb3e   :  { %3791 = vmatpush1.bf16.msra.mxu0 %v5185_v0  ;;  %v5221_v0 = vld [vmem:[#allocation35 + $0x180] ss:$8 sps:$4 sm:$0xff]  }
 0xb3f   :  { %3792 = vmatprep.subr.bf16.mxu0 %v5190_v1  ;;  %v5226_v1 = vld [vmem:[#allocation35 + $0x194] ss:$8 sps:$4 sm:$0xff]  }
 0xb42   :  { %3793 = vmatpush1.bf16.msra.mxu0 %v5188_v2  ;;  %v5224_v2 = vld [vmem:[#allocation35 + $0x190] ss:$8 sps:$4 sm:$0xff]  }
 0xb43   :  { %3794 = vmatprep.subr.bf16.mxu0 %v5193_v3  ;;  %v5229_v3 = vld [vmem:[#allocation35 + $0x1a4] ss:$8 sps:$4 sm:$0xff]  }
 0xb46   :  { %3795 = vmatpush1.bf16.msra.mxu0 %v5191_v4  ;;  %v5227_v4 = vld [vmem:[#allocation35 + $0x1a0] ss:$8 sps:$4 sm:$0xff]  }
 0xb47   :  { %3796 = vmatprep.subr.bf16.mxu0 %v5196_v5  ;;  %v5232_v5 = vld [vmem:[#allocation35 + $0x1b4] ss:$8 sps:$4 sm:$0xff]  }
 0xb4a   :  { %3797 = vmatpush1.bf16.msra.mxu0 %v5194_v6  ;;  %v5230_v6 = vld [vmem:[#allocation35 + $0x1b0] ss:$8 sps:$4 sm:$0xff]  }
 0xb4b   :  { %3807 = vmatprep.subr.bf16.mxu0 %v5199_v7  ;;  %v5235_v7 = vld [vmem:[#allocation35 + $0x1c4] ss:$8 sps:$4 sm:$0xff]  }
 0xba0   :  { %v3206_v23 = vpop.f32.mrb[20].mxu0  ;;  %v3247_v24 = vpop.f32.mrb[40].mxu1 }
 0xba1   :  { %v3207_v25 = vadd.f32 %v3206_v23, %v2528_v20  ;;  %v3208_v27 = vpop.f32.mrb[21].mxu0  ;;  %v3249_v46 = vpop.f32.mrb[41].mxu1 }
 0xba2   :  { %v3209_v29 = vadd.f32 %v3208_v27, %v2529_v22  ;;  %v3210_v38 = vpop.f32.mrb[22].mxu0  ;;  %v3251_v40 = vpop.f32.mrb[42].mxu1  ;;  %v3353_v22 = vrot.slane %v6262_v21, %v1872_v30 }
 0xba3   :  { %v3248_v44 = vadd.f32 %v3247_v24, %v3207_v25  ;;  %v3211_v47 = vpop.f32.mrb[23].mxu0  ;;  %v3252_v48 = vpop.f32.mrb[43].mxu1  ;;  %v5239_v25 = vld [vmem:[#allocation35 + $0x1e0] ss:$8 sps:$4 sm:$0xff]  }
 0xba4   :  { %v3250_v49 = vadd.f32 %v3249_v46, %v3209_v29  ;;  %v5244_v29 = vld [vmem:[#allocation35 + $0x1f4] ss:$8 sps:$4 sm:$0xff]   ;;  %v5257_v47 = vld [vmem:[%s6025_s24 + $0x70] sm:$0xff]  }
 0xba5   :  { %v3358_v50 = vadd.f32 %v3341_v26, %v3248_v44  ;;  %v5258_v48 = vld [vmem:[%s6025_s24 + $0x30] sm:$0xff]   ;;  %4572 = vmatprep.subr.bf16.mxu1 %v5257_v47 }
 0xba6   :  { %v3359_v41 = vadd.f32 %v3345_v37, %v3250_v49  ;;  %4573 = vmatpush3.bf16.msra.mxu1 %v5258_v48  ;;  %v5259_v49 = vld [vmem:[%s6025_s24 + $0x78] sm:$0xff]  }
 0xba7   :  { %v3362_v51 = vmax.f32 %v3358_v50, 0.0  ;;  %v5260_v50 = vld [vmem:[%s6025_s24 + $0x38] sm:$0xff]   ;;  %4574 = vmatprep.subr.bf16.mxu1 %v5259_v49  ;;  %s5881_s24 = smov [#allocation38]  }
 0xba8   :  { %v3363_v31 = vmax.f32 %v3359_v41, 0.0  ;;  %v3434_v41 = vld [vmem:[#allocation37] sm:$0x3]  ;;  %s4035_s25 = sshll.u32 %s5881_s24, 4  ;;  %s4036_s25 = int_to_ptr.vmem [resolvable:$true] %s4035_s25 }
 0xba9   :  { %v3366_v53 = vpack.c.bf16 %v3362_v51, %v3362_v51  ;;  %v3439_v51 = vrot.slane %v3434_v41, %v6177_v43  ;;  %s5771_s0 = scalar_lea.vmem %s4036_s25, 256  ;;  %p5776_p3 = scmp.lt.s32.totalorder %s4036_s25, %s4036_s25 }
 0xbaa   :  { %v3367_v32 = vpack.c.bf16 %v3363_v31, %v3363_v31  ;;  %4575 = vmatpush3.bf16.msra.mxu1 %v5260_v50  ;;  %v3443_v31 = vrot.slane %v3434_v41, %v6181_v45  ;;  %p5772_p2 = scmp.ne.s32.totalorder %s4036_s25, %s5771_s0  ;;  %p5777_p4 = scmp.lt.s32.totalorder %s5771_s0, %s5771_s0 }
 0xbac   :  { %3798 = vmatprep.mubr.bf16.mxu0 %v3367_v32  ;;  %p5778_p5 = por %p5777_p4, %p5776_p3 }
 0xbad   :  { %3799 = vmatmul.mubr.bf16.vlgmr.msra.gmra.mrb[28].mxu0 %v3366_v53 }
 0xbae   :  { %3808 = vmatpush1.bf16.msra.mxu0 %v5197_v52  ;;  %p5779_p6 = pnand %p5778_p5, %p5772_p2 }
 0xbaf   :  { %3809 = vmatprep.subr.bf16.mxu0 %v5202_v35 }
 0xbb2   :  { %3810 = vmatpush1.bf16.msra.mxu0 %v5200_v33 }
 0xbb3   :  { %3811 = vmatprep.subr.bf16.mxu0 %v5205_v39 }
 0xbb6   :  { %3812 = vmatpush1.bf16.msra.mxu0 %v5203_v36 }
 0xbb7   :  { %3813 = vmatprep.subr.bf16.mxu0 %v5208_v34 }
 0xbba   :  { %3814 = vmatpush1.bf16.msra.mxu0 %v5206_v54 }
 0xbbb   :  { %3815 = vmatprep.subr.bf16.mxu0 %v5211_v55 }
 0xbbe   :  { %3816 = vmatpush1.bf16.msra.mxu0 %v5209_v56 }
 0xbbf   :  { %3817 = vmatprep.subr.bf16.mxu0 %v5214_v57  ;;  %v4486_v57 = vld [vmem:[%s6030_s6] ss:$0 sm:$0xff] }
 0xbc2   :  { %3818 = vmatpush1.bf16.msra.mxu0 %v5212_v58 }
 0xbc3   :  { %3819 = vmatprep.subr.bf16.mxu0 %v5217_v59 }
 0xbc6   :  { %3820 = vmatpush1.bf16.msra.mxu0 %v5215_v60 }
 0xbc7   :  { %3821 = vmatprep.subr.bf16.mxu0 %v5220_v61 }
 0xbca   :  { %3822 = vmatpush1.bf16.msra.mxu0 %v5218_v62 }
 0xbcb   :  { %3823 = vmatprep.subr.bf16.mxu0 %v5223_v63 }
 0xbce   :  { %3824 = vmatpush1.bf16.msra.mxu0 %v5221_v0 }
 0xbcf   :  { %3825 = vmatprep.subr.bf16.mxu0 %v5226_v1 }
 0xbd2   :  { %3826 = vmatpush1.bf16.msra.mxu0 %v5224_v2 }
 0xbd3   :  { %3827 = vmatprep.subr.bf16.mxu0 %v5229_v3 }
 0xbd6   :  { %3828 = vmatpush1.bf16.msra.mxu0 %v5227_v4 }
 0xbd7   :  { %3829 = vmatprep.subr.bf16.mxu0 %v5232_v5 }
 0xbda   :  { %3830 = vmatpush1.bf16.msra.mxu0 %v5230_v6 }
 0xbdb   :  { %3831 = vmatprep.subr.bf16.mxu0 %v5235_v7 }
 0xbde   :  { %3832 = vmatpush1.bf16.msra.mxu0 %v5233_v8 }
 0xbdf   :  { %3833 = vmatprep.subr.bf16.mxu0 %v5238_v9 }
 0xbe0   :  { %v3288_v14 = vpop.f32.mrb[24].mxu0  ;;  %v3329_v15 = vpop.f32.mrb[44].mxu1 }
 0xbe1   :  { %v3289_v16 = vadd.f32 %v3288_v14, %v2530_v10  ;;  %v3290_v18 = vpop.f32.mrb[25].mxu0  ;;  %v3331_v19 = vpop.f32.mrb[45].mxu1 }
 0xbe2   :  { %v3291_v20 = vadd.f32 %v3290_v18, %v2531_v12  ;;  %v3292_v23 = vpop.f32.mrb[26].mxu0  ;;  %v3333_v24 = vpop.f32.mrb[46].mxu1  ;;  %3834 = vmatpush1.bf16.msra.mxu0 %v5236_v11 }
 0xbe3   :  { %v3330_v26 = vadd.f32 %v3329_v15, %v3289_v16  ;;  %v3293_v27 = vpop.f32.mrb[27].mxu0  ;;  %v3334_v46 = vpop.f32.mrb[47].mxu1  ;;  %3835 = vmatprep.subr.bf16.mxu0 %v5241_v13 }
 0xbe4   :  { %v3332_v37 = vadd.f32 %v3331_v19, %v3291_v20 }
 0xbe5   :  { %v3360_v28 = vadd.f32 %v3349_v17, %v3330_v26 }
 0xbe6   :  { %v3361_v38 = vadd.f32 %v3353_v22, %v3332_v37  ;;  %3836 = vmatpush1.bf16.msra.mxu0 %v5239_v25 }
 0xbe7   :  { %v3364_v40 = vmax.f32 %v3360_v28, 0.0  ;;  %3837 = vmatprep.subr.bf16.mxu0 %v5244_v29 }
 0xbe8   :  { %v3365_v30 = vmax.f32 %v3361_v38, 0.0 }
 0xbe9   :  { %v3368_v44 = vpack.c.bf16 %v3364_v40, %v3364_v40 }
 0xbea   :  { %v3369_v21 = vpack.c.bf16 %v3365_v30, %v3365_v30  ;;  %3838 = vmatpush1.bf16.msra.mxu0 %v5242_v42 }
 0xbec   :  { %3839 = vmatprep.mubr.bf16.mxu0 %v3369_v21 }
 0xbed   :  { %3840 = vmatmul.mubr.bf16.vlgmr.msra.gmra.mrb[28].mxu0 %v3368_v44 }
 0xcc0   :  { %v3841_v32 = vpop.f32.mrb[28].mxu0 }
 0xcc1   :  { %v4654_v52 = vadd.f32 %v3841_v32, %v3439_v51  ;;  %v3843_v53 = vpop.f32.mrb[29].mxu0 }
 0xcc2   :  { %v4655_v35 = vadd.f32 %v3843_v53, %v3443_v31  ;;  %v3845_v33 = vpop.f32.mrb[30].mxu0 }
 0xcc3   :  { %v3848_v39 = vmax.f32 %v4654_v52, 0.0  ;;  %v3846_v36 = vpop.f32.mrb[31].mxu0 }
 0xcc4   :  { %v3849_v34 = vmax.f32 %v4655_v35, 0.0 }
 0xcc5   :  { %v3850_v55 = vpack.c.bf16 %v3848_v39, %v3848_v39 }
 0xcc6   :  { %v3851_v54 = vpack.c.bf16 %v3849_v34, %v3849_v34 }
 0xcc8   :  { %4019 = vmatprep.mubr.bf16.mxu1 %v3851_v54 }
 0xcc9   :  { %4020 = vmatmul.mubr.bf16.vlgmr.msra.gmra.mrb[48].mxu1 %v3850_v55 }
 0xd9c   :  { %v4576_v56 = vpop.f32.mrb[48].mxu1 }
 0xd9d   :  { %v4577_v58 = vpop.f32.mrb[49].mxu1 }
 0xd9e   :  { %v4578_v43 = vadd.f32 %v4577_v58, %v4576_v56  ;;  %v4579_v59 = vpop.f32.mrb[50].mxu1 }
 0xd9f   :  { %v4580_v45 = vpop.f32.mrb[51].mxu1 }
 0xda0   :  { %v4022_v60 = vadd.f32 %v4578_v43, %v4486_v57 }
 0xda2   :  { %4028 = vst [vmem:[#allocation38 + $0x8] sm:$0xff] %v4022_v60 }
 0xda3   :  { %5782 = shalt.err (!%p5779_p6)
}
 0xda4   :  { %s5783_s6 = scalar_lea.hbm %s6035_s14, 256 }
 0xda5   :  { %p5784_p7 = scmp.ne.s32.totalorder %s6035_s14, %s5783_s6  ;;  %p5787_p8 = scmp.lt.u32.totalorder %s5783_s6, %s6035_s14 }
 0xda7   :  { %p5789_p9 = pnand %p5787_p8, %p5784_p7 }
 0xda9   :  { %5792 = shalt.err (!%p5789_p9)
}
 0xdaa   :  { %4038 = dma.vmem_to_hbm [thread:$0]  %s4036_s25, 256, %s6035_s14, [#allocation4]  }
 0xdab   :  { %5817 = dma.done.wait [#allocation4], 256  }
 0xdac   :  { %5818 = vsyncadd [#allocation4], 4294967040 }
 0xdad   :  { %4042 = vsyncpa [#allocation3], 1 }
 0xdae   :  { %4043 = vsyncpa [#allocation6], 1 }
 0xdaf   :  { %4044 = vsyncpa [#allocation9], 1 }
 0xdb0   :  { %4045 = vsyncpa [#allocation12], 1 }
 0xdb1   :  { %4046 = vsyncpa [#allocation15], 1 }
 0xdb2   :  { %4047 = vsyncpa [#allocation18], 1 }
 0xdb3   :  { %4048 = vsyncpa [#allocation21], 1 }
 0xdb4   :  { %4049 = vsyncpa [#allocation24], 1 }
 0xdb5   :  { %4050 = vsyncpa [#allocation27], 1 }
 0xdb6   :  { %4051 = vsyncpa [#allocation30], 1 }
 0xdb7   :  { %4052 = vsyncpa [#allocation33], 1 }
 0xdb8   :  { %4053 = vsyncpa [#allocation36], 1 }
 0xdb9   :  { %4054 = vsyncpa [#allocation4], 1 }

</bundles_post_ra>
